<compile_context>
chip_gen: v7x
topology: tpu7x:2x2x1
jax: 0.10.0
libtpu: 0.0.40
codegen_flags: <defaults>
</compile_context>

<pallas_src>
import math

import jax
import jax.numpy as jnp
from jax.experimental import pallas as pl
from jax.experimental.pallas import tpu as pltpu


def _round_up(n, m):
    return ((n + m - 1) // m) * m


def _cdiv(a, b):
    return (a + b - 1) // b


def _vmem_bytes_estimate(tc, bb, I, H, Cp, x_buffers=2, w_buffers=1):
    """Rough VMEM footprint of one kernel instance (lane/sublane padded)."""
    lane = 128
    bf, f32 = 2, 4
    x_tile = tc * _round_up(bb, 16) * _round_up(I, lane) * bf * x_buffers
    wrT = _round_up(H, 16) * _round_up(H, lane) * bf * w_buffers
    prT = _round_up(I, 16) * _round_up(H, lane) * bf * w_buffers
    biases = 2 * 8 * _round_up(H, lane) * f32 * w_buffers
    wlT = _round_up(H, 16) * _round_up(Cp, lane) * bf * w_buffers
    blp = 8 * _round_up(Cp, lane) * f32 * w_buffers
    out_tile = _round_up(bb, 8) * _round_up(Cp, lane) * f32 * 2
    r_z = (_round_up(bb, 8) + 8) * _round_up(H, lane) * f32
    xp = tc * _round_up(bb, 8) * _round_up(H, lane) * f32
    return x_tile + wrT + prT + biases + wlT + blp + out_tile + r_z + xp


def _choose_bb(Bp, batch_block):
    """Batch block: multiple of 16 (bf16 sublane packing keeps the in-kernel
    reshape layout-trivial); prefer >= 2 blocks when the batch is big enough so
    the 'parallel' axis can shard across v7x's two TensorCores."""
    bb = min(_round_up(batch_block, 16), Bp)
    if bb >= Bp and Bp >= 32:
        bb = _round_up(Bp // 2, 16)
    return bb


def _make_kernel(tc, bb, T, num_chunks):
    def kernel(x_ref, wrT_ref, prT_ref, br_ref, bz_ref, wlT_ref, bl_ref,
               out_ref, r_scratch, z_scratch, xp_scratch):
        # NOTE: correctness of the c==0 init / c==last store relies on the time
        # axis being the innermost ("arbitrary") grid axis and on out_specs
        # being constant over it.  Do not reorder the grid.
        c = pl.program_id(1)
        _, _, inp = x_ref.shape

        @pl.when(c == 0)
        def _():
            r_scratch[...] = jnp.zeros_like(r_scratch)
            z_scratch[...] = jax.nn.sigmoid(bz_ref[...])   # input-independent gate

        # Chunk-wide input projection: ONE tall MXU matmul, off the serial
        # chain; result parked in VMEM scratch instead of living in vregs.
        xk = x_ref[...].reshape(tc * bb, inp)              # bf16, layout-trivial
        xp_scratch[...] = (
            jnp.dot(xk, prT_ref[...], preferred_element_type=jnp.float32)
            + br_ref[...]).reshape(xp_scratch.shape)

        wr = wrT_ref[...]                                   # (H, H) bf16, hoisted
        r = r_scratch[...]                                  # (bb, H) f32 state
        z_b = jnp.broadcast_to(z_scratch[...], r.shape)     # hoisted broadcasts
        omz_b = 1.0 - z_b

        for t in range(tc):                                 # static, fully unrolled
            pre = jnp.dot(r.astype(jnp.bfloat16), wr,
                          preferred_element_type=jnp.float32) + xp_scratch[t]
            r_new = omz_b * r + z_b * jnp.tanh(pre)         # f32 state math
            if (num_chunks - 1) * tc + t >= T:
                # only statically-padded time steps pay this select
                r_new = jnp.where(c * tc + t < T, r_new, r)
            r = r_new

        r_scratch[...] = r

        @pl.when(c == num_chunks - 1)
        def _():
            out_ref[...] = (
                jnp.dot(r.astype(jnp.bfloat16), wlT_ref[...],
                        preferred_element_type=jnp.float32)
                + bl_ref[...]).astype(out_ref.dtype)

    return kernel


def sequential_gru(x_bti, params, *, time_chunk=32, batch_block=256,
                   vmem_budget_bytes=40 << 20):
    """x_bti: (batch, seq, input_size) f32 -> (batch, num_classes) f32 logits."""
    W_r, P_r, b_r, b_z, W_lin, b_lin = params
    B, T, I = x_bti.shape
    H = W_r.shape[0]
    C = W_lin.shape[0]

    # ---- alignment / blocking (semantics-preserving padding, sliced off) ----
    Cp = _round_up(C, 128)                       # lane-dense output store
    Bp = _round_up(B, 16)                        # bf16 sublane packing for x
    bb = _choose_bb(Bp, batch_block)
    Bp = _round_up(Bp, bb)                       # pad up; never bb = full batch

    tc = max(1, min(time_chunk, T))
    tc = _cdiv(T, _cdiv(T, tc))                  # minimize time padding
    while tc > 1 and _vmem_bytes_estimate(tc, bb, I, H, Cp) > vmem_budget_bytes:
        tc = _cdiv(tc, 2)
    num_chunks = _cdiv(T, tc)
    Tp = num_chunks * tc

    # ---- host-side data prep ----
    x = x_bti.astype(jnp.bfloat16)               # halve HBM->VMEM DMA bytes
    if Bp != B or Tp != T:
        x = jnp.pad(x, ((0, Bp - B), (0, Tp - T), (0, 0)))
    x_tbi = jnp.transpose(x, (1, 0, 2))          # (Tp, Bp, I) bf16

    wrT = W_r.T.astype(jnp.bfloat16)                                   # (H, H)
    prT = P_r.T.astype(jnp.bfloat16)                                   # (I, H)
    wlT = jnp.zeros((H, Cp), jnp.bfloat16).at[:, :C].set(W_lin.T.astype(jnp.bfloat16))
    blp = jnp.zeros((1, Cp), jnp.float32).at[0, :C].set(b_lin)
    br2 = b_r.astype(jnp.float32)[None, :]
    bz2 = b_z.astype(jnp.float32)[None, :]

    # Size the scoped VMEM to actual need (+ headroom for Mosaic internal
    # scratch); never request the full 64 MiB a v7x TensorCore physically has.
    vmem_need = _vmem_bytes_estimate(tc, bb, I, H, Cp)
    vmem_limit = int(min(vmem_need * 1.2 + (16 << 20), 48 << 20))

    kernel = _make_kernel(tc, bb, T, num_chunks)

    def run(single_buffer_weights):
        wkw = dict(pipeline_mode=pl.Buffered(1)) if single_buffer_weights else {}
        grid_spec = pltpu.PrefetchScalarGridSpec(
            num_scalar_prefetch=0,
            grid=(Bp // bb, num_chunks),           # (parallel batch, serial time)
            in_specs=[
                pl.BlockSpec((tc, bb, I), lambda b, c: (c, b, 0)),         # x chunk
                pl.BlockSpec((H, H),  lambda b, c: (0, 0), **wkw),         # W_r^T
                pl.BlockSpec((I, H),  lambda b, c: (0, 0), **wkw),         # P_r^T
                pl.BlockSpec((1, H),  lambda b, c: (0, 0), **wkw),         # b_r
                pl.BlockSpec((1, H),  lambda b, c: (0, 0), **wkw),         # b_z
                pl.BlockSpec((H, Cp), lambda b, c: (0, 0), **wkw),         # W_lin^T
                pl.BlockSpec((1, Cp), lambda b, c: (0, 0), **wkw),         # b_lin
            ],
            out_specs=pl.BlockSpec((bb, Cp), lambda b, c: (b, 0)),         # resident
            scratch_shapes=[
                pltpu.VMEM((bb, H), jnp.float32),        # hidden state r
                pltpu.VMEM((1, H), jnp.float32),         # cached z = sigmoid(b_z)
                pltpu.VMEM((tc, bb, H), jnp.float32),    # chunk input projection
            ],
        )
        return pl.pallas_call(
            kernel,
            out_shape=jax.ShapeDtypeStruct((Bp, Cp), jnp.float32),
            grid_spec=grid_spec,
            compiler_params=pltpu.CompilerParams(
                dimension_semantics=("parallel", "arbitrary"),
                vmem_limit_bytes=vmem_limit),
        )(x_tbi, wrT, prT, br2, bz2, wlT, blp)

    try:
        out = run(single_buffer_weights=True)
    except Exception:
        # Installed JAX may not accept pipeline_mode=pl.Buffered(1); fall back
        # to default (double-buffered) weight specs — semantics are identical.
        out = run(single_buffer_weights=False)

    return out[:B, :C]


def ref_forward_f32(x_bti, params):
    """Pure-f32 reference mirroring the PyTorch forward exactly."""
    W_r, P_r, b_r, b_z, W_lin, b_lin = params
    B, T, _ = x_bti.shape
    H = W_r.shape[0]
    r = jnp.zeros((B, H), jnp.float32)
    z = jax.nn.sigmoid(b_z)
    for i in range(T):
        xs = x_bti[:, i, :]
        r = (1.0 - z) * r + z * jnp.tanh(xs @ P_r.T + r @ W_r.T + b_r)
    return r @ W_lin.T + b_lin


def ref_forward_bf16(x_bti, params):
    """Same math with the kernel's MXU numerics: bf16 matmul operands, f32
    accumulation; state / tanh / gate arithmetic stays f32."""
    W_r, P_r, b_r, b_z, W_lin, b_lin = params
    bf = jnp.bfloat16
    B, T, _ = x_bti.shape
    H = W_r.shape[0]
    wrT = W_r.T.astype(bf)
    prT = P_r.T.astype(bf)
    r = jnp.zeros((B, H), jnp.float32)
    z = jax.nn.sigmoid(b_z)
    for i in range(T):
        xp = jnp.dot(x_bti[:, i, :].astype(bf), prT,
                     preferred_element_type=jnp.float32) + b_r
        pre = jnp.dot(r.astype(bf), wrT, preferred_element_type=jnp.float32) + xp
        r = (1.0 - z) * r + z * jnp.tanh(pre)
    return (jnp.dot(r.astype(bf), W_lin.T.astype(bf),
                    preferred_element_type=jnp.float32) + b_lin)


def init_params(key, input_size, hidden_size, num_classes):
    k = jax.random.split(key, 6)
    s = 1.0 / math.sqrt(hidden_size)       # GRUCell init scale
    sl = 1.0 / math.sqrt(hidden_size)      # nn.Linear default: 1/sqrt(in_features)
    W_r = jax.random.uniform(k[0], (hidden_size, hidden_size), jnp.float32, -s, s)
    P_r = jax.random.uniform(k[1], (hidden_size, input_size), jnp.float32, -s, s)
    b_r = jax.random.uniform(k[2], (hidden_size,), jnp.float32, -s, s)
    b_z = jax.random.uniform(k[3], (hidden_size,), jnp.float32, -s, s)
    W_lin = jax.random.uniform(k[4], (num_classes, hidden_size), jnp.float32, -sl, sl)
    b_lin = jax.random.uniform(k[5], (num_classes,), jnp.float32, -sl, sl)
    return (W_r, P_r, b_r, b_z, W_lin, b_lin)


if __name__ == "__main__":
    # MNIST-row-sequential shapes, kept small and TPU-friendly.
    B, T, I, H, C = 8, 28, 28, 128, 10
    key = jax.random.PRNGKey(0)
    kx, kp = jax.random.split(key)
    x = jax.random.normal(kx, (B, T, I), jnp.float32)
    params = init_params(kp, I, H, C)

    out = jax.block_until_ready(sequential_gru(x, params))
    assert out.shape == (B, C)

    # Tight check vs. a reference with matching bf16-matmul / f32-state numerics.
    ref_bf = ref_forward_bf16(x, params)
    assert jnp.allclose(out, ref_bf, atol=1e-3, rtol=1e-3), (
        f"bf16-matched max abs err {jnp.max(jnp.abs(out - ref_bf))}")

    # Semantic check vs. the pure-f32 PyTorch-equivalent reference.
    ref_f32 = ref_forward_f32(x, params)
    assert jnp.allclose(out, ref_f32, atol=2e-2, rtol=2e-2), (
        f"f32-reference max abs err {jnp.max(jnp.abs(out - ref_f32))}")

    print("KERNEL_OK")
</pallas_src>

<mosaic_0001>
module attributes {stable_mosaic.version = 11 : i64} {
  func.func @kernel(%arg0: i32, %arg1: i32, %arg2: memref<28x16x28xbf16, #tpu.memory_space<vmem>>, %arg3: memref<128x128xbf16, #tpu.memory_space<vmem>>, %arg4: memref<28x128xbf16, #tpu.memory_space<vmem>>, %arg5: memref<1x128xf32, #tpu.memory_space<vmem>>, %arg6: memref<1x128xf32, #tpu.memory_space<vmem>>, %arg7: memref<128x128xbf16, #tpu.memory_space<vmem>>, %arg8: memref<1x128xf32, #tpu.memory_space<vmem>>, %arg9: memref<16x128xf32, #tpu.memory_space<vmem>>, %arg10: memref<16x128xf32, #tpu.memory_space<vmem>>, %arg11: memref<1x128xf32, #tpu.memory_space<vmem>>, %arg12: memref<28x16x128xf32, #tpu.memory_space<vmem>>) attributes {dimension_semantics = [#tpu.dimension_semantics<parallel>, #tpu.dimension_semantics<arbitrary>], iteration_bounds = array<i64: 1, 1>, scalar_prefetch = 0 : i64, scratch_operands = 3 : i64, tpu.core_type = #tpu.core_type<tc>, window_params = [{transform_indices = @transform_0, window_bounds = array<i64: 28, 16, 28>}, {pipeline_mode = #tpu.pipeline_mode<synchronous>, transform_indices = @transform_1, window_bounds = array<i64: 128, 128>}, {pipeline_mode = #tpu.pipeline_mode<synchronous>, transform_indices = @transform_2, window_bounds = array<i64: 28, 128>}, {pipeline_mode = #tpu.pipeline_mode<synchronous>, transform_indices = @transform_3, window_bounds = array<i64: 1, 128>}, {pipeline_mode = #tpu.pipeline_mode<synchronous>, transform_indices = @transform_4, window_bounds = array<i64: 1, 128>}, {pipeline_mode = #tpu.pipeline_mode<synchronous>, transform_indices = @transform_5, window_bounds = array<i64: 128, 128>}, {pipeline_mode = #tpu.pipeline_mode<synchronous>, transform_indices = @transform_6, window_bounds = array<i64: 1, 128>}, {transform_indices = @transform_7, window_bounds = array<i64: 16, 128>}]} {
    %c0_i32 = arith.constant 0 : i32
    %0 = arith.cmpi eq, %arg1, %c0_i32 : i32
    %1 = arith.extui %0 : i1 to i32
    %c0_i32_0 = arith.constant 0 : i32
    %2 = arith.cmpi ne, %1, %c0_i32_0 : i32
    scf.if %2 {
      %cst_106 = arith.constant 0.000000e+00 : f32
      %275 = vector.broadcast %cst_106 : f32 to vector<16x128xf32>
      %c0_107 = arith.constant 0 : index
      %c0_108 = arith.constant 0 : index
      %276 = vector.load %arg10[%c0_107, %c0_108] : memref<16x128xf32, #tpu.memory_space<vmem>>, vector<16x128xf32>
      tpu.vector_store %arg10[%c0_107, %c0_108], %275 {strides = array<i32>} : memref<16x128xf32, #tpu.memory_space<vmem>>, vector<16x128xf32>,
      %c0_109 = arith.constant 0 : index
      %c0_110 = arith.constant 0 : index
      %277 = vector.load %arg6[%c0_109, %c0_110] : memref<1x128xf32, #tpu.memory_space<vmem>>, vector<1x128xf32>
      %278 = arith.negf %277 : vector<1x128xf32>
      %279 = math.exp %278 : vector<1x128xf32>
      %cst_111 = arith.constant 1.000000e+00 : f32
      %280 = vector.broadcast %cst_111 : f32 to vector<1x128xf32>
      %281 = arith.addf %280, %279 : vector<1x128xf32>
      %282 = arith.divf %280, %281 : vector<1x128xf32>
      %c0_112 = arith.constant 0 : index
      %c0_113 = arith.constant 0 : index
      %283 = vector.load %arg11[%c0_112, %c0_113] : memref<1x128xf32, #tpu.memory_space<vmem>>, vector<1x128xf32>
      tpu.vector_store %arg11[%c0_112, %c0_113], %282 {strides = array<i32>} : memref<1x128xf32, #tpu.memory_space<vmem>>, vector<1x128xf32>,
    } else {
    }
    %c0 = arith.constant 0 : index
    %c0_1 = arith.constant 0 : index
    %c0_2 = arith.constant 0 : index
    %3 = vector.load %arg2[%c0, %c0_1, %c0_2] : memref<28x16x28xbf16, #tpu.memory_space<vmem>>, vector<28x16x28xbf16>
    %4 = vector.shape_cast %3 : vector<28x16x28xbf16> to vector<448x28xbf16>
    %c0_3 = arith.constant 0 : index
    %c0_4 = arith.constant 0 : index
    %5 = vector.load %arg4[%c0_3, %c0_4] : memref<28x128xbf16, #tpu.memory_space<vmem>>, vector<28x128xbf16>
    %cst = arith.constant dense<0.000000e+00> : vector<448x128xf32>
    %6 = tpu.matmul %4, %5, %cst {dimension_numbers = #tpu.dot_dimension_numbers<[1], [0], [0], [1], [0, 0, 1, 1], [], []>} : vector<448x28xbf16>, vector<28x128xbf16>, vector<448x128xf32> -> vector<448x128xf32>
    %c0_5 = arith.constant 0 : index
    %c0_6 = arith.constant 0 : index
    %7 = vector.load %arg5[%c0_5, %c0_6] : memref<1x128xf32, #tpu.memory_space<vmem>>, vector<1x128xf32>
    %8 = vector.broadcast %7 : vector<1x128xf32> to vector<448x128xf32>
    %9 = arith.addf %6, %8 : vector<448x128xf32>
    %10 = vector.shape_cast %9 : vector<448x128xf32> to vector<28x16x128xf32>
    %c0_7 = arith.constant 0 : index
    %c0_8 = arith.constant 0 : index
    %c0_9 = arith.constant 0 : index
    %11 = vector.load %arg12[%c0_7, %c0_8, %c0_9] : memref<28x16x128xf32, #tpu.memory_space<vmem>>, vector<28x16x128xf32>
    tpu.vector_store %arg12[%c0_7, %c0_8, %c0_9], %10 {strides = array<i32>} : memref<28x16x128xf32, #tpu.memory_space<vmem>>, vector<28x16x128xf32>,
    %c0_10 = arith.constant 0 : index
    %c0_11 = arith.constant 0 : index
    %12 = vector.load %arg3[%c0_10, %c0_11] : memref<128x128xbf16, #tpu.memory_space<vmem>>, vector<128x128xbf16>
    %c0_12 = arith.constant 0 : index
    %c0_13 = arith.constant 0 : index
    %13 = vector.load %arg10[%c0_12, %c0_13] : memref<16x128xf32, #tpu.memory_space<vmem>>, vector<16x128xf32>
    %c0_14 = arith.constant 0 : index
    %c0_15 = arith.constant 0 : index
    %14 = vector.load %arg11[%c0_14, %c0_15] : memref<1x128xf32, #tpu.memory_space<vmem>>, vector<1x128xf32>
    %15 = vector.shape_cast %14 : vector<1x128xf32> to vector<1x128xf32>
    %16 = vector.broadcast %15 : vector<1x128xf32> to vector<16x128xf32>
    %cst_16 = arith.constant 1.000000e+00 : f32
    %17 = vector.broadcast %cst_16 : f32 to vector<16x128xf32>
    %18 = arith.subf %17, %16 : vector<16x128xf32>
    %19 = arith.truncf %13 : vector<16x128xf32> to vector<16x128xbf16>
    %cst_17 = arith.constant dense<0.000000e+00> : vector<16x128xf32>
    %20 = tpu.matmul %19, %12, %cst_17 {dimension_numbers = #tpu.dot_dimension_numbers<[1], [0], [0], [1], [0, 0, 1, 1], [], []>} : vector<16x128xbf16>, vector<128x128xbf16>, vector<16x128xf32> -> vector<16x128xf32>
    %c0_18 = arith.constant 0 : index
    %c0_19 = arith.constant 0 : index
    %c0_20 = arith.constant 0 : index
    %21 = vector.load %arg12[%c0_18, %c0_19, %c0_20] : memref<28x16x128xf32, #tpu.memory_space<vmem>>, vector<1x16x128xf32>
    %22 = vector.shape_cast %21 : vector<1x16x128xf32> to vector<16x128xf32>
    %23 = arith.addf %20, %22 : vector<16x128xf32>
    %24 = arith.mulf %18, %13 : vector<16x128xf32>
    %25 = math.tanh %23 : vector<16x128xf32>
    %26 = arith.mulf %16, %25 : vector<16x128xf32>
    %27 = arith.addf %24, %26 : vector<16x128xf32>
    %28 = arith.truncf %27 : vector<16x128xf32> to vector<16x128xbf16>
    %cst_21 = arith.constant dense<0.000000e+00> : vector<16x128xf32>
    %29 = tpu.matmul %28, %12, %cst_21 {dimension_numbers = #tpu.dot_dimension_numbers<[1], [0], [0], [1], [0, 0, 1, 1], [], []>} : vector<16x128xbf16>, vector<128x128xbf16>, vector<16x128xf32> -> vector<16x128xf32>
    %c1 = arith.constant 1 : index
    %c0_22 = arith.constant 0 : index
    %c0_23 = arith.constant 0 : index
    %30 = vector.load %arg12[%c1, %c0_22, %c0_23] : memref<28x16x128xf32, #tpu.memory_space<vmem>>, vector<1x16x128xf32>
    %31 = vector.shape_cast %30 : vector<1x16x128xf32> to vector<16x128xf32>
    %32 = arith.addf %29, %31 : vector<16x128xf32>
    %33 = arith.mulf %18, %27 : vector<16x128xf32>
    %34 = math.tanh %32 : vector<16x128xf32>
    %35 = arith.mulf %16, %34 : vector<16x128xf32>
    %36 = arith.addf %33, %35 : vector<16x128xf32>
    %37 = arith.truncf %36 : vector<16x128xf32> to vector<16x128xbf16>
    %cst_24 = arith.constant dense<0.000000e+00> : vector<16x128xf32>
    %38 = tpu.matmul %37, %12, %cst_24 {dimension_numbers = #tpu.dot_dimension_numbers<[1], [0], [0], [1], [0, 0, 1, 1], [], []>} : vector<16x128xbf16>, vector<128x128xbf16>, vector<16x128xf32> -> vector<16x128xf32>
    %c2 = arith.constant 2 : index
    %c0_25 = arith.constant 0 : index
    %c0_26 = arith.constant 0 : index
    %39 = vector.load %arg12[%c2, %c0_25, %c0_26] : memref<28x16x128xf32, #tpu.memory_space<vmem>>, vector<1x16x128xf32>
    %40 = vector.shape_cast %39 : vector<1x16x128xf32> to vector<16x128xf32>
    %41 = arith.addf %38, %40 : vector<16x128xf32>
    %42 = arith.mulf %18, %36 : vector<16x128xf32>
    %43 = math.tanh %41 : vector<16x128xf32>
    %44 = arith.mulf %16, %43 : vector<16x128xf32>
    %45 = arith.addf %42, %44 : vector<16x128xf32>
    %46 = arith.truncf %45 : vector<16x128xf32> to vector<16x128xbf16>
    %cst_27 = arith.constant dense<0.000000e+00> : vector<16x128xf32>
    %47 = tpu.matmul %46, %12, %cst_27 {dimension_numbers = #tpu.dot_dimension_numbers<[1], [0], [0], [1], [0, 0, 1, 1], [], []>} : vector<16x128xbf16>, vector<128x128xbf16>, vector<16x128xf32> -> vector<16x128xf32>
    %c3 = arith.constant 3 : index
    %c0_28 = arith.constant 0 : index
    %c0_29 = arith.constant 0 : index
    %48 = vector.load %arg12[%c3, %c0_28, %c0_29] : memref<28x16x128xf32, #tpu.memory_space<vmem>>, vector<1x16x128xf32>
    %49 = vector.shape_cast %48 : vector<1x16x128xf32> to vector<16x128xf32>
    %50 = arith.addf %47, %49 : vector<16x128xf32>
    %51 = arith.mulf %18, %45 : vector<16x128xf32>
    %52 = math.tanh %50 : vector<16x128xf32>
    %53 = arith.mulf %16, %52 : vector<16x128xf32>
    %54 = arith.addf %51, %53 : vector<16x128xf32>
    %55 = arith.truncf %54 : vector<16x128xf32> to vector<16x128xbf16>
    %cst_30 = arith.constant dense<0.000000e+00> : vector<16x128xf32>
    %56 = tpu.matmul %55, %12, %cst_30 {dimension_numbers = #tpu.dot_dimension_numbers<[1], [0], [0], [1], [0, 0, 1, 1], [], []>} : vector<16x128xbf16>, vector<128x128xbf16>, vector<16x128xf32> -> vector<16x128xf32>
    %c4 = arith.constant 4 : index
    %c0_31 = arith.constant 0 : index
    %c0_32 = arith.constant 0 : index
    %57 = vector.load %arg12[%c4, %c0_31, %c0_32] : memref<28x16x128xf32, #tpu.memory_space<vmem>>, vector<1x16x128xf32>
    %58 = vector.shape_cast %57 : vector<1x16x128xf32> to vector<16x128xf32>
    %59 = arith.addf %56, %58 : vector<16x128xf32>
    %60 = arith.mulf %18, %54 : vector<16x128xf32>
    %61 = math.tanh %59 : vector<16x128xf32>
    %62 = arith.mulf %16, %61 : vector<16x128xf32>
    %63 = arith.addf %60, %62 : vector<16x128xf32>
    %64 = arith.truncf %63 : vector<16x128xf32> to vector<16x128xbf16>
    %cst_33 = arith.constant dense<0.000000e+00> : vector<16x128xf32>
    %65 = tpu.matmul %64, %12, %cst_33 {dimension_numbers = #tpu.dot_dimension_numbers<[1], [0], [0], [1], [0, 0, 1, 1], [], []>} : vector<16x128xbf16>, vector<128x128xbf16>, vector<16x128xf32> -> vector<16x128xf32>
    %c5 = arith.constant 5 : index
    %c0_34 = arith.constant 0 : index
    %c0_35 = arith.constant 0 : index
    %66 = vector.load %arg12[%c5, %c0_34, %c0_35] : memref<28x16x128xf32, #tpu.memory_space<vmem>>, vector<1x16x128xf32>
    %67 = vector.shape_cast %66 : vector<1x16x128xf32> to vector<16x128xf32>
    %68 = arith.addf %65, %67 : vector<16x128xf32>
    %69 = arith.mulf %18, %63 : vector<16x128xf32>
    %70 = math.tanh %68 : vector<16x128xf32>
    %71 = arith.mulf %16, %70 : vector<16x128xf32>
    %72 = arith.addf %69, %71 : vector<16x128xf32>
    %73 = arith.truncf %72 : vector<16x128xf32> to vector<16x128xbf16>
    %cst_36 = arith.constant dense<0.000000e+00> : vector<16x128xf32>
    %74 = tpu.matmul %73, %12, %cst_36 {dimension_numbers = #tpu.dot_dimension_numbers<[1], [0], [0], [1], [0, 0, 1, 1], [], []>} : vector<16x128xbf16>, vector<128x128xbf16>, vector<16x128xf32> -> vector<16x128xf32>
    %c6 = arith.constant 6 : index
    %c0_37 = arith.constant 0 : index
    %c0_38 = arith.constant 0 : index
    %75 = vector.load %arg12[%c6, %c0_37, %c0_38] : memref<28x16x128xf32, #tpu.memory_space<vmem>>, vector<1x16x128xf32>
    %76 = vector.shape_cast %75 : vector<1x16x128xf32> to vector<16x128xf32>
    %77 = arith.addf %74, %76 : vector<16x128xf32>
    %78 = arith.mulf %18, %72 : vector<16x128xf32>
    %79 = math.tanh %77 : vector<16x128xf32>
    %80 = arith.mulf %16, %79 : vector<16x128xf32>
    %81 = arith.addf %78, %80 : vector<16x128xf32>
    %82 = arith.truncf %81 : vector<16x128xf32> to vector<16x128xbf16>
    %cst_39 = arith.constant dense<0.000000e+00> : vector<16x128xf32>
    %83 = tpu.matmul %82, %12, %cst_39 {dimension_numbers = #tpu.dot_dimension_numbers<[1], [0], [0], [1], [0, 0, 1, 1], [], []>} : vector<16x128xbf16>, vector<128x128xbf16>, vector<16x128xf32> -> vector<16x128xf32>
    %c7 = arith.constant 7 : index
    %c0_40 = arith.constant 0 : index
    %c0_41 = arith.constant 0 : index
    %84 = vector.load %arg12[%c7, %c0_40, %c0_41] : memref<28x16x128xf32, #tpu.memory_space<vmem>>, vector<1x16x128xf32>
    %85 = vector.shape_cast %84 : vector<1x16x128xf32> to vector<16x128xf32>
    %86 = arith.addf %83, %85 : vector<16x128xf32>
    %87 = arith.mulf %18, %81 : vector<16x128xf32>
    %88 = math.tanh %86 : vector<16x128xf32>
    %89 = arith.mulf %16, %88 : vector<16x128xf32>
    %90 = arith.addf %87, %89 : vector<16x128xf32>
    %91 = arith.truncf %90 : vector<16x128xf32> to vector<16x128xbf16>
    %cst_42 = arith.constant dense<0.000000e+00> : vector<16x128xf32>
    %92 = tpu.matmul %91, %12, %cst_42 {dimension_numbers = #tpu.dot_dimension_numbers<[1], [0], [0], [1], [0, 0, 1, 1], [], []>} : vector<16x128xbf16>, vector<128x128xbf16>, vector<16x128xf32> -> vector<16x128xf32>
    %c8 = arith.constant 8 : index
    %c0_43 = arith.constant 0 : index
    %c0_44 = arith.constant 0 : index
    %93 = vector.load %arg12[%c8, %c0_43, %c0_44] : memref<28x16x128xf32, #tpu.memory_space<vmem>>, vector<1x16x128xf32>
    %94 = vector.shape_cast %93 : vector<1x16x128xf32> to vector<16x128xf32>
    %95 = arith.addf %92, %94 : vector<16x128xf32>
    %96 = arith.mulf %18, %90 : vector<16x128xf32>
    %97 = math.tanh %95 : vector<16x128xf32>
    %98 = arith.mulf %16, %97 : vector<16x128xf32>
    %99 = arith.addf %96, %98 : vector<16x128xf32>
    %100 = arith.truncf %99 : vector<16x128xf32> to vector<16x128xbf16>
    %cst_45 = arith.constant dense<0.000000e+00> : vector<16x128xf32>
    %101 = tpu.matmul %100, %12, %cst_45 {dimension_numbers = #tpu.dot_dimension_numbers<[1], [0], [0], [1], [0, 0, 1, 1], [], []>} : vector<16x128xbf16>, vector<128x128xbf16>, vector<16x128xf32> -> vector<16x128xf32>
    %c9 = arith.constant 9 : index
    %c0_46 = arith.constant 0 : index
    %c0_47 = arith.constant 0 : index
    %102 = vector.load %arg12[%c9, %c0_46, %c0_47] : memref<28x16x128xf32, #tpu.memory_space<vmem>>, vector<1x16x128xf32>
    %103 = vector.shape_cast %102 : vector<1x16x128xf32> to vector<16x128xf32>
    %104 = arith.addf %101, %103 : vector<16x128xf32>
    %105 = arith.mulf %18, %99 : vector<16x128xf32>
    %106 = math.tanh %104 : vector<16x128xf32>
    %107 = arith.mulf %16, %106 : vector<16x128xf32>
    %108 = arith.addf %105, %107 : vector<16x128xf32>
    %109 = arith.truncf %108 : vector<16x128xf32> to vector<16x128xbf16>
    %cst_48 = arith.constant dense<0.000000e+00> : vector<16x128xf32>
    %110 = tpu.matmul %109, %12, %cst_48 {dimension_numbers = #tpu.dot_dimension_numbers<[1], [0], [0], [1], [0, 0, 1, 1], [], []>} : vector<16x128xbf16>, vector<128x128xbf16>, vector<16x128xf32> -> vector<16x128xf32>
    %c10 = arith.constant 10 : index
    %c0_49 = arith.constant 0 : index
    %c0_50 = arith.constant 0 : index
    %111 = vector.load %arg12[%c10, %c0_49, %c0_50] : memref<28x16x128xf32, #tpu.memory_space<vmem>>, vector<1x16x128xf32>
    %112 = vector.shape_cast %111 : vector<1x16x128xf32> to vector<16x128xf32>
    %113 = arith.addf %110, %112 : vector<16x128xf32>
    %114 = arith.mulf %18, %108 : vector<16x128xf32>
    %115 = math.tanh %113 : vector<16x128xf32>
    %116 = arith.mulf %16, %115 : vector<16x128xf32>
    %117 = arith.addf %114, %116 : vector<16x128xf32>
    %118 = arith.truncf %117 : vector<16x128xf32> to vector<16x128xbf16>
    %cst_51 = arith.constant dense<0.000000e+00> : vector<16x128xf32>
    %119 = tpu.matmul %118, %12, %cst_51 {dimension_numbers = #tpu.dot_dimension_numbers<[1], [0], [0], [1], [0, 0, 1, 1], [], []>} : vector<16x128xbf16>, vector<128x128xbf16>, vector<16x128xf32> -> vector<16x128xf32>
    %c11 = arith.constant 11 : index
    %c0_52 = arith.constant 0 : index
    %c0_53 = arith.constant 0 : index
    %120 = vector.load %arg12[%c11, %c0_52, %c0_53] : memref<28x16x128xf32, #tpu.memory_space<vmem>>, vector<1x16x128xf32>
    %121 = vector.shape_cast %120 : vector<1x16x128xf32> to vector<16x128xf32>
    %122 = arith.addf %119, %121 : vector<16x128xf32>
    %123 = arith.mulf %18, %117 : vector<16x128xf32>
    %124 = math.tanh %122 : vector<16x128xf32>
    %125 = arith.mulf %16, %124 : vector<16x128xf32>
    %126 = arith.addf %123, %125 : vector<16x128xf32>
    %127 = arith.truncf %126 : vector<16x128xf32> to vector<16x128xbf16>
    %cst_54 = arith.constant dense<0.000000e+00> : vector<16x128xf32>
    %128 = tpu.matmul %127, %12, %cst_54 {dimension_numbers = #tpu.dot_dimension_numbers<[1], [0], [0], [1], [0, 0, 1, 1], [], []>} : vector<16x128xbf16>, vector<128x128xbf16>, vector<16x128xf32> -> vector<16x128xf32>
    %c12 = arith.constant 12 : index
    %c0_55 = arith.constant 0 : index
    %c0_56 = arith.constant 0 : index
    %129 = vector.load %arg12[%c12, %c0_55, %c0_56] : memref<28x16x128xf32, #tpu.memory_space<vmem>>, vector<1x16x128xf32>
    %130 = vector.shape_cast %129 : vector<1x16x128xf32> to vector<16x128xf32>
    %131 = arith.addf %128, %130 : vector<16x128xf32>
    %132 = arith.mulf %18, %126 : vector<16x128xf32>
    %133 = math.tanh %131 : vector<16x128xf32>
    %134 = arith.mulf %16, %133 : vector<16x128xf32>
    %135 = arith.addf %132, %134 : vector<16x128xf32>
    %136 = arith.truncf %135 : vector<16x128xf32> to vector<16x128xbf16>
    %cst_57 = arith.constant dense<0.000000e+00> : vector<16x128xf32>
    %137 = tpu.matmul %136, %12, %cst_57 {dimension_numbers = #tpu.dot_dimension_numbers<[1], [0], [0], [1], [0, 0, 1, 1], [], []>} : vector<16x128xbf16>, vector<128x128xbf16>, vector<16x128xf32> -> vector<16x128xf32>
    %c13 = arith.constant 13 : index
    %c0_58 = arith.constant 0 : index
    %c0_59 = arith.constant 0 : index
    %138 = vector.load %arg12[%c13, %c0_58, %c0_59] : memref<28x16x128xf32, #tpu.memory_space<vmem>>, vector<1x16x128xf32>
    %139 = vector.shape_cast %138 : vector<1x16x128xf32> to vector<16x128xf32>
    %140 = arith.addf %137, %139 : vector<16x128xf32>
    %141 = arith.mulf %18, %135 : vector<16x128xf32>
    %142 = math.tanh %140 : vector<16x128xf32>
    %143 = arith.mulf %16, %142 : vector<16x128xf32>
    %144 = arith.addf %141, %143 : vector<16x128xf32>
    %145 = arith.truncf %144 : vector<16x128xf32> to vector<16x128xbf16>
    %cst_60 = arith.constant dense<0.000000e+00> : vector<16x128xf32>
    %146 = tpu.matmul %145, %12, %cst_60 {dimension_numbers = #tpu.dot_dimension_numbers<[1], [0], [0], [1], [0, 0, 1, 1], [], []>} : vector<16x128xbf16>, vector<128x128xbf16>, vector<16x128xf32> -> vector<16x128xf32>
    %c14 = arith.constant 14 : index
    %c0_61 = arith.constant 0 : index
    %c0_62 = arith.constant 0 : index
    %147 = vector.load %arg12[%c14, %c0_61, %c0_62] : memref<28x16x128xf32, #tpu.memory_space<vmem>>, vector<1x16x128xf32>
    %148 = vector.shape_cast %147 : vector<1x16x128xf32> to vector<16x128xf32>
    %149 = arith.addf %146, %148 : vector<16x128xf32>
    %150 = arith.mulf %18, %144 : vector<16x128xf32>
    %151 = math.tanh %149 : vector<16x128xf32>
    %152 = arith.mulf %16, %151 : vector<16x128xf32>
    %153 = arith.addf %150, %152 : vector<16x128xf32>
    %154 = arith.truncf %153 : vector<16x128xf32> to vector<16x128xbf16>
    %cst_63 = arith.constant dense<0.000000e+00> : vector<16x128xf32>
    %155 = tpu.matmul %154, %12, %cst_63 {dimension_numbers = #tpu.dot_dimension_numbers<[1], [0], [0], [1], [0, 0, 1, 1], [], []>} : vector<16x128xbf16>, vector<128x128xbf16>, vector<16x128xf32> -> vector<16x128xf32>
    %c15 = arith.constant 15 : index
    %c0_64 = arith.constant 0 : index
    %c0_65 = arith.constant 0 : index
    %156 = vector.load %arg12[%c15, %c0_64, %c0_65] : memref<28x16x128xf32, #tpu.memory_space<vmem>>, vector<1x16x128xf32>
    %157 = vector.shape_cast %156 : vector<1x16x128xf32> to vector<16x128xf32>
    %158 = arith.addf %155, %157 : vector<16x128xf32>
    %159 = arith.mulf %18, %153 : vector<16x128xf32>
    %160 = math.tanh %158 : vector<16x128xf32>
    %161 = arith.mulf %16, %160 : vector<16x128xf32>
    %162 = arith.addf %159, %161 : vector<16x128xf32>
    %163 = arith.truncf %162 : vector<16x128xf32> to vector<16x128xbf16>
    %cst_66 = arith.constant dense<0.000000e+00> : vector<16x128xf32>
    %164 = tpu.matmul %163, %12, %cst_66 {dimension_numbers = #tpu.dot_dimension_numbers<[1], [0], [0], [1], [0, 0, 1, 1], [], []>} : vector<16x128xbf16>, vector<128x128xbf16>, vector<16x128xf32> -> vector<16x128xf32>
    %c16 = arith.constant 16 : index
    %c0_67 = arith.constant 0 : index
    %c0_68 = arith.constant 0 : index
    %165 = vector.load %arg12[%c16, %c0_67, %c0_68] : memref<28x16x128xf32, #tpu.memory_space<vmem>>, vector<1x16x128xf32>
    %166 = vector.shape_cast %165 : vector<1x16x128xf32> to vector<16x128xf32>
    %167 = arith.addf %164, %166 : vector<16x128xf32>
    %168 = arith.mulf %18, %162 : vector<16x128xf32>
    %169 = math.tanh %167 : vector<16x128xf32>
    %170 = arith.mulf %16, %169 : vector<16x128xf32>
    %171 = arith.addf %168, %170 : vector<16x128xf32>
    %172 = arith.truncf %171 : vector<16x128xf32> to vector<16x128xbf16>
    %cst_69 = arith.constant dense<0.000000e+00> : vector<16x128xf32>
    %173 = tpu.matmul %172, %12, %cst_69 {dimension_numbers = #tpu.dot_dimension_numbers<[1], [0], [0], [1], [0, 0, 1, 1], [], []>} : vector<16x128xbf16>, vector<128x128xbf16>, vector<16x128xf32> -> vector<16x128xf32>
    %c17 = arith.constant 17 : index
    %c0_70 = arith.constant 0 : index
    %c0_71 = arith.constant 0 : index
    %174 = vector.load %arg12[%c17, %c0_70, %c0_71] : memref<28x16x128xf32, #tpu.memory_space<vmem>>, vector<1x16x128xf32>
    %175 = vector.shape_cast %174 : vector<1x16x128xf32> to vector<16x128xf32>
    %176 = arith.addf %173, %175 : vector<16x128xf32>
    %177 = arith.mulf %18, %171 : vector<16x128xf32>
    %178 = math.tanh %176 : vector<16x128xf32>
    %179 = arith.mulf %16, %178 : vector<16x128xf32>
    %180 = arith.addf %177, %179 : vector<16x128xf32>
    %181 = arith.truncf %180 : vector<16x128xf32> to vector<16x128xbf16>
    %cst_72 = arith.constant dense<0.000000e+00> : vector<16x128xf32>
    %182 = tpu.matmul %181, %12, %cst_72 {dimension_numbers = #tpu.dot_dimension_numbers<[1], [0], [0], [1], [0, 0, 1, 1], [], []>} : vector<16x128xbf16>, vector<128x128xbf16>, vector<16x128xf32> -> vector<16x128xf32>
    %c18 = arith.constant 18 : index
    %c0_73 = arith.constant 0 : index
    %c0_74 = arith.constant 0 : index
    %183 = vector.load %arg12[%c18, %c0_73, %c0_74] : memref<28x16x128xf32, #tpu.memory_space<vmem>>, vector<1x16x128xf32>
    %184 = vector.shape_cast %183 : vector<1x16x128xf32> to vector<16x128xf32>
    %185 = arith.addf %182, %184 : vector<16x128xf32>
    %186 = arith.mulf %18, %180 : vector<16x128xf32>
    %187 = math.tanh %185 : vector<16x128xf32>
    %188 = arith.mulf %16, %187 : vector<16x128xf32>
    %189 = arith.addf %186, %188 : vector<16x128xf32>
    %190 = arith.truncf %189 : vector<16x128xf32> to vector<16x128xbf16>
    %cst_75 = arith.constant dense<0.000000e+00> : vector<16x128xf32>
    %191 = tpu.matmul %190, %12, %cst_75 {dimension_numbers = #tpu.dot_dimension_numbers<[1], [0], [0], [1], [0, 0, 1, 1], [], []>} : vector<16x128xbf16>, vector<128x128xbf16>, vector<16x128xf32> -> vector<16x128xf32>
    %c19 = arith.constant 19 : index
    %c0_76 = arith.constant 0 : index
    %c0_77 = arith.constant 0 : index
    %192 = vector.load %arg12[%c19, %c0_76, %c0_77] : memref<28x16x128xf32, #tpu.memory_space<vmem>>, vector<1x16x128xf32>
    %193 = vector.shape_cast %192 : vector<1x16x128xf32> to vector<16x128xf32>
    %194 = arith.addf %191, %193 : vector<16x128xf32>
    %195 = arith.mulf %18, %189 : vector<16x128xf32>
    %196 = math.tanh %194 : vector<16x128xf32>
    %197 = arith.mulf %16, %196 : vector<16x128xf32>
    %198 = arith.addf %195, %197 : vector<16x128xf32>
    %199 = arith.truncf %198 : vector<16x128xf32> to vector<16x128xbf16>
    %cst_78 = arith.constant dense<0.000000e+00> : vector<16x128xf32>
    %200 = tpu.matmul %199, %12, %cst_78 {dimension_numbers = #tpu.dot_dimension_numbers<[1], [0], [0], [1], [0, 0, 1, 1], [], []>} : vector<16x128xbf16>, vector<128x128xbf16>, vector<16x128xf32> -> vector<16x128xf32>
    %c20 = arith.constant 20 : index
    %c0_79 = arith.constant 0 : index
    %c0_80 = arith.constant 0 : index
    %201 = vector.load %arg12[%c20, %c0_79, %c0_80] : memref<28x16x128xf32, #tpu.memory_space<vmem>>, vector<1x16x128xf32>
    %202 = vector.shape_cast %201 : vector<1x16x128xf32> to vector<16x128xf32>
    %203 = arith.addf %200, %202 : vector<16x128xf32>
    %204 = arith.mulf %18, %198 : vector<16x128xf32>
    %205 = math.tanh %203 : vector<16x128xf32>
    %206 = arith.mulf %16, %205 : vector<16x128xf32>
    %207 = arith.addf %204, %206 : vector<16x128xf32>
    %208 = arith.truncf %207 : vector<16x128xf32> to vector<16x128xbf16>
    %cst_81 = arith.constant dense<0.000000e+00> : vector<16x128xf32>
    %209 = tpu.matmul %208, %12, %cst_81 {dimension_numbers = #tpu.dot_dimension_numbers<[1], [0], [0], [1], [0, 0, 1, 1], [], []>} : vector<16x128xbf16>, vector<128x128xbf16>, vector<16x128xf32> -> vector<16x128xf32>
    %c21 = arith.constant 21 : index
    %c0_82 = arith.constant 0 : index
    %c0_83 = arith.constant 0 : index
    %210 = vector.load %arg12[%c21, %c0_82, %c0_83] : memref<28x16x128xf32, #tpu.memory_space<vmem>>, vector<1x16x128xf32>
    %211 = vector.shape_cast %210 : vector<1x16x128xf32> to vector<16x128xf32>
    %212 = arith.addf %209, %211 : vector<16x128xf32>
    %213 = arith.mulf %18, %207 : vector<16x128xf32>
    %214 = math.tanh %212 : vector<16x128xf32>
    %215 = arith.mulf %16, %214 : vector<16x128xf32>
    %216 = arith.addf %213, %215 : vector<16x128xf32>
    %217 = arith.truncf %216 : vector<16x128xf32> to vector<16x128xbf16>
    %cst_84 = arith.constant dense<0.000000e+00> : vector<16x128xf32>
    %218 = tpu.matmul %217, %12, %cst_84 {dimension_numbers = #tpu.dot_dimension_numbers<[1], [0], [0], [1], [0, 0, 1, 1], [], []>} : vector<16x128xbf16>, vector<128x128xbf16>, vector<16x128xf32> -> vector<16x128xf32>
    %c22 = arith.constant 22 : index
    %c0_85 = arith.constant 0 : index
    %c0_86 = arith.constant 0 : index
    %219 = vector.load %arg12[%c22, %c0_85, %c0_86] : memref<28x16x128xf32, #tpu.memory_space<vmem>>, vector<1x16x128xf32>
    %220 = vector.shape_cast %219 : vector<1x16x128xf32> to vector<16x128xf32>
    %221 = arith.addf %218, %220 : vector<16x128xf32>
    %222 = arith.mulf %18, %216 : vector<16x128xf32>
    %223 = math.tanh %221 : vector<16x128xf32>
    %224 = arith.mulf %16, %223 : vector<16x128xf32>
    %225 = arith.addf %222, %224 : vector<16x128xf32>
    %226 = arith.truncf %225 : vector<16x128xf32> to vector<16x128xbf16>
    %cst_87 = arith.constant dense<0.000000e+00> : vector<16x128xf32>
    %227 = tpu.matmul %226, %12, %cst_87 {dimension_numbers = #tpu.dot_dimension_numbers<[1], [0], [0], [1], [0, 0, 1, 1], [], []>} : vector<16x128xbf16>, vector<128x128xbf16>, vector<16x128xf32> -> vector<16x128xf32>
    %c23 = arith.constant 23 : index
    %c0_88 = arith.constant 0 : index
    %c0_89 = arith.constant 0 : index
    %228 = vector.load %arg12[%c23, %c0_88, %c0_89] : memref<28x16x128xf32, #tpu.memory_space<vmem>>, vector<1x16x128xf32>
    %229 = vector.shape_cast %228 : vector<1x16x128xf32> to vector<16x128xf32>
    %230 = arith.addf %227, %229 : vector<16x128xf32>
    %231 = arith.mulf %18, %225 : vector<16x128xf32>
    %232 = math.tanh %230 : vector<16x128xf32>
    %233 = arith.mulf %16, %232 : vector<16x128xf32>
    %234 = arith.addf %231, %233 : vector<16x128xf32>
    %235 = arith.truncf %234 : vector<16x128xf32> to vector<16x128xbf16>
    %cst_90 = arith.constant dense<0.000000e+00> : vector<16x128xf32>
    %236 = tpu.matmul %235, %12, %cst_90 {dimension_numbers = #tpu.dot_dimension_numbers<[1], [0], [0], [1], [0, 0, 1, 1], [], []>} : vector<16x128xbf16>, vector<128x128xbf16>, vector<16x128xf32> -> vector<16x128xf32>
    %c24 = arith.constant 24 : index
    %c0_91 = arith.constant 0 : index
    %c0_92 = arith.constant 0 : index
    %237 = vector.load %arg12[%c24, %c0_91, %c0_92] : memref<28x16x128xf32, #tpu.memory_space<vmem>>, vector<1x16x128xf32>
    %238 = vector.shape_cast %237 : vector<1x16x128xf32> to vector<16x128xf32>
    %239 = arith.addf %236, %238 : vector<16x128xf32>
    %240 = arith.mulf %18, %234 : vector<16x128xf32>
    %241 = math.tanh %239 : vector<16x128xf32>
    %242 = arith.mulf %16, %241 : vector<16x128xf32>
    %243 = arith.addf %240, %242 : vector<16x128xf32>
    %244 = arith.truncf %243 : vector<16x128xf32> to vector<16x128xbf16>
    %cst_93 = arith.constant dense<0.000000e+00> : vector<16x128xf32>
    %245 = tpu.matmul %244, %12, %cst_93 {dimension_numbers = #tpu.dot_dimension_numbers<[1], [0], [0], [1], [0, 0, 1, 1], [], []>} : vector<16x128xbf16>, vector<128x128xbf16>, vector<16x128xf32> -> vector<16x128xf32>
    %c25 = arith.constant 25 : index
    %c0_94 = arith.constant 0 : index
    %c0_95 = arith.constant 0 : index
    %246 = vector.load %arg12[%c25, %c0_94, %c0_95] : memref<28x16x128xf32, #tpu.memory_space<vmem>>, vector<1x16x128xf32>
    %247 = vector.shape_cast %246 : vector<1x16x128xf32> to vector<16x128xf32>
    %248 = arith.addf %245, %247 : vector<16x128xf32>
    %249 = arith.mulf %18, %243 : vector<16x128xf32>
    %250 = math.tanh %248 : vector<16x128xf32>
    %251 = arith.mulf %16, %250 : vector<16x128xf32>
    %252 = arith.addf %249, %251 : vector<16x128xf32>
    %253 = arith.truncf %252 : vector<16x128xf32> to vector<16x128xbf16>
    %cst_96 = arith.constant dense<0.000000e+00> : vector<16x128xf32>
    %254 = tpu.matmul %253, %12, %cst_96 {dimension_numbers = #tpu.dot_dimension_numbers<[1], [0], [0], [1], [0, 0, 1, 1], [], []>} : vector<16x128xbf16>, vector<128x128xbf16>, vector<16x128xf32> -> vector<16x128xf32>
    %c26 = arith.constant 26 : index
    %c0_97 = arith.constant 0 : index
    %c0_98 = arith.constant 0 : index
    %255 = vector.load %arg12[%c26, %c0_97, %c0_98] : memref<28x16x128xf32, #tpu.memory_space<vmem>>, vector<1x16x128xf32>
    %256 = vector.shape_cast %255 : vector<1x16x128xf32> to vector<16x128xf32>
    %257 = arith.addf %254, %256 : vector<16x128xf32>
    %258 = arith.mulf %18, %252 : vector<16x128xf32>
    %259 = math.tanh %257 : vector<16x128xf32>
    %260 = arith.mulf %16, %259 : vector<16x128xf32>
    %261 = arith.addf %258, %260 : vector<16x128xf32>
    %262 = arith.truncf %261 : vector<16x128xf32> to vector<16x128xbf16>
    %cst_99 = arith.constant dense<0.000000e+00> : vector<16x128xf32>
    %263 = tpu.matmul %262, %12, %cst_99 {dimension_numbers = #tpu.dot_dimension_numbers<[1], [0], [0], [1], [0, 0, 1, 1], [], []>} : vector<16x128xbf16>, vector<128x128xbf16>, vector<16x128xf32> -> vector<16x128xf32>
    %c27 = arith.constant 27 : index
    %c0_100 = arith.constant 0 : index
    %c0_101 = arith.constant 0 : index
    %264 = vector.load %arg12[%c27, %c0_100, %c0_101] : memref<28x16x128xf32, #tpu.memory_space<vmem>>, vector<1x16x128xf32>
    %265 = vector.shape_cast %264 : vector<1x16x128xf32> to vector<16x128xf32>
    %266 = arith.addf %263, %265 : vector<16x128xf32>
    %267 = arith.mulf %18, %261 : vector<16x128xf32>
    %268 = math.tanh %266 : vector<16x128xf32>
    %269 = arith.mulf %16, %268 : vector<16x128xf32>
    %270 = arith.addf %267, %269 : vector<16x128xf32>
    %c0_102 = arith.constant 0 : index
    %c0_103 = arith.constant 0 : index
    %271 = vector.load %arg10[%c0_102, %c0_103] : memref<16x128xf32, #tpu.memory_space<vmem>>, vector<16x128xf32>
    tpu.vector_store %arg10[%c0_102, %c0_103], %270 {strides = array<i32>} : memref<16x128xf32, #tpu.memory_space<vmem>>, vector<16x128xf32>,
    %c0_i32_104 = arith.constant 0 : i32
    %272 = arith.cmpi eq, %arg1, %c0_i32_104 : i32
    %273 = arith.extui %272 : i1 to i32
    %c0_i32_105 = arith.constant 0 : i32
    %274 = arith.cmpi ne, %273, %c0_i32_105 : i32
    scf.if %274 {
      %275 = arith.truncf %270 : vector<16x128xf32> to vector<16x128xbf16>
      %c0_106 = arith.constant 0 : index
      %c0_107 = arith.constant 0 : index
      %276 = vector.load %arg7[%c0_106, %c0_107] : memref<128x128xbf16, #tpu.memory_space<vmem>>, vector<128x128xbf16>
      %cst_108 = arith.constant dense<0.000000e+00> : vector<16x128xf32>
      %277 = tpu.matmul %275, %276, %cst_108 {dimension_numbers = #tpu.dot_dimension_numbers<[1], [0], [0], [1], [0, 0, 1, 1], [], []>} : vector<16x128xbf16>, vector<128x128xbf16>, vector<16x128xf32> -> vector<16x128xf32>
      %c0_109 = arith.constant 0 : index
      %c0_110 = arith.constant 0 : index
      %278 = vector.load %arg8[%c0_109, %c0_110] : memref<1x128xf32, #tpu.memory_space<vmem>>, vector<1x128xf32>
      %279 = vector.broadcast %278 : vector<1x128xf32> to vector<16x128xf32>
      %280 = arith.addf %277, %279 : vector<16x128xf32>
      %c0_111 = arith.constant 0 : index
      %c0_112 = arith.constant 0 : index
      %281 = vector.load %arg9[%c0_111, %c0_112] : memref<16x128xf32, #tpu.memory_space<vmem>>, vector<16x128xf32>
      tpu.vector_store %arg9[%c0_111, %c0_112], %280 {strides = array<i32>} : memref<16x128xf32, #tpu.memory_space<vmem>>, vector<16x128xf32>,
    } else {
    }
    return
  }
  func.func @transform_0(%arg0: i32, %arg1: i32) -> (i32, i32, i32) {
    %c0_i32 = arith.constant 0 : i32
    %c0_i32_0 = arith.constant 0 : i32
    return %arg1, %arg0, %c0_i32 : i32, i32, i32
  }
  func.func @transform_1(%arg0: i32, %arg1: i32) -> (i32, i32) {
    %c0_i32 = arith.constant 0 : i32
    %c0_i32_0 = arith.constant 0 : i32
    %c0_i32_1 = arith.constant 0 : i32
    return %c0_i32, %c0_i32_0 : i32, i32
  }
  func.func @transform_2(%arg0: i32, %arg1: i32) -> (i32, i32) {
    %c0_i32 = arith.constant 0 : i32
    %c0_i32_0 = arith.constant 0 : i32
    %c0_i32_1 = arith.constant 0 : i32
    return %c0_i32, %c0_i32_0 : i32, i32
  }
  func.func @transform_3(%arg0: i32, %arg1: i32) -> (i32, i32) {
    %c0_i32 = arith.constant 0 : i32
    %c0_i32_0 = arith.constant 0 : i32
    %c0_i32_1 = arith.constant 0 : i32
    return %c0_i32, %c0_i32_0 : i32, i32
  }
  func.func @transform_4(%arg0: i32, %arg1: i32) -> (i32, i32) {
    %c0_i32 = arith.constant 0 : i32
    %c0_i32_0 = arith.constant 0 : i32
    %c0_i32_1 = arith.constant 0 : i32
    return %c0_i32, %c0_i32_0 : i32, i32
  }
  func.func @transform_5(%arg0: i32, %arg1: i32) -> (i32, i32) {
    %c0_i32 = arith.constant 0 : i32
    %c0_i32_0 = arith.constant 0 : i32
    %c0_i32_1 = arith.constant 0 : i32
    return %c0_i32, %c0_i32_0 : i32, i32
  }
  func.func @transform_6(%arg0: i32, %arg1: i32) -> (i32, i32) {
    %c0_i32 = arith.constant 0 : i32
    %c0_i32_0 = arith.constant 0 : i32
    %c0_i32_1 = arith.constant 0 : i32
    return %c0_i32, %c0_i32_0 : i32, i32
  }
  func.func @transform_7(%arg0: i32, %arg1: i32) -> (i32, i32) {
    %c0_i32 = arith.constant 0 : i32
    %c0_i32_0 = arith.constant 0 : i32
    return %arg0, %c0_i32 : i32, i32
  }
}

module attributes {stable_mosaic.version = 11 : i64} {
  func.func @kernel(%arg0: i32, %arg1: i32, %arg2: memref<28x16x28xbf16, #tpu.memory_space<vmem>>, %arg3: memref<128x128xbf16, #tpu.memory_space<vmem>>, %arg4: memref<28x128xbf16, #tpu.memory_space<vmem>>, %arg5: memref<1x128xf32, #tpu.memory_space<vmem>>, %arg6: memref<1x128xf32, #tpu.memory_space<vmem>>, %arg7: memref<128x128xbf16, #tpu.memory_space<vmem>>, %arg8: memref<1x128xf32, #tpu.memory_space<vmem>>, %arg9: memref<16x128xf32, #tpu.memory_space<vmem>>, %arg10: memref<16x128xf32, #tpu.memory_space<vmem>>, %arg11: memref<1x128xf32, #tpu.memory_space<vmem>>, %arg12: memref<28x16x128xf32, #tpu.memory_space<vmem>>) attributes {dimension_semantics = [#tpu.dimension_semantics<parallel>, #tpu.dimension_semantics<arbitrary>], iteration_bounds = array<i64: 1, 1>, scalar_prefetch = 0 : i64, scratch_operands = 3 : i64, tpu.core_type = #tpu.core_type<tc>, window_params = [{transform_indices = @transform_0, window_bounds = array<i64: 28, 16, 28>}, {pipeline_mode = #tpu.pipeline_mode<synchronous>, transform_indices = @transform_1, window_bounds = array<i64: 128, 128>}, {pipeline_mode = #tpu.pipeline_mode<synchronous>, transform_indices = @transform_2, window_bounds = array<i64: 28, 128>}, {pipeline_mode = #tpu.pipeline_mode<synchronous>, transform_indices = @transform_3, window_bounds = array<i64: 1, 128>}, {pipeline_mode = #tpu.pipeline_mode<synchronous>, transform_indices = @transform_4, window_bounds = array<i64: 1, 128>}, {pipeline_mode = #tpu.pipeline_mode<synchronous>, transform_indices = @transform_5, window_bounds = array<i64: 128, 128>}, {pipeline_mode = #tpu.pipeline_mode<synchronous>, transform_indices = @transform_6, window_bounds = array<i64: 1, 128>}, {transform_indices = @transform_7, window_bounds = array<i64: 16, 128>}]} {
    %c0_i32 = arith.constant 0 : i32
    %0 = arith.cmpi eq, %arg1, %c0_i32 : i32
    %1 = arith.extui %0 : i1 to i32
    %c0_i32_0 = arith.constant 0 : i32
    %2 = arith.cmpi ne, %1, %c0_i32_0 : i32
    scf.if %2 {
      %cst_106 = arith.constant 0.000000e+00 : f32
      %275 = vector.broadcast %cst_106 : f32 to vector<16x128xf32>
      %c0_107 = arith.constant 0 : index
      %c0_108 = arith.constant 0 : index
      %276 = vector.load %arg10[%c0_107, %c0_108] : memref<16x128xf32, #tpu.memory_space<vmem>>, vector<16x128xf32>
      tpu.vector_store %arg10[%c0_107, %c0_108], %275 {strides = array<i32>} : memref<16x128xf32, #tpu.memory_space<vmem>>, vector<16x128xf32>,
      %c0_109 = arith.constant 0 : index
      %c0_110 = arith.constant 0 : index
      %277 = vector.load %arg6[%c0_109, %c0_110] : memref<1x128xf32, #tpu.memory_space<vmem>>, vector<1x128xf32>
      %278 = arith.negf %277 : vector<1x128xf32>
      %279 = math.exp %278 : vector<1x128xf32>
      %cst_111 = arith.constant 1.000000e+00 : f32
      %280 = vector.broadcast %cst_111 : f32 to vector<1x128xf32>
      %281 = arith.addf %280, %279 : vector<1x128xf32>
      %282 = arith.divf %280, %281 : vector<1x128xf32>
      %c0_112 = arith.constant 0 : index
      %c0_113 = arith.constant 0 : index
      %283 = vector.load %arg11[%c0_112, %c0_113] : memref<1x128xf32, #tpu.memory_space<vmem>>, vector<1x128xf32>
      tpu.vector_store %arg11[%c0_112, %c0_113], %282 {strides = array<i32>} : memref<1x128xf32, #tpu.memory_space<vmem>>, vector<1x128xf32>,
    } else {
    }
    %c0 = arith.constant 0 : index
    %c0_1 = arith.constant 0 : index
    %c0_2 = arith.constant 0 : index
    %3 = vector.load %arg2[%c0, %c0_1, %c0_2] : memref<28x16x28xbf16, #tpu.memory_space<vmem>>, vector<28x16x28xbf16>
    %4 = vector.shape_cast %3 : vector<28x16x28xbf16> to vector<448x28xbf16>
    %c0_3 = arith.constant 0 : index
    %c0_4 = arith.constant 0 : index
    %5 = vector.load %arg4[%c0_3, %c0_4] : memref<28x128xbf16, #tpu.memory_space<vmem>>, vector<28x128xbf16>
    %cst = arith.constant dense<0.000000e+00> : vector<448x128xf32>
    %6 = tpu.matmul %4, %5, %cst {dimension_numbers = #tpu.dot_dimension_numbers<[1], [0], [0], [1], [0, 0, 1, 1], [], []>} : vector<448x28xbf16>, vector<28x128xbf16>, vector<448x128xf32> -> vector<448x128xf32>
    %c0_5 = arith.constant 0 : index
    %c0_6 = arith.constant 0 : index
    %7 = vector.load %arg5[%c0_5, %c0_6] : memref<1x128xf32, #tpu.memory_space<vmem>>, vector<1x128xf32>
    %8 = vector.broadcast %7 : vector<1x128xf32> to vector<448x128xf32>
    %9 = arith.addf %6, %8 : vector<448x128xf32>
    %10 = vector.shape_cast %9 : vector<448x128xf32> to vector<28x16x128xf32>
    %c0_7 = arith.constant 0 : index
    %c0_8 = arith.constant 0 : index
    %c0_9 = arith.constant 0 : index
    %11 = vector.load %arg12[%c0_7, %c0_8, %c0_9] : memref<28x16x128xf32, #tpu.memory_space<vmem>>, vector<28x16x128xf32>
    tpu.vector_store %arg12[%c0_7, %c0_8, %c0_9], %10 {strides = array<i32>} : memref<28x16x128xf32, #tpu.memory_space<vmem>>, vector<28x16x128xf32>,
    %c0_10 = arith.constant 0 : index
    %c0_11 = arith.constant 0 : index
    %12 = vector.load %arg3[%c0_10, %c0_11] : memref<128x128xbf16, #tpu.memory_space<vmem>>, vector<128x128xbf16>
    %c0_12 = arith.constant 0 : index
    %c0_13 = arith.constant 0 : index
    %13 = vector.load %arg10[%c0_12, %c0_13] : memref<16x128xf32, #tpu.memory_space<vmem>>, vector<16x128xf32>
    %c0_14 = arith.constant 0 : index
    %c0_15 = arith.constant 0 : index
    %14 = vector.load %arg11[%c0_14, %c0_15] : memref<1x128xf32, #tpu.memory_space<vmem>>, vector<1x128xf32>
    %15 = vector.shape_cast %14 : vector<1x128xf32> to vector<1x128xf32>
    %16 = vector.broadcast %15 : vector<1x128xf32> to vector<16x128xf32>
    %cst_16 = arith.constant 1.000000e+00 : f32
    %17 = vector.broadcast %cst_16 : f32 to vector<16x128xf32>
    %18 = arith.subf %17, %16 : vector<16x128xf32>
    %19 = arith.truncf %13 : vector<16x128xf32> to vector<16x128xbf16>
    %cst_17 = arith.constant dense<0.000000e+00> : vector<16x128xf32>
    %20 = tpu.matmul %19, %12, %cst_17 {dimension_numbers = #tpu.dot_dimension_numbers<[1], [0], [0], [1], [0, 0, 1, 1], [], []>} : vector<16x128xbf16>, vector<128x128xbf16>, vector<16x128xf32> -> vector<16x128xf32>
    %c0_18 = arith.constant 0 : index
    %c0_19 = arith.constant 0 : index
    %c0_20 = arith.constant 0 : index
    %21 = vector.load %arg12[%c0_18, %c0_19, %c0_20] : memref<28x16x128xf32, #tpu.memory_space<vmem>>, vector<1x16x128xf32>
    %22 = vector.shape_cast %21 : vector<1x16x128xf32> to vector<16x128xf32>
    %23 = arith.addf %20, %22 : vector<16x128xf32>
    %24 = arith.mulf %18, %13 : vector<16x128xf32>
    %25 = math.tanh %23 : vector<16x128xf32>
    %26 = arith.mulf %16, %25 : vector<16x128xf32>
    %27 = arith.addf %24, %26 : vector<16x128xf32>
    %28 = arith.truncf %27 : vector<16x128xf32> to vector<16x128xbf16>
    %cst_21 = arith.constant dense<0.000000e+00> : vector<16x128xf32>
    %29 = tpu.matmul %28, %12, %cst_21 {dimension_numbers = #tpu.dot_dimension_numbers<[1], [0], [0], [1], [0, 0, 1, 1], [], []>} : vector<16x128xbf16>, vector<128x128xbf16>, vector<16x128xf32> -> vector<16x128xf32>
    %c1 = arith.constant 1 : index
    %c0_22 = arith.constant 0 : index
    %c0_23 = arith.constant 0 : index
    %30 = vector.load %arg12[%c1, %c0_22, %c0_23] : memref<28x16x128xf32, #tpu.memory_space<vmem>>, vector<1x16x128xf32>
    %31 = vector.shape_cast %30 : vector<1x16x128xf32> to vector<16x128xf32>
    %32 = arith.addf %29, %31 : vector<16x128xf32>
    %33 = arith.mulf %18, %27 : vector<16x128xf32>
    %34 = math.tanh %32 : vector<16x128xf32>
    %35 = arith.mulf %16, %34 : vector<16x128xf32>
    %36 = arith.addf %33, %35 : vector<16x128xf32>
    %37 = arith.truncf %36 : vector<16x128xf32> to vector<16x128xbf16>
    %cst_24 = arith.constant dense<0.000000e+00> : vector<16x128xf32>
    %38 = tpu.matmul %37, %12, %cst_24 {dimension_numbers = #tpu.dot_dimension_numbers<[1], [0], [0], [1], [0, 0, 1, 1], [], []>} : vector<16x128xbf16>, vector<128x128xbf16>, vector<16x128xf32> -> vector<16x128xf32>
    %c2 = arith.constant 2 : index
    %c0_25 = arith.constant 0 : index
    %c0_26 = arith.constant 0 : index
    %39 = vector.load %arg12[%c2, %c0_25, %c0_26] : memref<28x16x128xf32, #tpu.memory_space<vmem>>, vector<1x16x128xf32>
    %40 = vector.shape_cast %39 : vector<1x16x128xf32> to vector<16x128xf32>
    %41 = arith.addf %38, %40 : vector<16x128xf32>
    %42 = arith.mulf %18, %36 : vector<16x128xf32>
    %43 = math.tanh %41 : vector<16x128xf32>
    %44 = arith.mulf %16, %43 : vector<16x128xf32>
    %45 = arith.addf %42, %44 : vector<16x128xf32>
    %46 = arith.truncf %45 : vector<16x128xf32> to vector<16x128xbf16>
    %cst_27 = arith.constant dense<0.000000e+00> : vector<16x128xf32>
    %47 = tpu.matmul %46, %12, %cst_27 {dimension_numbers = #tpu.dot_dimension_numbers<[1], [0], [0], [1], [0, 0, 1, 1], [], []>} : vector<16x128xbf16>, vector<128x128xbf16>, vector<16x128xf32> -> vector<16x128xf32>
    %c3 = arith.constant 3 : index
    %c0_28 = arith.constant 0 : index
    %c0_29 = arith.constant 0 : index
    %48 = vector.load %arg12[%c3, %c0_28, %c0_29] : memref<28x16x128xf32, #tpu.memory_space<vmem>>, vector<1x16x128xf32>
    %49 = vector.shape_cast %48 : vector<1x16x128xf32> to vector<16x128xf32>
    %50 = arith.addf %47, %49 : vector<16x128xf32>
    %51 = arith.mulf %18, %45 : vector<16x128xf32>
    %52 = math.tanh %50 : vector<16x128xf32>
    %53 = arith.mulf %16, %52 : vector<16x128xf32>
    %54 = arith.addf %51, %53 : vector<16x128xf32>
    %55 = arith.truncf %54 : vector<16x128xf32> to vector<16x128xbf16>
    %cst_30 = arith.constant dense<0.000000e+00> : vector<16x128xf32>
    %56 = tpu.matmul %55, %12, %cst_30 {dimension_numbers = #tpu.dot_dimension_numbers<[1], [0], [0], [1], [0, 0, 1, 1], [], []>} : vector<16x128xbf16>, vector<128x128xbf16>, vector<16x128xf32> -> vector<16x128xf32>
    %c4 = arith.constant 4 : index
    %c0_31 = arith.constant 0 : index
    %c0_32 = arith.constant 0 : index
    %57 = vector.load %arg12[%c4, %c0_31, %c0_32] : memref<28x16x128xf32, #tpu.memory_space<vmem>>, vector<1x16x128xf32>
    %58 = vector.shape_cast %57 : vector<1x16x128xf32> to vector<16x128xf32>
    %59 = arith.addf %56, %58 : vector<16x128xf32>
    %60 = arith.mulf %18, %54 : vector<16x128xf32>
    %61 = math.tanh %59 : vector<16x128xf32>
    %62 = arith.mulf %16, %61 : vector<16x128xf32>
    %63 = arith.addf %60, %62 : vector<16x128xf32>
    %64 = arith.truncf %63 : vector<16x128xf32> to vector<16x128xbf16>
    %cst_33 = arith.constant dense<0.000000e+00> : vector<16x128xf32>
    %65 = tpu.matmul %64, %12, %cst_33 {dimension_numbers = #tpu.dot_dimension_numbers<[1], [0], [0], [1], [0, 0, 1, 1], [], []>} : vector<16x128xbf16>, vector<128x128xbf16>, vector<16x128xf32> -> vector<16x128xf32>
    %c5 = arith.constant 5 : index
    %c0_34 = arith.constant 0 : index
    %c0_35 = arith.constant 0 : index
    %66 = vector.load %arg12[%c5, %c0_34, %c0_35] : memref<28x16x128xf32, #tpu.memory_space<vmem>>, vector<1x16x128xf32>
    %67 = vector.shape_cast %66 : vector<1x16x128xf32> to vector<16x128xf32>
    %68 = arith.addf %65, %67 : vector<16x128xf32>
    %69 = arith.mulf %18, %63 : vector<16x128xf32>
    %70 = math.tanh %68 : vector<16x128xf32>
    %71 = arith.mulf %16, %70 : vector<16x128xf32>
    %72 = arith.addf %69, %71 : vector<16x128xf32>
    %73 = arith.truncf %72 : vector<16x128xf32> to vector<16x128xbf16>
    %cst_36 = arith.constant dense<0.000000e+00> : vector<16x128xf32>
    %74 = tpu.matmul %73, %12, %cst_36 {dimension_numbers = #tpu.dot_dimension_numbers<[1], [0], [0], [1], [0, 0, 1, 1], [], []>} : vector<16x128xbf16>, vector<128x128xbf16>, vector<16x128xf32> -> vector<16x128xf32>
    %c6 = arith.constant 6 : index
    %c0_37 = arith.constant 0 : index
    %c0_38 = arith.constant 0 : index
    %75 = vector.load %arg12[%c6, %c0_37, %c0_38] : memref<28x16x128xf32, #tpu.memory_space<vmem>>, vector<1x16x128xf32>
    %76 = vector.shape_cast %75 : vector<1x16x128xf32> to vector<16x128xf32>
    %77 = arith.addf %74, %76 : vector<16x128xf32>
    %78 = arith.mulf %18, %72 : vector<16x128xf32>
    %79 = math.tanh %77 : vector<16x128xf32>
    %80 = arith.mulf %16, %79 : vector<16x128xf32>
    %81 = arith.addf %78, %80 : vector<16x128xf32>
    %82 = arith.truncf %81 : vector<16x128xf32> to vector<16x128xbf16>
    %cst_39 = arith.constant dense<0.000000e+00> : vector<16x128xf32>
    %83 = tpu.matmul %82, %12, %cst_39 {dimension_numbers = #tpu.dot_dimension_numbers<[1], [0], [0], [1], [0, 0, 1, 1], [], []>} : vector<16x128xbf16>, vector<128x128xbf16>, vector<16x128xf32> -> vector<16x128xf32>
    %c7 = arith.constant 7 : index
    %c0_40 = arith.constant 0 : index
    %c0_41 = arith.constant 0 : index
    %84 = vector.load %arg12[%c7, %c0_40, %c0_41] : memref<28x16x128xf32, #tpu.memory_space<vmem>>, vector<1x16x128xf32>
    %85 = vector.shape_cast %84 : vector<1x16x128xf32> to vector<16x128xf32>
    %86 = arith.addf %83, %85 : vector<16x128xf32>
    %87 = arith.mulf %18, %81 : vector<16x128xf32>
    %88 = math.tanh %86 : vector<16x128xf32>
    %89 = arith.mulf %16, %88 : vector<16x128xf32>
    %90 = arith.addf %87, %89 : vector<16x128xf32>
    %91 = arith.truncf %90 : vector<16x128xf32> to vector<16x128xbf16>
    %cst_42 = arith.constant dense<0.000000e+00> : vector<16x128xf32>
    %92 = tpu.matmul %91, %12, %cst_42 {dimension_numbers = #tpu.dot_dimension_numbers<[1], [0], [0], [1], [0, 0, 1, 1], [], []>} : vector<16x128xbf16>, vector<128x128xbf16>, vector<16x128xf32> -> vector<16x128xf32>
    %c8 = arith.constant 8 : index
    %c0_43 = arith.constant 0 : index
    %c0_44 = arith.constant 0 : index
    %93 = vector.load %arg12[%c8, %c0_43, %c0_44] : memref<28x16x128xf32, #tpu.memory_space<vmem>>, vector<1x16x128xf32>
    %94 = vector.shape_cast %93 : vector<1x16x128xf32> to vector<16x128xf32>
    %95 = arith.addf %92, %94 : vector<16x128xf32>
    %96 = arith.mulf %18, %90 : vector<16x128xf32>
    %97 = math.tanh %95 : vector<16x128xf32>
    %98 = arith.mulf %16, %97 : vector<16x128xf32>
    %99 = arith.addf %96, %98 : vector<16x128xf32>
    %100 = arith.truncf %99 : vector<16x128xf32> to vector<16x128xbf16>
    %cst_45 = arith.constant dense<0.000000e+00> : vector<16x128xf32>
    %101 = tpu.matmul %100, %12, %cst_45 {dimension_numbers = #tpu.dot_dimension_numbers<[1], [0], [0], [1], [0, 0, 1, 1], [], []>} : vector<16x128xbf16>, vector<128x128xbf16>, vector<16x128xf32> -> vector<16x128xf32>
    %c9 = arith.constant 9 : index
    %c0_46 = arith.constant 0 : index
    %c0_47 = arith.constant 0 : index
    %102 = vector.load %arg12[%c9, %c0_46, %c0_47] : memref<28x16x128xf32, #tpu.memory_space<vmem>>, vector<1x16x128xf32>
    %103 = vector.shape_cast %102 : vector<1x16x128xf32> to vector<16x128xf32>
    %104 = arith.addf %101, %103 : vector<16x128xf32>
    %105 = arith.mulf %18, %99 : vector<16x128xf32>
    %106 = math.tanh %104 : vector<16x128xf32>
    %107 = arith.mulf %16, %106 : vector<16x128xf32>
    %108 = arith.addf %105, %107 : vector<16x128xf32>
    %109 = arith.truncf %108 : vector<16x128xf32> to vector<16x128xbf16>
    %cst_48 = arith.constant dense<0.000000e+00> : vector<16x128xf32>
    %110 = tpu.matmul %109, %12, %cst_48 {dimension_numbers = #tpu.dot_dimension_numbers<[1], [0], [0], [1], [0, 0, 1, 1], [], []>} : vector<16x128xbf16>, vector<128x128xbf16>, vector<16x128xf32> -> vector<16x128xf32>
    %c10 = arith.constant 10 : index
    %c0_49 = arith.constant 0 : index
    %c0_50 = arith.constant 0 : index
    %111 = vector.load %arg12[%c10, %c0_49, %c0_50] : memref<28x16x128xf32, #tpu.memory_space<vmem>>, vector<1x16x128xf32>
    %112 = vector.shape_cast %111 : vector<1x16x128xf32> to vector<16x128xf32>
    %113 = arith.addf %110, %112 : vector<16x128xf32>
    %114 = arith.mulf %18, %108 : vector<16x128xf32>
    %115 = math.tanh %113 : vector<16x128xf32>
    %116 = arith.mulf %16, %115 : vector<16x128xf32>
    %117 = arith.addf %114, %116 : vector<16x128xf32>
    %118 = arith.truncf %117 : vector<16x128xf32> to vector<16x128xbf16>
    %cst_51 = arith.constant dense<0.000000e+00> : vector<16x128xf32>
    %119 = tpu.matmul %118, %12, %cst_51 {dimension_numbers = #tpu.dot_dimension_numbers<[1], [0], [0], [1], [0, 0, 1, 1], [], []>} : vector<16x128xbf16>, vector<128x128xbf16>, vector<16x128xf32> -> vector<16x128xf32>
    %c11 = arith.constant 11 : index
    %c0_52 = arith.constant 0 : index
    %c0_53 = arith.constant 0 : index
    %120 = vector.load %arg12[%c11, %c0_52, %c0_53] : memref<28x16x128xf32, #tpu.memory_space<vmem>>, vector<1x16x128xf32>
    %121 = vector.shape_cast %120 : vector<1x16x128xf32> to vector<16x128xf32>
    %122 = arith.addf %119, %121 : vector<16x128xf32>
    %123 = arith.mulf %18, %117 : vector<16x128xf32>
    %124 = math.tanh %122 : vector<16x128xf32>
    %125 = arith.mulf %16, %124 : vector<16x128xf32>
    %126 = arith.addf %123, %125 : vector<16x128xf32>
    %127 = arith.truncf %126 : vector<16x128xf32> to vector<16x128xbf16>
    %cst_54 = arith.constant dense<0.000000e+00> : vector<16x128xf32>
    %128 = tpu.matmul %127, %12, %cst_54 {dimension_numbers = #tpu.dot_dimension_numbers<[1], [0], [0], [1], [0, 0, 1, 1], [], []>} : vector<16x128xbf16>, vector<128x128xbf16>, vector<16x128xf32> -> vector<16x128xf32>
    %c12 = arith.constant 12 : index
    %c0_55 = arith.constant 0 : index
    %c0_56 = arith.constant 0 : index
    %129 = vector.load %arg12[%c12, %c0_55, %c0_56] : memref<28x16x128xf32, #tpu.memory_space<vmem>>, vector<1x16x128xf32>
    %130 = vector.shape_cast %129 : vector<1x16x128xf32> to vector<16x128xf32>
    %131 = arith.addf %128, %130 : vector<16x128xf32>
    %132 = arith.mulf %18, %126 : vector<16x128xf32>
    %133 = math.tanh %131 : vector<16x128xf32>
    %134 = arith.mulf %16, %133 : vector<16x128xf32>
    %135 = arith.addf %132, %134 : vector<16x128xf32>
    %136 = arith.truncf %135 : vector<16x128xf32> to vector<16x128xbf16>
    %cst_57 = arith.constant dense<0.000000e+00> : vector<16x128xf32>
    %137 = tpu.matmul %136, %12, %cst_57 {dimension_numbers = #tpu.dot_dimension_numbers<[1], [0], [0], [1], [0, 0, 1, 1], [], []>} : vector<16x128xbf16>, vector<128x128xbf16>, vector<16x128xf32> -> vector<16x128xf32>
    %c13 = arith.constant 13 : index
    %c0_58 = arith.constant 0 : index
    %c0_59 = arith.constant 0 : index
    %138 = vector.load %arg12[%c13, %c0_58, %c0_59] : memref<28x16x128xf32, #tpu.memory_space<vmem>>, vector<1x16x128xf32>
    %139 = vector.shape_cast %138 : vector<1x16x128xf32> to vector<16x128xf32>
    %140 = arith.addf %137, %139 : vector<16x128xf32>
    %141 = arith.mulf %18, %135 : vector<16x128xf32>
    %142 = math.tanh %140 : vector<16x128xf32>
    %143 = arith.mulf %16, %142 : vector<16x128xf32>
    %144 = arith.addf %141, %143 : vector<16x128xf32>
    %145 = arith.truncf %144 : vector<16x128xf32> to vector<16x128xbf16>
    %cst_60 = arith.constant dense<0.000000e+00> : vector<16x128xf32>
    %146 = tpu.matmul %145, %12, %cst_60 {dimension_numbers = #tpu.dot_dimension_numbers<[1], [0], [0], [1], [0, 0, 1, 1], [], []>} : vector<16x128xbf16>, vector<128x128xbf16>, vector<16x128xf32> -> vector<16x128xf32>
    %c14 = arith.constant 14 : index
    %c0_61 = arith.constant 0 : index
    %c0_62 = arith.constant 0 : index
    %147 = vector.load %arg12[%c14, %c0_61, %c0_62] : memref<28x16x128xf32, #tpu.memory_space<vmem>>, vector<1x16x128xf32>
    %148 = vector.shape_cast %147 : vector<1x16x128xf32> to vector<16x128xf32>
    %149 = arith.addf %146, %148 : vector<16x128xf32>
    %150 = arith.mulf %18, %144 : vector<16x128xf32>
    %151 = math.tanh %149 : vector<16x128xf32>
    %152 = arith.mulf %16, %151 : vector<16x128xf32>
    %153 = arith.addf %150, %152 : vector<16x128xf32>
    %154 = arith.truncf %153 : vector<16x128xf32> to vector<16x128xbf16>
    %cst_63 = arith.constant dense<0.000000e+00> : vector<16x128xf32>
    %155 = tpu.matmul %154, %12, %cst_63 {dimension_numbers = #tpu.dot_dimension_numbers<[1], [0], [0], [1], [0, 0, 1, 1], [], []>} : vector<16x128xbf16>, vector<128x128xbf16>, vector<16x128xf32> -> vector<16x128xf32>
    %c15 = arith.constant 15 : index
    %c0_64 = arith.constant 0 : index
    %c0_65 = arith.constant 0 : index
    %156 = vector.load %arg12[%c15, %c0_64, %c0_65] : memref<28x16x128xf32, #tpu.memory_space<vmem>>, vector<1x16x128xf32>
    %157 = vector.shape_cast %156 : vector<1x16x128xf32> to vector<16x128xf32>
    %158 = arith.addf %155, %157 : vector<16x128xf32>
    %159 = arith.mulf %18, %153 : vector<16x128xf32>
    %160 = math.tanh %158 : vector<16x128xf32>
    %161 = arith.mulf %16, %160 : vector<16x128xf32>
    %162 = arith.addf %159, %161 : vector<16x128xf32>
    %163 = arith.truncf %162 : vector<16x128xf32> to vector<16x128xbf16>
    %cst_66 = arith.constant dense<0.000000e+00> : vector<16x128xf32>
    %164 = tpu.matmul %163, %12, %cst_66 {dimension_numbers = #tpu.dot_dimension_numbers<[1], [0], [0], [1], [0, 0, 1, 1], [], []>} : vector<16x128xbf16>, vector<128x128xbf16>, vector<16x128xf32> -> vector<16x128xf32>
    %c16 = arith.constant 16 : index
    %c0_67 = arith.constant 0 : index
    %c0_68 = arith.constant 0 : index
    %165 = vector.load %arg12[%c16, %c0_67, %c0_68] : memref<28x16x128xf32, #tpu.memory_space<vmem>>, vector<1x16x128xf32>
    %166 = vector.shape_cast %165 : vector<1x16x128xf32> to vector<16x128xf32>
    %167 = arith.addf %164, %166 : vector<16x128xf32>
    %168 = arith.mulf %18, %162 : vector<16x128xf32>
    %169 = math.tanh %167 : vector<16x128xf32>
    %170 = arith.mulf %16, %169 : vector<16x128xf32>
    %171 = arith.addf %168, %170 : vector<16x128xf32>
    %172 = arith.truncf %171 : vector<16x128xf32> to vector<16x128xbf16>
    %cst_69 = arith.constant dense<0.000000e+00> : vector<16x128xf32>
    %173 = tpu.matmul %172, %12, %cst_69 {dimension_numbers = #tpu.dot_dimension_numbers<[1], [0], [0], [1], [0, 0, 1, 1], [], []>} : vector<16x128xbf16>, vector<128x128xbf16>, vector<16x128xf32> -> vector<16x128xf32>
    %c17 = arith.constant 17 : index
    %c0_70 = arith.constant 0 : index
    %c0_71 = arith.constant 0 : index
    %174 = vector.load %arg12[%c17, %c0_70, %c0_71] : memref<28x16x128xf32, #tpu.memory_space<vmem>>, vector<1x16x128xf32>
    %175 = vector.shape_cast %174 : vector<1x16x128xf32> to vector<16x128xf32>
    %176 = arith.addf %173, %175 : vector<16x128xf32>
    %177 = arith.mulf %18, %171 : vector<16x128xf32>
    %178 = math.tanh %176 : vector<16x128xf32>
    %179 = arith.mulf %16, %178 : vector<16x128xf32>
    %180 = arith.addf %177, %179 : vector<16x128xf32>
    %181 = arith.truncf %180 : vector<16x128xf32> to vector<16x128xbf16>
    %cst_72 = arith.constant dense<0.000000e+00> : vector<16x128xf32>
    %182 = tpu.matmul %181, %12, %cst_72 {dimension_numbers = #tpu.dot_dimension_numbers<[1], [0], [0], [1], [0, 0, 1, 1], [], []>} : vector<16x128xbf16>, vector<128x128xbf16>, vector<16x128xf32> -> vector<16x128xf32>
    %c18 = arith.constant 18 : index
    %c0_73 = arith.constant 0 : index
    %c0_74 = arith.constant 0 : index
    %183 = vector.load %arg12[%c18, %c0_73, %c0_74] : memref<28x16x128xf32, #tpu.memory_space<vmem>>, vector<1x16x128xf32>
    %184 = vector.shape_cast %183 : vector<1x16x128xf32> to vector<16x128xf32>
    %185 = arith.addf %182, %184 : vector<16x128xf32>
    %186 = arith.mulf %18, %180 : vector<16x128xf32>
    %187 = math.tanh %185 : vector<16x128xf32>
    %188 = arith.mulf %16, %187 : vector<16x128xf32>
    %189 = arith.addf %186, %188 : vector<16x128xf32>
    %190 = arith.truncf %189 : vector<16x128xf32> to vector<16x128xbf16>
    %cst_75 = arith.constant dense<0.000000e+00> : vector<16x128xf32>
    %191 = tpu.matmul %190, %12, %cst_75 {dimension_numbers = #tpu.dot_dimension_numbers<[1], [0], [0], [1], [0, 0, 1, 1], [], []>} : vector<16x128xbf16>, vector<128x128xbf16>, vector<16x128xf32> -> vector<16x128xf32>
    %c19 = arith.constant 19 : index
    %c0_76 = arith.constant 0 : index
    %c0_77 = arith.constant 0 : index
    %192 = vector.load %arg12[%c19, %c0_76, %c0_77] : memref<28x16x128xf32, #tpu.memory_space<vmem>>, vector<1x16x128xf32>
    %193 = vector.shape_cast %192 : vector<1x16x128xf32> to vector<16x128xf32>
    %194 = arith.addf %191, %193 : vector<16x128xf32>
    %195 = arith.mulf %18, %189 : vector<16x128xf32>
    %196 = math.tanh %194 : vector<16x128xf32>
    %197 = arith.mulf %16, %196 : vector<16x128xf32>
    %198 = arith.addf %195, %197 : vector<16x128xf32>
    %199 = arith.truncf %198 : vector<16x128xf32> to vector<16x128xbf16>
    %cst_78 = arith.constant dense<0.000000e+00> : vector<16x128xf32>
    %200 = tpu.matmul %199, %12, %cst_78 {dimension_numbers = #tpu.dot_dimension_numbers<[1], [0], [0], [1], [0, 0, 1, 1], [], []>} : vector<16x128xbf16>, vector<128x128xbf16>, vector<16x128xf32> -> vector<16x128xf32>
    %c20 = arith.constant 20 : index
    %c0_79 = arith.constant 0 : index
    %c0_80 = arith.constant 0 : index
    %201 = vector.load %arg12[%c20, %c0_79, %c0_80] : memref<28x16x128xf32, #tpu.memory_space<vmem>>, vector<1x16x128xf32>
    %202 = vector.shape_cast %201 : vector<1x16x128xf32> to vector<16x128xf32>
    %203 = arith.addf %200, %202 : vector<16x128xf32>
    %204 = arith.mulf %18, %198 : vector<16x128xf32>
    %205 = math.tanh %203 : vector<16x128xf32>
    %206 = arith.mulf %16, %205 : vector<16x128xf32>
    %207 = arith.addf %204, %206 : vector<16x128xf32>
    %208 = arith.truncf %207 : vector<16x128xf32> to vector<16x128xbf16>
    %cst_81 = arith.constant dense<0.000000e+00> : vector<16x128xf32>
    %209 = tpu.matmul %208, %12, %cst_81 {dimension_numbers = #tpu.dot_dimension_numbers<[1], [0], [0], [1], [0, 0, 1, 1], [], []>} : vector<16x128xbf16>, vector<128x128xbf16>, vector<16x128xf32> -> vector<16x128xf32>
    %c21 = arith.constant 21 : index
    %c0_82 = arith.constant 0 : index
    %c0_83 = arith.constant 0 : index
    %210 = vector.load %arg12[%c21, %c0_82, %c0_83] : memref<28x16x128xf32, #tpu.memory_space<vmem>>, vector<1x16x128xf32>
    %211 = vector.shape_cast %210 : vector<1x16x128xf32> to vector<16x128xf32>
    %212 = arith.addf %209, %211 : vector<16x128xf32>
    %213 = arith.mulf %18, %207 : vector<16x128xf32>
    %214 = math.tanh %212 : vector<16x128xf32>
    %215 = arith.mulf %16, %214 : vector<16x128xf32>
    %216 = arith.addf %213, %215 : vector<16x128xf32>
    %217 = arith.truncf %216 : vector<16x128xf32> to vector<16x128xbf16>
    %cst_84 = arith.constant dense<0.000000e+00> : vector<16x128xf32>
    %218 = tpu.matmul %217, %12, %cst_84 {dimension_numbers = #tpu.dot_dimension_numbers<[1], [0], [0], [1], [0, 0, 1, 1], [], []>} : vector<16x128xbf16>, vector<128x128xbf16>, vector<16x128xf32> -> vector<16x128xf32>
    %c22 = arith.constant 22 : index
    %c0_85 = arith.constant 0 : index
    %c0_86 = arith.constant 0 : index
    %219 = vector.load %arg12[%c22, %c0_85, %c0_86] : memref<28x16x128xf32, #tpu.memory_space<vmem>>, vector<1x16x128xf32>
    %220 = vector.shape_cast %219 : vector<1x16x128xf32> to vector<16x128xf32>
    %221 = arith.addf %218, %220 : vector<16x128xf32>
    %222 = arith.mulf %18, %216 : vector<16x128xf32>
    %223 = math.tanh %221 : vector<16x128xf32>
    %224 = arith.mulf %16, %223 : vector<16x128xf32>
    %225 = arith.addf %222, %224 : vector<16x128xf32>
    %226 = arith.truncf %225 : vector<16x128xf32> to vector<16x128xbf16>
    %cst_87 = arith.constant dense<0.000000e+00> : vector<16x128xf32>
    %227 = tpu.matmul %226, %12, %cst_87 {dimension_numbers = #tpu.dot_dimension_numbers<[1], [0], [0], [1], [0, 0, 1, 1], [], []>} : vector<16x128xbf16>, vector<128x128xbf16>, vector<16x128xf32> -> vector<16x128xf32>
    %c23 = arith.constant 23 : index
    %c0_88 = arith.constant 0 : index
    %c0_89 = arith.constant 0 : index
    %228 = vector.load %arg12[%c23, %c0_88, %c0_89] : memref<28x16x128xf32, #tpu.memory_space<vmem>>, vector<1x16x128xf32>
    %229 = vector.shape_cast %228 : vector<1x16x128xf32> to vector<16x128xf32>
    %230 = arith.addf %227, %229 : vector<16x128xf32>
    %231 = arith.mulf %18, %225 : vector<16x128xf32>
    %232 = math.tanh %230 : vector<16x128xf32>
    %233 = arith.mulf %16, %232 : vector<16x128xf32>
    %234 = arith.addf %231, %233 : vector<16x128xf32>
    %235 = arith.truncf %234 : vector<16x128xf32> to vector<16x128xbf16>
    %cst_90 = arith.constant dense<0.000000e+00> : vector<16x128xf32>
    %236 = tpu.matmul %235, %12, %cst_90 {dimension_numbers = #tpu.dot_dimension_numbers<[1], [0], [0], [1], [0, 0, 1, 1], [], []>} : vector<16x128xbf16>, vector<128x128xbf16>, vector<16x128xf32> -> vector<16x128xf32>
    %c24 = arith.constant 24 : index
    %c0_91 = arith.constant 0 : index
    %c0_92 = arith.constant 0 : index
    %237 = vector.load %arg12[%c24, %c0_91, %c0_92] : memref<28x16x128xf32, #tpu.memory_space<vmem>>, vector<1x16x128xf32>
    %238 = vector.shape_cast %237 : vector<1x16x128xf32> to vector<16x128xf32>
    %239 = arith.addf %236, %238 : vector<16x128xf32>
    %240 = arith.mulf %18, %234 : vector<16x128xf32>
    %241 = math.tanh %239 : vector<16x128xf32>
    %242 = arith.mulf %16, %241 : vector<16x128xf32>
    %243 = arith.addf %240, %242 : vector<16x128xf32>
    %244 = arith.truncf %243 : vector<16x128xf32> to vector<16x128xbf16>
    %cst_93 = arith.constant dense<0.000000e+00> : vector<16x128xf32>
    %245 = tpu.matmul %244, %12, %cst_93 {dimension_numbers = #tpu.dot_dimension_numbers<[1], [0], [0], [1], [0, 0, 1, 1], [], []>} : vector<16x128xbf16>, vector<128x128xbf16>, vector<16x128xf32> -> vector<16x128xf32>
    %c25 = arith.constant 25 : index
    %c0_94 = arith.constant 0 : index
    %c0_95 = arith.constant 0 : index
    %246 = vector.load %arg12[%c25, %c0_94, %c0_95] : memref<28x16x128xf32, #tpu.memory_space<vmem>>, vector<1x16x128xf32>
    %247 = vector.shape_cast %246 : vector<1x16x128xf32> to vector<16x128xf32>
    %248 = arith.addf %245, %247 : vector<16x128xf32>
    %249 = arith.mulf %18, %243 : vector<16x128xf32>
    %250 = math.tanh %248 : vector<16x128xf32>
    %251 = arith.mulf %16, %250 : vector<16x128xf32>
    %252 = arith.addf %249, %251 : vector<16x128xf32>
    %253 = arith.truncf %252 : vector<16x128xf32> to vector<16x128xbf16>
    %cst_96 = arith.constant dense<0.000000e+00> : vector<16x128xf32>
    %254 = tpu.matmul %253, %12, %cst_96 {dimension_numbers = #tpu.dot_dimension_numbers<[1], [0], [0], [1], [0, 0, 1, 1], [], []>} : vector<16x128xbf16>, vector<128x128xbf16>, vector<16x128xf32> -> vector<16x128xf32>
    %c26 = arith.constant 26 : index
    %c0_97 = arith.constant 0 : index
    %c0_98 = arith.constant 0 : index
    %255 = vector.load %arg12[%c26, %c0_97, %c0_98] : memref<28x16x128xf32, #tpu.memory_space<vmem>>, vector<1x16x128xf32>
    %256 = vector.shape_cast %255 : vector<1x16x128xf32> to vector<16x128xf32>
    %257 = arith.addf %254, %256 : vector<16x128xf32>
    %258 = arith.mulf %18, %252 : vector<16x128xf32>
    %259 = math.tanh %257 : vector<16x128xf32>
    %260 = arith.mulf %16, %259 : vector<16x128xf32>
    %261 = arith.addf %258, %260 : vector<16x128xf32>
    %262 = arith.truncf %261 : vector<16x128xf32> to vector<16x128xbf16>
    %cst_99 = arith.constant dense<0.000000e+00> : vector<16x128xf32>
    %263 = tpu.matmul %262, %12, %cst_99 {dimension_numbers = #tpu.dot_dimension_numbers<[1], [0], [0], [1], [0, 0, 1, 1], [], []>} : vector<16x128xbf16>, vector<128x128xbf16>, vector<16x128xf32> -> vector<16x128xf32>
    %c27 = arith.constant 27 : index
    %c0_100 = arith.constant 0 : index
    %c0_101 = arith.constant 0 : index
    %264 = vector.load %arg12[%c27, %c0_100, %c0_101] : memref<28x16x128xf32, #tpu.memory_space<vmem>>, vector<1x16x128xf32>
    %265 = vector.shape_cast %264 : vector<1x16x128xf32> to vector<16x128xf32>
    %266 = arith.addf %263, %265 : vector<16x128xf32>
    %267 = arith.mulf %18, %261 : vector<16x128xf32>
    %268 = math.tanh %266 : vector<16x128xf32>
    %269 = arith.mulf %16, %268 : vector<16x128xf32>
    %270 = arith.addf %267, %269 : vector<16x128xf32>
    %c0_102 = arith.constant 0 : index
    %c0_103 = arith.constant 0 : index
    %271 = vector.load %arg10[%c0_102, %c0_103] : memref<16x128xf32, #tpu.memory_space<vmem>>, vector<16x128xf32>
    tpu.vector_store %arg10[%c0_102, %c0_103], %270 {strides = array<i32>} : memref<16x128xf32, #tpu.memory_space<vmem>>, vector<16x128xf32>,
    %c0_i32_104 = arith.constant 0 : i32
    %272 = arith.cmpi eq, %arg1, %c0_i32_104 : i32
    %273 = arith.extui %272 : i1 to i32
    %c0_i32_105 = arith.constant 0 : i32
    %274 = arith.cmpi ne, %273, %c0_i32_105 : i32
    scf.if %274 {
      %275 = arith.truncf %270 : vector<16x128xf32> to vector<16x128xbf16>
      %c0_106 = arith.constant 0 : index
      %c0_107 = arith.constant 0 : index
      %276 = vector.load %arg7[%c0_106, %c0_107] : memref<128x128xbf16, #tpu.memory_space<vmem>>, vector<128x128xbf16>
      %cst_108 = arith.constant dense<0.000000e+00> : vector<16x128xf32>
      %277 = tpu.matmul %275, %276, %cst_108 {dimension_numbers = #tpu.dot_dimension_numbers<[1], [0], [0], [1], [0, 0, 1, 1], [], []>} : vector<16x128xbf16>, vector<128x128xbf16>, vector<16x128xf32> -> vector<16x128xf32>
      %c0_109 = arith.constant 0 : index
      %c0_110 = arith.constant 0 : index
      %278 = vector.load %arg8[%c0_109, %c0_110] : memref<1x128xf32, #tpu.memory_space<vmem>>, vector<1x128xf32>
      %279 = vector.broadcast %278 : vector<1x128xf32> to vector<16x128xf32>
      %280 = arith.addf %277, %279 : vector<16x128xf32>
      %c0_111 = arith.constant 0 : index
      %c0_112 = arith.constant 0 : index
      %281 = vector.load %arg9[%c0_111, %c0_112] : memref<16x128xf32, #tpu.memory_space<vmem>>, vector<16x128xf32>
      tpu.vector_store %arg9[%c0_111, %c0_112], %280 {strides = array<i32>} : memref<16x128xf32, #tpu.memory_space<vmem>>, vector<16x128xf32>,
    } else {
    }
    return
  }
  func.func @transform_0(%arg0: i32, %arg1: i32) -> (i32, i32, i32) {
    %c0_i32 = arith.constant 0 : i32
    %c0_i32_0 = arith.constant 0 : i32
    return %arg1, %arg0, %c0_i32 : i32, i32, i32
  }
  func.func @transform_1(%arg0: i32, %arg1: i32) -> (i32, i32) {
    %c0_i32 = arith.constant 0 : i32
    %c0_i32_0 = arith.constant 0 : i32
    %c0_i32_1 = arith.constant 0 : i32
    return %c0_i32, %c0_i32_0 : i32, i32
  }
  func.func @transform_2(%arg0: i32, %arg1: i32) -> (i32, i32) {
    %c0_i32 = arith.constant 0 : i32
    %c0_i32_0 = arith.constant 0 : i32
    %c0_i32_1 = arith.constant 0 : i32
    return %c0_i32, %c0_i32_0 : i32, i32
  }
  func.func @transform_3(%arg0: i32, %arg1: i32) -> (i32, i32) {
    %c0_i32 = arith.constant 0 : i32
    %c0_i32_0 = arith.constant 0 : i32
    %c0_i32_1 = arith.constant 0 : i32
    return %c0_i32, %c0_i32_0 : i32, i32
  }
  func.func @transform_4(%arg0: i32, %arg1: i32) -> (i32, i32) {
    %c0_i32 = arith.constant 0 : i32
    %c0_i32_0 = arith.constant 0 : i32
    %c0_i32_1 = arith.constant 0 : i32
    return %c0_i32, %c0_i32_0 : i32, i32
  }
  func.func @transform_5(%arg0: i32, %arg1: i32) -> (i32, i32) {
    %c0_i32 = arith.constant 0 : i32
    %c0_i32_0 = arith.constant 0 : i32
    %c0_i32_1 = arith.constant 0 : i32
    return %c0_i32, %c0_i32_0 : i32, i32
  }
  func.func @transform_6(%arg0: i32, %arg1: i32) -> (i32, i32) {
    %c0_i32 = arith.constant 0 : i32
    %c0_i32_0 = arith.constant 0 : i32
    %c0_i32_1 = arith.constant 0 : i32
    return %c0_i32, %c0_i32_0 : i32, i32
  }
  func.func @transform_7(%arg0: i32, %arg1: i32) -> (i32, i32) {
    %c0_i32 = arith.constant 0 : i32
    %c0_i32_0 = arith.constant 0 : i32
    return %arg0, %c0_i32 : i32, i32
  }
}

</mosaic_0001>

<bundles_post_ra>
// kernel: tpu_custom_call.1
= control target key start
LH: loop header
LB: loop body
LE: loop exit
PB: predicated region body
PF: predicated region fallthrough
CT: control target
= control target key end

     0   :  { %12 = vsyncpa [#allocation6], 0  ;;  %s4832_s0 = inlined_call_operand.hbm [shape: bf16[28,16,28], index: 0, kind: input, shape index: {}]   ;;  %s4833_s1 = inlined_call_operand.hbm [shape: bf16[128,128], index: 1, kind: input, shape index: {}]   ;;  %s4834_s2 = inlined_call_operand.hbm [shape: bf16[28,128], index: 2, kind: input, shape index: {}]   ;;  %s4835_s3 = inlined_call_operand.vmem [shape: f32[1,128], index: 3, kind: input, shape index: {}]   ;;  %s4836_s4 = inlined_call_operand.vmem [shape: f32[1,128], index: 4, kind: input, shape index: {}]   ;;  %s4837_s5 = inlined_call_operand.hbm [shape: bf16[128,128], index: 5, kind: input, shape index: {}]   ;;  %s4838_s6 = inlined_call_operand.vmem [shape: f32[1,128], index: 6, kind: input, shape index: {}]   ;;  %s4839_s7 = inlined_call_operand.hbm [shape: f32[16,128], index: 7, kind: output, shape index: {}]  }
   0x1   :  { %13 = vsyncpa [#allocation9], 0 }
   0x2   :  { %14 = vsyncpa [#allocation12], 0 }
   0x3   :  { %15 = vsyncpa [#allocation7], 0  ;;  %s3735_s24 = smov [#allocation8]   ;;  %s3736_s26 = smov [#allocation5]  }
   0x4   :  { %s33_s25 = sshll.u32 %s3735_s24, 4  ;;  %s21_s27 = sshll.u32 %s3736_s26, 4  ;;  %s34_s25 = int_to_ptr.vmem [resolvable:$true] %s33_s25  ;;  %s3787_s27 = int_to_ptr.vmem [resolvable:$true] %s21_s27 }
   0x5   :  { %s3617_s30 = scalar_lea.hbm %s4833_s1, 1024 }
   0x6   :  { %p3618_p0 = scmp.ne.s32.totalorder %s4833_s1, %s3617_s30  ;;  %p3621_p1 = scmp.lt.u32.totalorder %s3617_s30, %s4833_s1 }
   0x8   :  { %p3623_p2 = pnand %p3621_p1, %p3618_p0 }
   0xa   :  { %3626 = shalt.err (!%p3623_p2)
}
   0xb   :  { %s3627_s12 = scalar_lea.vmem %s34_s25, 1024  ;;  %p3632_p4 = scmp.lt.s32.totalorder %s34_s25, %s34_s25 }
   0xc   :  { %p3628_p3 = scmp.ne.s32.totalorder %s34_s25, %s3627_s12  ;;  %p3633_p5 = scmp.lt.s32.totalorder %s3627_s12, %s3627_s12 }
   0xe   :  { %p3634_p6 = por %p3633_p5, %p3632_p4 }
  0x10   :  { %p3635_p7 = pnand %p3634_p6, %p3628_p3 }
  0x12   :  { %3638 = shalt.err (!%p3635_p7)
}
  0x13   :  { %s3737_s13 = smov 64   ;;  %s3738_s14 = smov 4  }
  0x14   :  { %39 = dma.hbm_to_vmem [thread:$0]  %s4833_s1, 1024, %s34_s25, [#allocation9], %s3737_s13, %s3737_s13, %s3738_s14  }
  0x15   :  { %s3639_s19 = scalar_lea.hbm %s4832_s0, 3584 }
  0x16   :  { %p3640_p8 = scmp.ne.s32.totalorder %s4832_s0, %s3639_s19  ;;  %p3643_p9 = scmp.lt.u32.totalorder %s3639_s19, %s4832_s0 }
  0x18   :  { %p3645_p10 = pnand %p3643_p9, %p3640_p8 }
  0x1a   :  { %3648 = shalt.err (!%p3645_p10)
}
  0x1b   :  { %s3649_s24 = scalar_lea.vmem %s3787_s27, 3584  ;;  %p3654_p12 = scmp.lt.s32.totalorder %s3787_s27, %s3787_s27 }
  0x1c   :  { %p3650_p11 = scmp.ne.s32.totalorder %s3787_s27, %s3649_s24  ;;  %p3655_p13 = scmp.lt.s32.totalorder %s3649_s24, %s3649_s24 }
  0x1e   :  { %p3656_p0 = por %p3655_p13, %p3654_p12 }
  0x20   :  { %p3657_p1 = pnand %p3656_p0, %p3650_p11 }
  0x22   :  { %3660 = shalt.err (!%p3657_p1)
}
  0x23   :  { %27 = dma.hbm_to_vmem [thread:$0]  %s4832_s0, 3584, %s3787_s27, [#allocation6], %s3737_s13, %s3737_s13, %s3738_s14  }
  0x24   :  { %s3739_s26 = smov [#allocation10]   ;;  %s3740_s29 = smov [#allocation11]  }
  0x25   :  { %s45_s28 = sshll.u32 %s3739_s26, 4  ;;  %s61_s30 = sshll.u32 %s3740_s29, 4  ;;  %s46_s28 = int_to_ptr.vmem [resolvable:$true] %s45_s28  ;;  %s3824_s30 = int_to_ptr.vmem [resolvable:$true] %s61_s30 }
  0x26   :  { %s3661_s10 = scalar_lea.hbm %s4834_s2, 256 }
  0x27   :  { %p3662_p2 = scmp.ne.s32.totalorder %s4834_s2, %s3661_s10  ;;  %p3665_p3 = scmp.lt.u32.totalorder %s3661_s10, %s4834_s2 }
  0x29   :  { %p3667_p4 = pnand %p3665_p3, %p3662_p2 }
  0x2b   :  { %3670 = shalt.err (!%p3667_p4)
}
  0x2c   :  { %s3671_s0 = scalar_lea.vmem %s46_s28, 256  ;;  %p3676_p6 = scmp.lt.s32.totalorder %s46_s28, %s46_s28 }
  0x2d   :  { %p3672_p5 = scmp.ne.s32.totalorder %s46_s28, %s3671_s0  ;;  %p3677_p7 = scmp.lt.s32.totalorder %s3671_s0, %s3671_s0 }
  0x2f   :  { %p3678_p8 = por %p3677_p7, %p3676_p6 }
  0x31   :  { %p3679_p9 = pnand %p3678_p8, %p3672_p5 }
  0x33   :  { %3682 = shalt.err (!%p3679_p9)
}
  0x34   :  { %51 = dma.hbm_to_vmem [thread:$0]  %s4834_s2, 256, %s46_s28, [#allocation9], %s3737_s13, %s3737_s13, %s3738_s14  }
  0x35   :  { %s3683_s20 = scalar_lea.hbm %s4837_s5, 1024 }
  0x36   :  { %p3684_p10 = scmp.ne.s32.totalorder %s4837_s5, %s3683_s20  ;;  %p3687_p11 = scmp.lt.u32.totalorder %s3683_s20, %s4837_s5 }
  0x38   :  { %p3689_p12 = pnand %p3687_p11, %p3684_p10 }
  0x3a   :  { %3692 = shalt.err (!%p3689_p12)
}
  0x3b   :  { %s3693_s1 = scalar_lea.vmem %s3824_s30, 1024  ;;  %p3698_p0 = scmp.lt.s32.totalorder %s3824_s30, %s3824_s30 }
  0x3c   :  { %p3694_p13 = scmp.ne.s32.totalorder %s3824_s30, %s3693_s1  ;;  %p3699_p1 = scmp.lt.s32.totalorder %s3693_s1, %s3693_s1 }
  0x3e   :  { %p3700_p2 = por %p3699_p1, %p3698_p0 }
  0x40   :  { %p3701_p3 = pnand %p3700_p2, %p3694_p13 }
  0x42   :  { %3704 = shalt.err (!%p3701_p3)
}
  0x43   :  { %67 = dma.hbm_to_vmem [thread:$0]  %s4837_s5, 1024, %s3824_s30, [#allocation12], %s3737_s13, %s3737_s13, %s3738_s14  }
  0x44   :  { %3727 = dma.done.wait [#allocation6], 3584  }
  0x45   :  { %3728 = vsyncadd [#allocation6], 4294963712 }
  0x46   :  { %3729 = dma.done.wait [#allocation9], 1280  }
  0x47   :  { %3730 = vsyncadd [#allocation9], 4294966016 }
  0x48   :  { %3731 = dma.done.wait [#allocation12], 1024  }
  0x49   :  { %3732 = vsyncadd [#allocation12], 4294966272  ;;  %v4840_v0 = vmov 0.0   ;;  %vm3742_vm0 = vmmov 0   ;;  %v3864_v1 = vld [vmem:[#allocation8] sm:$0xff]   ;;  %v3867_v2 = vld [vmem:[#allocation8 + $0x8] sm:$0xff]  }
  0x4a   :  { %2842 = vmatprep.subr.bf16.mxu1 %v4840_v0  ;;  %2858 = vmatprep.mubr.msk.bf16.mxu1 %vm3742_vm0, %v4840_v0  ;;  %v3440_v3 = vld [vmem:[#allocation10] sm:$0xff]   ;;  %vm400_vm1 = vcmask 1045504   ;;  %v3871_v4 = vld [vmem:[#allocation8 + $0x10] sm:$0xff]   ;;  %vm315_vm2 = vcmask 228352   ;;  %v3442_v5 = vld [vmem:[#allocation10 + $0x8] sm:$0x3f]  }
  0x4b   :  { %2843 = vmatpush3.bf16.msra.mxu1 %v3864_v1  ;;  %2782 = vmatprep.subr.bf16.mxu0 %v3440_v3  ;;  %v3443_v6 = vld [vmem:[#allocation5] sm:$0xff]   ;;  %v402_v7 = vsel %vm400_vm1, %v3442_v5, 0  ;;  %v3875_v8 = vld [vmem:[#allocation8 + $0x18] sm:$0xff]   ;;  %v3445_v9 = vld [vmem:[#allocation5 + $0x8] sm:$0xff]   ;;  %v3743_v14 = vmov 0.0|0.0   ;;  %s3744_s9 = smov [#allocation13]  }
  0x4c   :  { %2844 = vmatprep.subr.bf16.mxu1 %v4840_v0  ;;  %2783 = vmatpush3.bf16.msra.mxu0 %v3440_v3  ;;  %v3879_v10 = vld [vmem:[#allocation8 + $0x20] sm:$0xff]   ;;  %v3885_v11 = vld [vmem:[#allocation8 + $0x28] sm:$0xff]   ;;  %v3891_v12 = vld [vmem:[#allocation8 + $0x30] sm:$0xff]   ;;  %s2399_s10 = sshll.u32 %s3744_s9, 4  ;;  %s2400_s10 = int_to_ptr.vmem [resolvable:$true] %s2399_s10 }
  0x4d   :  { %3422 = vmatprep.subr.msk.bf16.mxu0 %vm400_vm1, %v3442_v5  ;;  %2786 = vmatprep.mubr.msk.bf16.mxu0 %vm315_vm2, %v3443_v6  ;;  %v3897_v13 = vld [vmem:[#allocation8 + $0x38] sm:$0xff]   ;;  %v3447_v43 = vld [vmem:[#allocation5 + $0x10] sm:$0xff]   ;;  %v3449_v45 = vld [vmem:[#allocation5 + $0x20] sm:$0xff]   ;;  %s3705_s11 = scalar_lea.vmem %s2400_s10, 256  ;;  %p3710_p5 = scmp.lt.s32.totalorder %s2400_s10, %s2400_s10 }
  0x4e   :  { %v89_v15 = vld [vmem:[%s4836_s4] sm:$0x1]  ;;  %v3450_v46 = vld [vmem:[#allocation5 + $0x28] sm:$0xff]   ;;  %v3451_v47 = vld [vmem:[#allocation5 + $0x30] sm:$0xff]   ;;  %p3706_p4 = scmp.ne.s32.totalorder %s2400_s10, %s3705_s11  ;;  %p3711_p6 = scmp.lt.s32.totalorder %s3705_s11, %s3705_s11 }
  0x4f   :  { %2845 = vmatpush3.bf16.msra.mxu1 %v3867_v2  ;;  %v2413_v16 = vmul.f32 -1.442695, %v89_v15  ;;  %v3943_v24 = vld [vmem:[%s4835_s3] ss:$0 sm:$0xff]  ;;  %v3453_v49 = vld [vmem:[#allocation5 + $0x40] sm:$0xff]   ;;  %v3454_v50 = vld [vmem:[#allocation5 + $0x48] sm:$0xff]  }
  0x50   :  { %2846 = vmatprep.subr.bf16.mxu1 %v4840_v0  ;;  %2785 = vmatpush3.bf16.msra.mxu0 %v402_v7  ;;  %v3448_v44 = vld [vmem:[#allocation5 + $0x18] sm:$0xff]   ;;  %v3455_v51 = vld [vmem:[#allocation5 + $0x50] sm:$0xff]   ;;  %v3457_v53 = vld [vmem:[#allocation5 + $0x60] sm:$0xff]   ;;  %p3712_p7 = por %p3711_p6, %p3710_p5 }
  0x51   :  { %2902 = vmatprep.subr.bf16.mxu0 %v4840_v0  ;;  %3481 = vpow2.f32 %v2413_v16  ;;  %v3452_v48 = vld [vmem:[#allocation5 + $0x38] sm:$0xff]   ;;  %v3458_v54 = vld [vmem:[#allocation5 + $0x68] sm:$0xff]   ;;  %v3459_v55 = vld [vmem:[#allocation5 + $0x70] sm:$0xff]  }
  0x52   :  { %v3456_v52 = vld [vmem:[#allocation5 + $0x58] sm:$0xff]   ;;  %v3461_v57 = vld [vmem:[#allocation5 + $0x80] sm:$0xff]   ;;  %v3462_v58 = vld [vmem:[#allocation5 + $0x88] sm:$0xff]   ;;  %p3713_p8 = pnand %p3712_p7, %p3706_p4 }
  0x53   :  { %2847 = vmatpush3.bf16.msra.mxu1 %v3871_v4  ;;  %2787 = vmatmul.mubr.msk.bf16.vlgmr.msra.gmra.mrb[0].mxu0 %vm315_vm2, %v3445_v9  ;;  %v3460_v56 = vld [vmem:[#allocation5 + $0x78] sm:$0xff]   ;;  %v3463_v59 = vld [vmem:[#allocation5 + $0x90] sm:$0xff]   ;;  %v3465_v61 = vld [vmem:[#allocation5 + $0xa0] sm:$0xff]  }
  0x54   :  { %2848 = vmatprep.subr.bf16.mxu1 %v4840_v0  ;;  %2903 = vmatpush3.bf16.msra.mxu0 %v3864_v1  ;;  %v3464_v60 = vld [vmem:[#allocation5 + $0x98] sm:$0xff]   ;;  %v3466_v62 = vld [vmem:[#allocation5 + $0xa8] sm:$0xff]   ;;  %v3467_v63 = vld [vmem:[#allocation5 + $0xb0] sm:$0xff]  }
  0x55   :  { %2904 = vmatprep.subr.bf16.mxu0 %v4840_v0  ;;  %2790 = vmatprep.mubr.msk.bf16.mxu0 %vm315_vm2, %v3447_v43  ;;  %v3468_v3 = vld [vmem:[#allocation5 + $0xb8] sm:$0xff]  }
  0x57   :  { %2849 = vmatpush3.bf16.msra.mxu1 %v3875_v8 }
  0x58   :  { %2850 = vmatprep.subr.bf16.mxu1 %v4840_v0  ;;  %2905 = vmatpush3.bf16.msra.mxu0 %v3867_v2 }
  0x59   :  { %2906 = vmatprep.subr.bf16.mxu0 %v4840_v0 }
  0x5b   :  { %2851 = vmatpush3.bf16.msra.mxu1 %v3879_v10  ;;  %v3482_v17 = vpop.eup %3481  ;;  %2791 = vmatmul.mubr.msk.bf16.gmra.mrb[4].mxu0 %vm315_vm2, %v3448_v44 }
  0x5c   :  { %2852 = vmatprep.subr.bf16.mxu1 %v4840_v0  ;;  %2907 = vmatpush3.bf16.msra.mxu0 %v3871_v4  ;;  %v93_v18 = vadd.f32 1.0, %v3482_v17 }
  0x5d   :  { %2908 = vmatprep.subr.bf16.mxu0 %v4840_v0  ;;  %2794 = vmatprep.mubr.msk.bf16.mxu0 %vm315_vm2, %v3449_v45 }
  0x5e   :  { %3483 = vrcp.f32 %v93_v18 }
  0x5f   :  { %2853 = vmatpush3.bf16.msra.mxu1 %v3885_v11 }
  0x60   :  { %2854 = vmatprep.subr.bf16.mxu1 %v4840_v0  ;;  %2909 = vmatpush3.bf16.msra.mxu0 %v3875_v8 }
  0x61   :  { %2910 = vmatprep.subr.bf16.mxu0 %v4840_v0 }
  0x63   :  { %2855 = vmatpush3.bf16.msra.mxu1 %v3891_v12  ;;  %2795 = vmatmul.mubr.msk.bf16.gmra.mrb[8].mxu0 %vm315_vm2, %v3450_v46 }
  0x64   :  { %2856 = vmatprep.subr.bf16.mxu1 %v4840_v0  ;;  %2911 = vmatpush3.bf16.msra.mxu0 %v3879_v10 }
  0x65   :  { %2912 = vmatprep.subr.bf16.mxu0 %v4840_v0  ;;  %2798 = vmatprep.mubr.msk.bf16.mxu0 %vm315_vm2, %v3451_v47 }
  0x67   :  { %2857 = vmatpush3.bf16.msra.mxu1 %v3897_v13 }
  0x68   :  { %2862 = vmatprep.subr.bf16.mxu1 %v4840_v0  ;;  %2913 = vmatpush3.bf16.msra.mxu0 %v3885_v11  ;;  %v3484_v19 = vpop.eup %3483 }
  0x69   :  { %2914 = vmatprep.subr.bf16.mxu0 %v4840_v0  ;;  %96 = vst [vmem:[#allocation3] sm:$0x1] %v3484_v19 }
  0x6a   :  { %2859 = vmatmul.mubr.bf16.vlgmr.msra.gmra.mrb[0].mxu1 %v3743_v14 }
  0x6b   :  { %2863 = vmatpush3.bf16.msra.mxu1 %v3864_v1  ;;  %2878 = vmatprep.mubr.msk.bf16.mxu1 %vm3742_vm0, %v4840_v0 }
  0x6c   :  { %2864 = vmatprep.subr.bf16.mxu1 %v4840_v0  ;;  %2915 = vmatpush3.bf16.msra.mxu0 %v3891_v12 }
  0x6d   :  { %2916 = vmatprep.subr.bf16.mxu0 %v4840_v0  ;;  %2799 = vmatmul.mubr.msk.bf16.gmra.mrb[12].mxu0 %vm315_vm2, %v3452_v48 }
  0x6e   :  { %2802 = vmatprep.mubr.msk.bf16.mxu0 %vm315_vm2, %v3453_v49 }
  0x6f   :  { %2865 = vmatpush3.bf16.msra.mxu1 %v3867_v2 }
  0x70   :  { %2866 = vmatprep.subr.bf16.mxu1 %v4840_v0  ;;  %2917 = vmatpush3.bf16.msra.mxu0 %v3897_v13  ;;  %v3947_v33 = vld [vmem:[#allocation3] ss:$0 sm:$0xff] }
  0x71   :  { %2942 = vmatprep.subr.bf16.mxu0 %v4840_v0  ;;  %v3950_v34 = vsub.f32 1.0, %v3947_v33 }
  0x73   :  { %2867 = vmatpush3.bf16.msra.mxu1 %v3871_v4  ;;  %v835_v36 = vmul.f32 0.0, %v3950_v34 }
  0x74   :  { %2868 = vmatprep.subr.bf16.mxu1 %v4840_v0 }
  0x75   :  { %2803 = vmatmul.mubr.msk.bf16.gmra.mrb[16].mxu0 %vm315_vm2, %v3454_v50 }
  0x76   :  { %2806 = vmatprep.mubr.msk.bf16.mxu0 %vm315_vm2, %v3455_v51 }
  0x77   :  { %2869 = vmatpush3.bf16.msra.mxu1 %v3875_v8 }
  0x78   :  { %2870 = vmatprep.subr.bf16.mxu1 %v4840_v0 }
  0x7b   :  { %2871 = vmatpush3.bf16.msra.mxu1 %v3879_v10 }
  0x7c   :  { %2872 = vmatprep.subr.bf16.mxu1 %v4840_v0 }
  0x7d   :  { %2807 = vmatmul.mubr.msk.bf16.gmra.mrb[20].mxu0 %vm315_vm2, %v3456_v52 }
  0x7e   :  { %2810 = vmatprep.mubr.msk.bf16.mxu0 %vm315_vm2, %v3457_v53 }
  0x7f   :  { %2873 = vmatpush3.bf16.msra.mxu1 %v3885_v11 }
  0x80   :  { %2874 = vmatprep.subr.bf16.mxu1 %v4840_v0 }
  0x83   :  { %2875 = vmatpush3.bf16.msra.mxu1 %v3891_v12 }
  0x84   :  { %2876 = vmatprep.subr.bf16.mxu1 %v4840_v0 }
  0x85   :  { %2811 = vmatmul.mubr.msk.bf16.gmra.mrb[24].mxu0 %vm315_vm2, %v3458_v54 }
  0x86   :  { %2814 = vmatprep.mubr.msk.bf16.mxu0 %vm315_vm2, %v3459_v55 }
  0x87   :  { %2877 = vmatpush3.bf16.msra.mxu1 %v3897_v13 }
  0x88   :  { %2882 = vmatprep.subr.bf16.mxu1 %v4840_v0 }
  0x8d   :  { %2815 = vmatmul.mubr.msk.bf16.gmra.mrb[28].mxu0 %vm315_vm2, %v3460_v56 }
  0x8e   :  { %2818 = vmatprep.mubr.msk.bf16.mxu0 %vm315_vm2, %v3461_v57 }
  0x95   :  { %2819 = vmatmul.mubr.msk.bf16.gmra.mrb[32].mxu0 %vm315_vm2, %v3462_v58 }
  0x96   :  { %2822 = vmatprep.mubr.msk.bf16.mxu0 %vm315_vm2, %v3463_v59 }
  0x9d   :  { %2823 = vmatmul.mubr.msk.bf16.gmra.mrb[36].mxu0 %vm315_vm2, %v3464_v60 }
  0x9e   :  { %2826 = vmatprep.mubr.msk.bf16.mxu0 %vm315_vm2, %v3465_v61 }
  0xa5   :  { %2827 = vmatmul.mubr.msk.bf16.gmra.mrb[40].mxu0 %vm315_vm2, %v3466_v62 }
  0xa6   :  { %2830 = vmatprep.mubr.msk.bf16.mxu0 %vm315_vm2, %v3467_v63 }
  0xad   :  { %2831 = vmatmul.mubr.msk.bf16.gmra.mrb[44].mxu0 %vm315_vm2, %v3468_v3 }
 0x126   :  { %v3936_v20 = vpop.f32.mrb[0].mxu0 }
 0x127   :  { %v438_v21 = vpop.f32.mrb[1].mxu0  ;;  %v447_v5 = vadd.f32 %v3936_v20, %v3943_v24 }
 0x128   :  { %v3938_v22 = vpop.f32.mrb[2].mxu0  ;;  %v439_v25 = vadd.f32 %v3943_v24, %v438_v21 }
 0x129   :  { %v441_v23 = vpop.f32.mrb[3].mxu0  ;;  %v450_v7 = vadd.f32 %v3938_v22, %v3943_v24 }
 0x12a   :  { %v442_v27 = vadd.f32 %v3943_v24, %v441_v23 }
 0x13d   :  { %v828_v26 = vpop.f32.mrb[0].mxu1 }
 0x13e   :  { %v829_v28 = vadd.f32 %v828_v26, %v439_v25  ;;  %v2860_v29 = vpop.f32.mrb[1].mxu1 }
 0x13f   :  { %v831_v30 = vpop.f32.mrb[2].mxu1 }
 0x140   :  { %3485 = vtanh.f32 %v829_v28  ;;  %v832_v31 = vadd.f32 %v831_v30, %v442_v27  ;;  %v2861_v32 = vpop.f32.mrb[3].mxu1  ;;  %v4035_v28 = vpop.f32.mrb[4].mxu0 }
 0x141   :  { %v454_v29 = vpop.f32.mrb[5].mxu0  ;;  %v3469_v32 = vld [vmem:[#allocation5 + $0xc0] sm:$0xff]  }
 0x142   :  { %3487 = vtanh.f32 %v832_v31  ;;  %v4037_v30 = vpop.f32.mrb[6].mxu0  ;;  %2834 = vmatprep.mubr.msk.bf16.mxu0 %vm315_vm2, %v3469_v32 }
 0x143   :  { %v457_v31 = vpop.f32.mrb[7].mxu0 }
 0x144   :  { %v458_v32 = vadd.f32 %v3943_v24, %v457_v31 }
 0x14a   :  { %v3486_v35 = vpop.eup %3485 }
 0x14b   :  { %v839_v37 = vmul.f32 %v3486_v35, %v3947_v33  ;;  %v3470_v35 = vld [vmem:[#allocation5 + $0xc8] sm:$0xff]  }
 0x14c   :  { %v3488_v38 = vpop.eup %3487  ;;  %2835 = vmatmul.mubr.msk.bf16.gmra.mrb[48].mxu0 %vm315_vm2, %v3470_v35 }
 0x14d   :  { %v840_v39 = vmul.f32 %v3488_v38, %v3947_v33  ;;  %v3955_v40 = vadd.f32 %v839_v37, %v835_v36  ;;  %v3472_v37 = vld [vmem:[#allocation5 + $0xd8] sm:$0xff]   ;;  %v4045_v38 = vpop.f32.mrb[8].mxu0 }
 0x14f   :  { %v3957_v41 = vadd.f32 %v840_v39, %v835_v36  ;;  %v888_v19 = vmul.f32 %v3955_v40, %v3950_v34  ;;  %v3471_v36 = vld [vmem:[#allocation5 + $0xd0] sm:$0xff]   ;;  %v4047_v39 = vpop.f32.mrb[9].mxu0 }
 0x150   :  { %2838 = vmatprep.mubr.msk.bf16.mxu0 %vm315_vm2, %v3471_v36 }
 0x151   :  { %v843_v42 = vpack.c.bf16 %v3957_v41, %v3955_v40  ;;  %v889_v20 = vmul.f32 %v3957_v41, %v3950_v34  ;;  %v4049_v40 = vpop.f32.mrb[10].mxu0 }
 0x152   :  { %v4051_v41 = vpop.f32.mrb[11].mxu0 }
 0x153   :  { %2879 = vmatmul.mubr.bf16.vlgmr.msra.gmra.mrb[4].mxu1 %v843_v42  ;;  %v4053_v42 = vpop.f32.mrb[12].mxu0 }
 0x154   :  { %2883 = vmatpush3.bf16.msra.mxu1 %v3864_v1  ;;  %2898 = vmatprep.mubr.msk.bf16.mxu1 %vm3742_vm0, %v4840_v0  ;;  %v4055_v43 = vpop.f32.mrb[13].mxu0 }
 0x155   :  { %2884 = vmatprep.subr.bf16.mxu1 %v4840_v0  ;;  %2839 = vmatmul.mubr.msk.bf16.gmra.mrb[52].mxu0 %vm315_vm2, %v3472_v37  ;;  %v4057_v44 = vpop.f32.mrb[14].mxu0 }
 0x156   :  { %2918 = vmatprep.mubr.msk.bf16.mxu0 %vm3742_vm0, %v4840_v0  ;;  %v4059_v45 = vpop.f32.mrb[15].mxu0 }
 0x157   :  { %v4061_v46 = vpop.f32.mrb[16].mxu0 }
 0x158   :  { %2885 = vmatpush3.bf16.msra.mxu1 %v3867_v2  ;;  %v4063_v47 = vpop.f32.mrb[17].mxu0 }
 0x159   :  { %2886 = vmatprep.subr.bf16.mxu1 %v4840_v0  ;;  %v4065_v48 = vpop.f32.mrb[18].mxu0 }
 0x15a   :  { %v4067_v49 = vpop.f32.mrb[19].mxu0 }
 0x15b   :  { %v4069_v50 = vpop.f32.mrb[20].mxu0 }
 0x15c   :  { %2887 = vmatpush3.bf16.msra.mxu1 %v3871_v4  ;;  %v4071_v51 = vpop.f32.mrb[21].mxu0 }
 0x15d   :  { %2888 = vmatprep.subr.bf16.mxu1 %v4840_v0  ;;  %v4073_v52 = vpop.f32.mrb[22].mxu0 }
 0x15e   :  { %v4075_v53 = vpop.f32.mrb[23].mxu0 }
 0x15f   :  { %v4077_v54 = vpop.f32.mrb[24].mxu0 }
 0x160   :  { %2889 = vmatpush3.bf16.msra.mxu1 %v3875_v8  ;;  %v4079_v55 = vpop.f32.mrb[25].mxu0 }
 0x161   :  { %2890 = vmatprep.subr.bf16.mxu1 %v4840_v0  ;;  %v4081_v56 = vpop.f32.mrb[26].mxu0 }
 0x162   :  { %v4083_v57 = vpop.f32.mrb[27].mxu0 }
 0x163   :  { %v4085_v58 = vpop.f32.mrb[28].mxu0 }
 0x164   :  { %2891 = vmatpush3.bf16.msra.mxu1 %v3879_v10  ;;  %v4087_v59 = vpop.f32.mrb[29].mxu0 }
 0x165   :  { %2892 = vmatprep.subr.bf16.mxu1 %v4840_v0  ;;  %v4089_v60 = vpop.f32.mrb[30].mxu0 }
 0x166   :  { %v4091_v61 = vpop.f32.mrb[31].mxu0 }
 0x168   :  { %2893 = vmatpush3.bf16.msra.mxu1 %v3885_v11  ;;  %v4093_v62 = vpop.f32.mrb[32].mxu0 }
 0x169   :  { %2894 = vmatprep.subr.bf16.mxu1 %v4840_v0  ;;  %v4095_v63 = vpop.f32.mrb[33].mxu0 }
 0x16a   :  { %v4097_v3 = vpop.f32.mrb[34].mxu0 }
 0x16c   :  { %2895 = vmatpush3.bf16.msra.mxu1 %v3891_v12 }
 0x16d   :  { %2896 = vmatprep.subr.bf16.mxu1 %v4840_v0 }
 0x170   :  { %2897 = vmatpush3.bf16.msra.mxu1 %v3897_v13 }
 0x171   :  { %2922 = vmatprep.subr.bf16.mxu1 %v4840_v0 }
 0x226   :  { %v881_v6 = vpop.f32.mrb[4].mxu1 }
 0x227   :  { %v882_v9 = vadd.f32 %v881_v6, %v447_v5  ;;  %v2880_v14 = vpop.f32.mrb[5].mxu1  ;;  %v4099_v5 = vpop.f32.mrb[35].mxu0 }
 0x228   :  { %v884_v15 = vpop.f32.mrb[6].mxu1  ;;  %v4101_v6 = vpop.f32.mrb[36].mxu0 }
 0x229   :  { %3489 = vtanh.f32 %v882_v9  ;;  %v885_v16 = vadd.f32 %v884_v15, %v450_v7  ;;  %v2881_v17 = vpop.f32.mrb[7].mxu1  ;;  %v4103_v7 = vpop.f32.mrb[37].mxu0 }
 0x22a   :  { %v4105_v9 = vpop.f32.mrb[38].mxu0 }
 0x22b   :  { %3491 = vtanh.f32 %v885_v16  ;;  %v4107_v14 = vpop.f32.mrb[39].mxu0 }
 0x22c   :  { %v4109_v15 = vpop.f32.mrb[40].mxu0 }
 0x22d   :  { %4842 = vst [vmem:[#allocation18_spill] sm:$0xff] %v4109_v15  ;;  %v4111_v16 = vpop.f32.mrb[41].mxu0 }
 0x22e   :  { %v4113_v17 = vpop.f32.mrb[42].mxu0 }
 0x22f   :  { %4843 = vst [vmem:[#allocation19_spill] sm:$0xff] %v4113_v17 }
 0x233   :  { %v3490_v18 = vpop.eup %3489 }
 0x234   :  { %v892_v21 = vmul.f32 %v3490_v18, %v3947_v33  ;;  %v4115_v18 = vpop.f32.mrb[43].mxu0 }
 0x235   :  { %v3492_v23 = vpop.eup %3491  ;;  %4844 = vst [vmem:[#allocation20_spill] sm:$0xff] %v4115_v18 }
 0x236   :  { %v893_v25 = vmul.f32 %v3492_v23, %v3947_v33  ;;  %v4011_v22 = vadd.f32 %v892_v21, %v888_v19  ;;  %v4117_v19 = vpop.f32.mrb[44].mxu0 }
 0x237   :  { %4845 = vst [vmem:[#allocation21_spill] sm:$0xff] %v4117_v19  ;;  %v4119_v21 = vpop.f32.mrb[45].mxu0 }
 0x238   :  { %v4013_v26 = vadd.f32 %v893_v25, %v889_v20  ;;  %4846 = vst [vmem:[#allocation22_spill] sm:$0xff] %v4119_v21  ;;  %v4121_v23 = vpop.f32.mrb[46].mxu0  ;;  %v455_v25 = vadd.f32 %v3943_v24, %v454_v29  ;;  %v941_v19 = vmul.f32 %v4011_v22, %v3950_v34 }
 0x239   :  { %4847 = vst [vmem:[#allocation23_spill] sm:$0xff] %v4121_v23  ;;  %v4123_v20 = vpop.f32.mrb[47].mxu0 }
 0x23a   :  { %v896_v27 = vpack.c.bf16 %v4013_v26, %v4011_v22  ;;  %4848 = vst [vmem:[#allocation24_spill] sm:$0xff] %v4123_v20  ;;  %v942_v29 = vmul.f32 %v4013_v26, %v3950_v34 }
 0x23c   :  { %2899 = vmatmul.mubr.bf16.vlgmr.msra.gmra.mrb[8].mxu1 %v896_v27 }
 0x23d   :  { %2923 = vmatpush3.bf16.msra.mxu1 %v3864_v1  ;;  %2938 = vmatprep.mubr.msk.bf16.mxu1 %vm3742_vm0, %v4840_v0 }
 0x23e   :  { %2924 = vmatprep.subr.bf16.mxu1 %v4840_v0 }
 0x241   :  { %2925 = vmatpush3.bf16.msra.mxu1 %v3867_v2 }
 0x242   :  { %2926 = vmatprep.subr.bf16.mxu1 %v4840_v0 }
 0x245   :  { %2927 = vmatpush3.bf16.msra.mxu1 %v3871_v4 }
 0x246   :  { %2928 = vmatprep.subr.bf16.mxu1 %v4840_v0 }
 0x249   :  { %2929 = vmatpush3.bf16.msra.mxu1 %v3875_v8 }
 0x24a   :  { %2930 = vmatprep.subr.bf16.mxu1 %v4840_v0 }
 0x24d   :  { %2931 = vmatpush3.bf16.msra.mxu1 %v3879_v10 }
 0x24e   :  { %2932 = vmatprep.subr.bf16.mxu1 %v4840_v0 }
 0x251   :  { %2933 = vmatpush3.bf16.msra.mxu1 %v3885_v11 }
 0x252   :  { %2934 = vmatprep.subr.bf16.mxu1 %v4840_v0 }
 0x255   :  { %2935 = vmatpush3.bf16.msra.mxu1 %v3891_v12 }
 0x256   :  { %2936 = vmatprep.subr.bf16.mxu1 %v4840_v0 }
 0x259   :  { %2937 = vmatpush3.bf16.msra.mxu1 %v3897_v13 }
 0x25a   :  { %2962 = vmatprep.subr.bf16.mxu1 %v4840_v0 }
 0x30f   :  { %v934_v27 = vpop.f32.mrb[8].mxu1 }
 0x310   :  { %v935_v35 = vadd.f32 %v934_v27, %v455_v25  ;;  %v2900_v36 = vpop.f32.mrb[9].mxu1 }
 0x311   :  { %v937_v37 = vpop.f32.mrb[10].mxu1  ;;  %v466_v36 = vadd.f32 %v4037_v30, %v3943_v24 }
 0x312   :  { %3493 = vtanh.f32 %v935_v35  ;;  %v938_v0 = vadd.f32 %v937_v37, %v458_v32  ;;  %v2901_v17 = vpop.f32.mrb[11].mxu1  ;;  %v463_v32 = vadd.f32 %v4035_v28, %v3943_v24 }
 0x313   :  { %v4849_v17 = vmov 0.0  }
 0x314   :  { %3495 = vtanh.f32 %v938_v0  ;;  %v4151_v0 = vpop.f32.mrb[48].mxu0 }
 0x315   :  { %4850 = vst [vmem:[#allocation25_spill] sm:$0xff] %v4151_v0  ;;  %v4153_v22 = vpop.f32.mrb[49].mxu0 }
 0x316   :  { %4851 = vst [vmem:[#allocation26_spill] sm:$0xff] %v4153_v22  ;;  %v4155_v26 = vpop.f32.mrb[50].mxu0 }
 0x317   :  { %4852 = vst [vmem:[#allocation27_spill] sm:$0xff] %v4155_v26 }
 0x31c   :  { %v3494_v15 = vpop.eup %3493 }
 0x31d   :  { %v945_v23 = vmul.f32 %v3494_v15, %v3947_v33  ;;  %v4157_v15 = vpop.f32.mrb[51].mxu0 }
 0x31e   :  { %v3496_v21 = vpop.eup %3495  ;;  %4853 = vst [vmem:[#allocation28_spill] sm:$0xff] %v4157_v15 }
 0x31f   :  { %v946_v20 = vmul.f32 %v3496_v21, %v3947_v33  ;;  %v947_v31 = vadd.f32 %v945_v23, %v941_v19  ;;  %v4159_v19 = vpop.f32.mrb[52].mxu0 }
 0x320   :  { %4854 = vst [vmem:[#allocation29_spill] sm:$0xff] %v4159_v19  ;;  %v4161_v21 = vpop.f32.mrb[53].mxu0 }
 0x321   :  { %v948_v25 = vadd.f32 %v946_v20, %v942_v29  ;;  %4855 = vst [vmem:[#allocation30_spill] sm:$0xff] %v4161_v21  ;;  %v4163_v23 = vpop.f32.mrb[54].mxu0  ;;  %v994_v21 = vmul.f32 %v947_v31, %v3950_v34 }
 0x322   :  { %4856 = vst [vmem:[#allocation31_spill] sm:$0xff] %v4163_v23  ;;  %v4165_v20 = vpop.f32.mrb[55].mxu0 }
 0x323   :  { %v949_v27 = vpack.c.bf16 %v948_v25, %v947_v31  ;;  %4857 = vst [vmem:[#allocation32_spill] sm:$0xff] %v4165_v20  ;;  %v995_v15 = vmul.f32 %v948_v25, %v3950_v34  ;;  %v471_v31 = vadd.f32 %v3943_v24, %v4047_v39 }
 0x325   :  { %2919 = vmatmul.mubr.bf16.vlgmr.msra.gmra.mrb[56].mxu0 %v949_v27 }
 0x326   :  { %2943 = vmatpush3.bf16.msra.mxu0 %v3864_v1  ;;  %2958 = vmatprep.mubr.msk.bf16.mxu0 %vm3742_vm0, %v4849_v17 }
 0x327   :  { %2944 = vmatprep.subr.bf16.mxu0 %v4849_v17 }
 0x32a   :  { %2945 = vmatpush3.bf16.msra.mxu0 %v3867_v2 }
 0x32b   :  { %2946 = vmatprep.subr.bf16.mxu0 %v4849_v17 }
 0x32e   :  { %2947 = vmatpush3.bf16.msra.mxu0 %v3871_v4 }
 0x32f   :  { %2948 = vmatprep.subr.bf16.mxu0 %v4849_v17 }
 0x332   :  { %2949 = vmatpush3.bf16.msra.mxu0 %v3875_v8 }
 0x333   :  { %2950 = vmatprep.subr.bf16.mxu0 %v4849_v17 }
 0x336   :  { %2951 = vmatpush3.bf16.msra.mxu0 %v3879_v10 }
 0x337   :  { %2952 = vmatprep.subr.bf16.mxu0 %v4849_v17 }
 0x33a   :  { %2953 = vmatpush3.bf16.msra.mxu0 %v3885_v11 }
 0x33b   :  { %2954 = vmatprep.subr.bf16.mxu0 %v4849_v17 }
 0x33e   :  { %2955 = vmatpush3.bf16.msra.mxu0 %v3891_v12 }
 0x33f   :  { %2956 = vmatprep.subr.bf16.mxu0 %v4849_v17 }
 0x342   :  { %2957 = vmatpush3.bf16.msra.mxu0 %v3897_v13 }
 0x343   :  { %2982 = vmatprep.subr.bf16.mxu0 %v4849_v17 }
 0x3f8   :  { %v987_v35 = vpop.f32.mrb[56].mxu0 }
 0x3f9   :  { %v988_v37 = vadd.f32 %v987_v35, %v463_v32  ;;  %v2920_v29 = vpop.f32.mrb[57].mxu0 }
 0x3fa   :  { %v990_v27 = vpop.f32.mrb[58].mxu0 }
 0x3fb   :  { %3497 = vtanh.f32 %v988_v37  ;;  %v991_v26 = vadd.f32 %v990_v27, %v466_v36  ;;  %v2921_v0 = vpop.f32.mrb[59].mxu0 }
 0x3fc   :  { %v474_v0 = vadd.f32 %v3943_v24, %v4051_v41 }
 0x3fd   :  { %3499 = vtanh.f32 %v991_v26 }
 0x405   :  { %v3498_v19 = vpop.eup %3497 }
 0x406   :  { %v998_v23 = vmul.f32 %v3498_v19, %v3947_v33 }
 0x407   :  { %v3500_v20 = vpop.eup %3499 }
 0x408   :  { %v999_v28 = vmul.f32 %v3500_v20, %v3947_v33  ;;  %v1000_v22 = vadd.f32 %v998_v23, %v994_v21 }
 0x40a   :  { %v1001_v18 = vadd.f32 %v999_v28, %v995_v15  ;;  %v1047_v32 = vmul.f32 %v1000_v22, %v3950_v34  ;;  %v482_v28 = vadd.f32 %v4049_v40, %v3943_v24 }
 0x40c   :  { %v1002_v30 = vpack.c.bf16 %v1001_v18, %v1000_v22  ;;  %v1048_v37 = vmul.f32 %v1001_v18, %v3950_v34  ;;  %v479_v18 = vadd.f32 %v4045_v38, %v3943_v24 }
 0x40e   :  { %2939 = vmatmul.mubr.bf16.vlgmr.msra.gmra.mrb[12].mxu1 %v1002_v30 }
 0x40f   :  { %2963 = vmatpush3.bf16.msra.mxu1 %v3864_v1  ;;  %2978 = vmatprep.mubr.msk.bf16.mxu1 %vm3742_vm0, %v4849_v17 }
 0x410   :  { %2964 = vmatprep.subr.bf16.mxu1 %v4849_v17 }
 0x413   :  { %2965 = vmatpush3.bf16.msra.mxu1 %v3867_v2 }
 0x414   :  { %2966 = vmatprep.subr.bf16.mxu1 %v4849_v17 }
 0x417   :  { %2967 = vmatpush3.bf16.msra.mxu1 %v3871_v4 }
 0x418   :  { %2968 = vmatprep.subr.bf16.mxu1 %v4849_v17 }
 0x41b   :  { %2969 = vmatpush3.bf16.msra.mxu1 %v3875_v8 }
 0x41c   :  { %2970 = vmatprep.subr.bf16.mxu1 %v4849_v17 }
 0x41f   :  { %2971 = vmatpush3.bf16.msra.mxu1 %v3879_v10 }
 0x420   :  { %2972 = vmatprep.subr.bf16.mxu1 %v4849_v17 }
 0x423   :  { %2973 = vmatpush3.bf16.msra.mxu1 %v3885_v11 }
 0x424   :  { %2974 = vmatprep.subr.bf16.mxu1 %v4849_v17 }
 0x427   :  { %2975 = vmatpush3.bf16.msra.mxu1 %v3891_v12 }
 0x428   :  { %2976 = vmatprep.subr.bf16.mxu1 %v4849_v17 }
 0x42b   :  { %2977 = vmatpush3.bf16.msra.mxu1 %v3897_v13 }
 0x42c   :  { %3002 = vmatprep.subr.bf16.mxu1 %v4849_v17 }
 0x4e1   :  { %v1040_v25 = vpop.f32.mrb[12].mxu1 }
 0x4e2   :  { %v1041_v26 = vadd.f32 %v1040_v25, %v471_v31  ;;  %v2940_v15 = vpop.f32.mrb[13].mxu1 }
 0x4e3   :  { %v1043_v19 = vpop.f32.mrb[14].mxu1 }
 0x4e4   :  { %3501 = vtanh.f32 %v1041_v26  ;;  %v1044_v21 = vadd.f32 %v1043_v19, %v474_v0  ;;  %v2941_v23 = vpop.f32.mrb[15].mxu1 }
 0x4e6   :  { %3503 = vtanh.f32 %v1044_v21 }
 0x4ee   :  { %v3502_v20 = vpop.eup %3501 }
 0x4ef   :  { %v1051_v35 = vmul.f32 %v3502_v20, %v3947_v33 }
 0x4f0   :  { %v3504_v36 = vpop.eup %3503 }
 0x4f1   :  { %v1052_v39 = vmul.f32 %v3504_v36, %v3947_v33  ;;  %v1053_v29 = vadd.f32 %v1051_v35, %v1047_v32 }
 0x4f3   :  { %v1054_v27 = vadd.f32 %v1052_v39, %v1048_v37  ;;  %v1100_v19 = vmul.f32 %v1053_v29, %v3950_v34 }
 0x4f5   :  { %v1055_v41 = vpack.c.bf16 %v1054_v27, %v1053_v29  ;;  %v1101_v20 = vmul.f32 %v1054_v27, %v3950_v34 }
 0x4f7   :  { %2959 = vmatmul.mubr.bf16.vlgmr.msra.gmra.mrb[60].mxu0 %v1055_v41 }
 0x4f8   :  { %2983 = vmatpush3.bf16.msra.mxu0 %v3864_v1  ;;  %2998 = vmatprep.mubr.msk.bf16.mxu0 %vm3742_vm0, %v4849_v17 }
 0x4f9   :  { %2984 = vmatprep.subr.bf16.mxu0 %v4849_v17 }
 0x4fc   :  { %2985 = vmatpush3.bf16.msra.mxu0 %v3867_v2 }
 0x4fd   :  { %2986 = vmatprep.subr.bf16.mxu0 %v4849_v17 }
 0x500   :  { %2987 = vmatpush3.bf16.msra.mxu0 %v3871_v4 }
 0x501   :  { %2988 = vmatprep.subr.bf16.mxu0 %v4849_v17 }
 0x504   :  { %2989 = vmatpush3.bf16.msra.mxu0 %v3875_v8 }
 0x505   :  { %2990 = vmatprep.subr.bf16.mxu0 %v4849_v17 }
 0x508   :  { %2991 = vmatpush3.bf16.msra.mxu0 %v3879_v10 }
 0x509   :  { %2992 = vmatprep.subr.bf16.mxu0 %v4849_v17 }
 0x50c   :  { %2993 = vmatpush3.bf16.msra.mxu0 %v3885_v11 }
 0x50d   :  { %2994 = vmatprep.subr.bf16.mxu0 %v4849_v17 }
 0x510   :  { %2995 = vmatpush3.bf16.msra.mxu0 %v3891_v12 }
 0x511   :  { %2996 = vmatprep.subr.bf16.mxu0 %v4849_v17 }
 0x514   :  { %2997 = vmatpush3.bf16.msra.mxu0 %v3897_v13 }
 0x515   :  { %3022 = vmatprep.subr.bf16.mxu0 %v4849_v17 }
 0x5ca   :  { %v1093_v22 = vpop.f32.mrb[60].mxu0 }
 0x5cb   :  { %v1094_v30 = vadd.f32 %v1093_v22, %v479_v18  ;;  %v2960_v31 = vpop.f32.mrb[61].mxu0 }
 0x5cc   :  { %v1096_v25 = vpop.f32.mrb[62].mxu0 }
 0x5cd   :  { %3505 = vtanh.f32 %v1094_v30  ;;  %v1097_v0 = vadd.f32 %v1096_v25, %v482_v28  ;;  %v2961_v26 = vpop.f32.mrb[63].mxu0 }
 0x5ce   :  { %v4259_v26 = vld [vmem:[#allocation8 + $0x8] sm:$0xff]  }
 0x5cf   :  { %3507 = vtanh.f32 %v1097_v0  ;;  %v4253_v0 = vld [vmem:[#allocation8] sm:$0xff]  }
 0x5d7   :  { %v3506_v15 = vpop.eup %3505 }
 0x5d8   :  { %v1104_v21 = vmul.f32 %v3506_v15, %v3947_v33  ;;  %v4263_v15 = vld [vmem:[#allocation8 + $0x10] sm:$0xff]  }
 0x5d9   :  { %v3508_v23 = vpop.eup %3507 }
 0x5da   :  { %v1105_v38 = vmul.f32 %v3508_v23, %v3947_v33  ;;  %v1106_v32 = vadd.f32 %v1104_v21, %v1100_v19 }
 0x5dc   :  { %v1107_v35 = vadd.f32 %v1105_v38, %v1101_v20  ;;  %v1153_v18 = vmul.f32 %v1106_v32, %v3950_v34 }
 0x5de   :  { %v1108_v40 = vpack.c.bf16 %v1107_v35, %v1106_v32  ;;  %v1154_v30 = vmul.f32 %v1107_v35, %v3950_v34 }
 0x5e0   :  { %2979 = vmatmul.mubr.bf16.vlgmr.msra.gmra.mrb[16].mxu1 %v1108_v40 }
 0x5e1   :  { %3003 = vmatpush3.bf16.msra.mxu1 %v3864_v1  ;;  %3018 = vmatprep.mubr.msk.bf16.mxu1 %vm3742_vm0, %v4849_v17  ;;  %v487_v1 = vadd.f32 %v3943_v24, %v4055_v43 }
 0x5e2   :  { %3004 = vmatprep.subr.bf16.mxu1 %v4849_v17 }
 0x5e5   :  { %3005 = vmatpush3.bf16.msra.mxu1 %v3867_v2 }
 0x5e6   :  { %3006 = vmatprep.subr.bf16.mxu1 %v4849_v17 }
 0x5e9   :  { %3007 = vmatpush3.bf16.msra.mxu1 %v3871_v4  ;;  %v490_v4 = vadd.f32 %v3943_v24, %v4059_v45 }
 0x5ea   :  { %3008 = vmatprep.subr.bf16.mxu1 %v4849_v17 }
 0x5ed   :  { %3009 = vmatpush3.bf16.msra.mxu1 %v3875_v8 }
 0x5ee   :  { %3010 = vmatprep.subr.bf16.mxu1 %v4849_v17 }
 0x5f1   :  { %3011 = vmatpush3.bf16.msra.mxu1 %v3879_v10 }
 0x5f2   :  { %3012 = vmatprep.subr.bf16.mxu1 %v4849_v17 }
 0x5f5   :  { %3013 = vmatpush3.bf16.msra.mxu1 %v3885_v11 }
 0x5f6   :  { %3014 = vmatprep.subr.bf16.mxu1 %v4849_v17 }
 0x5f9   :  { %3015 = vmatpush3.bf16.msra.mxu1 %v3891_v12 }
 0x5fa   :  { %3016 = vmatprep.subr.bf16.mxu1 %v4849_v17 }
 0x5fd   :  { %3017 = vmatpush3.bf16.msra.mxu1 %v3897_v13 }
 0x5fe   :  { %3042 = vmatprep.subr.bf16.mxu1 %v4849_v17 }
 0x6b3   :  { %v1146_v2 = vpop.f32.mrb[16].mxu1 }
 0x6b4   :  { %v1147_v36 = vadd.f32 %v1146_v2, %v487_v1  ;;  %v2980_v37 = vpop.f32.mrb[17].mxu1 }
 0x6b5   :  { %v1149_v39 = vpop.f32.mrb[18].mxu1 }
 0x6b6   :  { %3509 = vtanh.f32 %v1147_v36  ;;  %v1150_v29 = vadd.f32 %v1149_v39, %v490_v4  ;;  %v2981_v27 = vpop.f32.mrb[19].mxu1  ;;  %v4293_v39 = vld [vmem:[#allocation8 + $0x18] sm:$0xff]  }
 0x6b7   :  { %v503_v27 = vadd.f32 %v3943_v24, %v4063_v47 }
 0x6b8   :  { %3511 = vtanh.f32 %v1150_v29  ;;  %v4297_v29 = vld [vmem:[#allocation8 + $0x20] sm:$0xff]  }
 0x6c0   :  { %v3510_v41 = vpop.eup %3509 }
 0x6c1   :  { %v1157_v22 = vmul.f32 %v3510_v41, %v3947_v33 }
 0x6c2   :  { %v3512_v28 = vpop.eup %3511 }
 0x6c3   :  { %v1158_v43 = vmul.f32 %v3512_v28, %v3947_v33  ;;  %v1159_v31 = vadd.f32 %v1157_v22, %v1153_v18  ;;  %v506_v18 = vadd.f32 %v3943_v24, %v4067_v49 }
 0x6c5   :  { %v1160_v25 = vadd.f32 %v1158_v43, %v1154_v30  ;;  %v1206_v40 = vmul.f32 %v1159_v31, %v3950_v34 }
 0x6c7   :  { %v1161_v45 = vpack.c.bf16 %v1160_v25, %v1159_v31  ;;  %v1207_v4 = vmul.f32 %v1160_v25, %v3950_v34 }
 0x6c9   :  { %2999 = vmatmul.mubr.bf16.vlgmr.msra.gmra.mrb[64].mxu0 %v1161_v45 }
 0x6ca   :  { %3023 = vmatpush3.bf16.msra.mxu0 %v4253_v0  ;;  %3038 = vmatprep.mubr.msk.bf16.mxu0 %vm3742_vm0, %v4849_v17 }
 0x6cb   :  { %3024 = vmatprep.subr.bf16.mxu0 %v4849_v17 }
 0x6ce   :  { %3025 = vmatpush3.bf16.msra.mxu0 %v4259_v26 }
 0x6cf   :  { %3026 = vmatprep.subr.bf16.mxu0 %v4849_v17 }
 0x6d2   :  { %3027 = vmatpush3.bf16.msra.mxu0 %v4263_v15 }
 0x6d3   :  { %3028 = vmatprep.subr.bf16.mxu0 %v4849_v17 }
 0x6d6   :  { %3029 = vmatpush3.bf16.msra.mxu0 %v3875_v8  ;;  %v495_v8 = vadd.f32 %v4053_v42, %v3943_v24 }
 0x6d7   :  { %3030 = vmatprep.subr.bf16.mxu0 %v4849_v17 }
 0x6da   :  { %3031 = vmatpush3.bf16.msra.mxu0 %v3879_v10  ;;  %v498_v10 = vadd.f32 %v4057_v44, %v3943_v24 }
 0x6db   :  { %3032 = vmatprep.subr.bf16.mxu0 %v4849_v17 }
 0x6de   :  { %3033 = vmatpush3.bf16.msra.mxu0 %v3885_v11 }
 0x6df   :  { %3034 = vmatprep.subr.bf16.mxu0 %v4849_v17 }
 0x6e2   :  { %3035 = vmatpush3.bf16.msra.mxu0 %v3891_v12 }
 0x6e3   :  { %3036 = vmatprep.subr.bf16.mxu0 %v4849_v17 }
 0x6e6   :  { %3037 = vmatpush3.bf16.msra.mxu0 %v3897_v13 }
 0x6e7   :  { %3062 = vmatprep.subr.bf16.mxu0 %v4849_v17 }
 0x79c   :  { %v1199_v19 = vpop.f32.mrb[64].mxu0 }
 0x79d   :  { %v1200_v21 = vadd.f32 %v1199_v19, %v495_v8  ;;  %v3000_v23 = vpop.f32.mrb[65].mxu0 }
 0x79e   :  { %v1202_v20 = vpop.f32.mrb[66].mxu0  ;;  %v4335_v23 = vld [vmem:[#allocation8 + $0x38] sm:$0xff]  }
 0x79f   :  { %3513 = vtanh.f32 %v1200_v21  ;;  %v1203_v38 = vadd.f32 %v1202_v20, %v498_v10  ;;  %v3001_v32 = vpop.f32.mrb[67].mxu0  ;;  %v4327_v10 = vld [vmem:[#allocation8 + $0x28] sm:$0xff]   ;;  %v4331_v21 = vld [vmem:[#allocation8 + $0x30] sm:$0xff]   ;;  %v511_v20 = vadd.f32 %v4061_v46, %v3943_v24 }
 0x7a0   :  { %v514_v32 = vadd.f32 %v4065_v48, %v3943_v24 }
 0x7a1   :  { %3515 = vtanh.f32 %v1203_v38 }
 0x7a9   :  { %v3514_v35 = vpop.eup %3513 }
 0x7aa   :  { %v1210_v1 = vmul.f32 %v3514_v35, %v3947_v33 }
 0x7ab   :  { %v3516_v2 = vpop.eup %3515 }
 0x7ac   :  { %v1211_v42 = vmul.f32 %v3516_v2, %v3947_v33  ;;  %v1212_v36 = vadd.f32 %v1210_v1, %v1206_v40 }
 0x7ae   :  { %v1213_v37 = vadd.f32 %v1211_v42, %v1207_v4  ;;  %v1259_v31 = vmul.f32 %v1212_v36, %v3950_v34 }
 0x7b0   :  { %v1214_v44 = vpack.c.bf16 %v1213_v37, %v1212_v36  ;;  %v1260_v45 = vmul.f32 %v1213_v37, %v3950_v34 }
 0x7b2   :  { %3019 = vmatmul.mubr.bf16.vlgmr.msra.gmra.mrb[20].mxu1 %v1214_v44 }
 0x7b3   :  { %3043 = vmatpush3.bf16.msra.mxu1 %v4253_v0  ;;  %3058 = vmatprep.mubr.msk.bf16.mxu1 %vm3742_vm0, %v4849_v17 }
 0x7b4   :  { %3044 = vmatprep.subr.bf16.mxu1 %v4849_v17 }
 0x7b7   :  { %3045 = vmatpush3.bf16.msra.mxu1 %v4259_v26 }
 0x7b8   :  { %3046 = vmatprep.subr.bf16.mxu1 %v4849_v17 }
 0x7bb   :  { %3047 = vmatpush3.bf16.msra.mxu1 %v4263_v15 }
 0x7bc   :  { %3048 = vmatprep.subr.bf16.mxu1 %v4849_v17 }
 0x7bf   :  { %3049 = vmatpush3.bf16.msra.mxu1 %v4293_v39 }
 0x7c0   :  { %3050 = vmatprep.subr.bf16.mxu1 %v4849_v17 }
 0x7c3   :  { %3051 = vmatpush3.bf16.msra.mxu1 %v4297_v29 }
 0x7c4   :  { %3052 = vmatprep.subr.bf16.mxu1 %v4849_v17 }
 0x7c7   :  { %3053 = vmatpush3.bf16.msra.mxu1 %v3885_v11 }
 0x7c8   :  { %3054 = vmatprep.subr.bf16.mxu1 %v4849_v17 }
 0x7cb   :  { %3055 = vmatpush3.bf16.msra.mxu1 %v3891_v12 }
 0x7cc   :  { %3056 = vmatprep.subr.bf16.mxu1 %v4849_v17 }
 0x7cf   :  { %3057 = vmatpush3.bf16.msra.mxu1 %v3897_v13 }
 0x7d0   :  { %3082 = vmatprep.subr.bf16.mxu1 %v4849_v17 }
 0x885   :  { %v1252_v41 = vpop.f32.mrb[20].mxu1 }
 0x886   :  { %v1253_v22 = vadd.f32 %v1252_v41, %v503_v27  ;;  %v3020_v28 = vpop.f32.mrb[21].mxu1 }
 0x887   :  { %v1255_v11 = vpop.f32.mrb[22].mxu1 }
 0x888   :  { %3517 = vtanh.f32 %v1253_v22  ;;  %v1256_v30 = vadd.f32 %v1255_v11, %v506_v18  ;;  %v3021_v43 = vpop.f32.mrb[23].mxu1  ;;  %v519_v22 = vadd.f32 %v3943_v24, %v4071_v51  ;;  %v522_v11 = vadd.f32 %v3943_v24, %v4075_v53 }
 0x88a   :  { %3519 = vtanh.f32 %v1256_v30 }
 0x892   :  { %v3518_v12 = vpop.eup %3517 }
 0x893   :  { %v1263_v13 = vmul.f32 %v3518_v12, %v3947_v33 }
 0x894   :  { %v3520_v25 = vpop.eup %3519 }
 0x895   :  { %v1264_v47 = vmul.f32 %v3520_v25, %v3947_v33  ;;  %v1265_v8 = vadd.f32 %v1263_v13, %v1259_v31 }
 0x897   :  { %v1266_v19 = vadd.f32 %v1264_v47, %v1260_v45  ;;  %v1312_v36 = vmul.f32 %v1265_v8, %v3950_v34 }
 0x899   :  { %v1267_v49 = vpack.c.bf16 %v1266_v19, %v1265_v8  ;;  %v1313_v27 = vmul.f32 %v1266_v19, %v3950_v34 }
 0x89b   :  { %3039 = vmatmul.mubr.bf16.vlgmr.msra.gmra.mrb[68].mxu0 %v1267_v49 }
 0x89c   :  { %3063 = vmatpush3.bf16.msra.mxu0 %v4253_v0  ;;  %3078 = vmatprep.mubr.msk.bf16.mxu0 %vm3742_vm0, %v4849_v17 }
 0x89d   :  { %3064 = vmatprep.subr.bf16.mxu0 %v4849_v17 }
 0x8a0   :  { %3065 = vmatpush3.bf16.msra.mxu0 %v4259_v26 }
 0x8a1   :  { %3066 = vmatprep.subr.bf16.mxu0 %v4849_v17 }
 0x8a4   :  { %3067 = vmatpush3.bf16.msra.mxu0 %v4263_v15 }
 0x8a5   :  { %3068 = vmatprep.subr.bf16.mxu0 %v4849_v17 }
 0x8a8   :  { %3069 = vmatpush3.bf16.msra.mxu0 %v4293_v39 }
 0x8a9   :  { %3070 = vmatprep.subr.bf16.mxu0 %v4849_v17 }
 0x8ac   :  { %3071 = vmatpush3.bf16.msra.mxu0 %v4297_v29 }
 0x8ad   :  { %3072 = vmatprep.subr.bf16.mxu0 %v4849_v17 }
 0x8b0   :  { %3073 = vmatpush3.bf16.msra.mxu0 %v4327_v10 }
 0x8b1   :  { %3074 = vmatprep.subr.bf16.mxu0 %v4849_v17 }
 0x8b4   :  { %3075 = vmatpush3.bf16.msra.mxu0 %v4331_v21 }
 0x8b5   :  { %3076 = vmatprep.subr.bf16.mxu0 %v4849_v17 }
 0x8b8   :  { %3077 = vmatpush3.bf16.msra.mxu0 %v4335_v23 }
 0x8b9   :  { %3102 = vmatprep.subr.bf16.mxu0 %v4849_v17 }
 0x96e   :  { %v1305_v38 = vpop.f32.mrb[68].mxu0 }
 0x96f   :  { %v1306_v35 = vadd.f32 %v1305_v38, %v511_v20  ;;  %v3040_v40 = vpop.f32.mrb[69].mxu0 }
 0x970   :  { %v1308_v1 = vpop.f32.mrb[70].mxu0 }
 0x971   :  { %3521 = vtanh.f32 %v1306_v35  ;;  %v1309_v2 = vadd.f32 %v1308_v1, %v514_v32  ;;  %v3041_v4 = vpop.f32.mrb[71].mxu0 }
 0x973   :  { %3523 = vtanh.f32 %v1309_v2 }
 0x97b   :  { %v3522_v42 = vpop.eup %3521 }
 0x97c   :  { %v1316_v37 = vmul.f32 %v3522_v42, %v3947_v33 }
 0x97d   :  { %v3524_v44 = vpop.eup %3523 }
 0x97e   :  { %v1317_v46 = vmul.f32 %v3524_v44, %v3947_v33  ;;  %v1318_v41 = vadd.f32 %v1316_v37, %v1312_v36  ;;  %v4401_v37 = vld [vmem:[#allocation3] ss:$0 sm:$0xff] }
 0x980   :  { %v1319_v18 = vadd.f32 %v1317_v46, %v1313_v27  ;;  %v1365_v45 = vmul.f32 %v1318_v41, %v3950_v34 }
 0x982   :  { %v1320_v48 = vpack.c.bf16 %v1319_v18, %v1318_v41  ;;  %v1366_v19 = vmul.f32 %v1319_v18, %v3950_v34 }
 0x984   :  { %3059 = vmatmul.mubr.bf16.vlgmr.msra.gmra.mrb[24].mxu1 %v1320_v48 }
 0x985   :  { %3083 = vmatpush3.bf16.msra.mxu1 %v4253_v0  ;;  %3098 = vmatprep.mubr.msk.bf16.mxu1 %vm3742_vm0, %v4849_v17 }
 0x986   :  { %3084 = vmatprep.subr.bf16.mxu1 %v4849_v17 }
 0x989   :  { %3085 = vmatpush3.bf16.msra.mxu1 %v4259_v26 }
 0x98a   :  { %3086 = vmatprep.subr.bf16.mxu1 %v4849_v17 }
 0x98d   :  { %3087 = vmatpush3.bf16.msra.mxu1 %v4263_v15 }
 0x98e   :  { %3088 = vmatprep.subr.bf16.mxu1 %v4849_v17 }
 0x991   :  { %3089 = vmatpush3.bf16.msra.mxu1 %v4293_v39 }
 0x992   :  { %3090 = vmatprep.subr.bf16.mxu1 %v4849_v17 }
 0x995   :  { %3091 = vmatpush3.bf16.msra.mxu1 %v4297_v29 }
 0x996   :  { %3092 = vmatprep.subr.bf16.mxu1 %v4849_v17 }
 0x999   :  { %3093 = vmatpush3.bf16.msra.mxu1 %v4327_v10 }
 0x99a   :  { %3094 = vmatprep.subr.bf16.mxu1 %v4849_v17 }
 0x99d   :  { %3095 = vmatpush3.bf16.msra.mxu1 %v4331_v21 }
 0x99e   :  { %3096 = vmatprep.subr.bf16.mxu1 %v4849_v17 }
 0x9a1   :  { %3097 = vmatpush3.bf16.msra.mxu1 %v4335_v23 }
 0x9a2   :  { %3122 = vmatprep.subr.bf16.mxu1 %v4849_v17 }
 0xa57   :  { %v1358_v28 = vpop.f32.mrb[24].mxu1 }
 0xa58   :  { %v1359_v30 = vadd.f32 %v1358_v28, %v519_v22  ;;  %v3060_v43 = vpop.f32.mrb[25].mxu1 }
 0xa59   :  { %v1361_v12 = vpop.f32.mrb[26].mxu1 }
 0xa5a   :  { %3525 = vtanh.f32 %v1359_v30  ;;  %v1362_v31 = vadd.f32 %v1361_v12, %v522_v11  ;;  %v3061_v13 = vpop.f32.mrb[27].mxu1 }
 0xa5c   :  { %3527 = vtanh.f32 %v1362_v31 }
 0xa64   :  { %v3526_v25 = vpop.eup %3525 }
 0xa65   :  { %v1369_v47 = vmul.f32 %v3526_v25, %v3947_v33 }
 0xa66   :  { %v3528_v8 = vpop.eup %3527 }
 0xa67   :  { %v1370_v51 = vmul.f32 %v3528_v8, %v3947_v33  ;;  %v1371_v49 = vadd.f32 %v1369_v47, %v1365_v45  ;;  %v4394_v33 = vld [vmem:[%s4835_s3] ss:$0 sm:$0xff] }
 0xa68   :  { %v527_v53 = vadd.f32 %v4394_v33, %v4069_v50  ;;  %v530_v32 = vadd.f32 %v4394_v33, %v4073_v52  ;;  %v535_v48 = vadd.f32 %v4394_v33, %v4079_v55  ;;  %v538_v28 = vadd.f32 %v4394_v33, %v4083_v57 }
 0xa69   :  { %v1372_v20 = vadd.f32 %v1370_v51, %v1366_v19  ;;  %v1418_v36 = vmul.f32 %v1371_v49, %v3950_v34 }
 0xa6b   :  { %v1373_v24 = vpack.c.bf16 %v1372_v20, %v1371_v49  ;;  %v1419_v50 = vmul.f32 %v1372_v20, %v3950_v34  ;;  %v543_v49 = vadd.f32 %v4394_v33, %v4077_v54 }
 0xa6d   :  { %3079 = vmatmul.mubr.bf16.vlgmr.msra.gmra.mrb[72].mxu0 %v1373_v24  ;;  %v546_v24 = vadd.f32 %v4394_v33, %v4081_v56 }
 0xa6e   :  { %3103 = vmatpush3.bf16.msra.mxu0 %v4253_v0  ;;  %3118 = vmatprep.mubr.msk.bf16.mxu0 %vm3742_vm0, %v4849_v17 }
 0xa6f   :  { %3104 = vmatprep.subr.bf16.mxu0 %v4849_v17 }
 0xa72   :  { %3105 = vmatpush3.bf16.msra.mxu0 %v4259_v26 }
 0xa73   :  { %3106 = vmatprep.subr.bf16.mxu0 %v4849_v17 }
 0xa76   :  { %3107 = vmatpush3.bf16.msra.mxu0 %v4263_v15 }
 0xa77   :  { %3108 = vmatprep.subr.bf16.mxu0 %v4849_v17 }
 0xa7a   :  { %3109 = vmatpush3.bf16.msra.mxu0 %v4293_v39 }
 0xa7b   :  { %3110 = vmatprep.subr.bf16.mxu0 %v4849_v17 }
 0xa7e   :  { %3111 = vmatpush3.bf16.msra.mxu0 %v4297_v29 }
 0xa7f   :  { %3112 = vmatprep.subr.bf16.mxu0 %v4849_v17 }
 0xa82   :  { %3113 = vmatpush3.bf16.msra.mxu0 %v4327_v10 }
 0xa83   :  { %3114 = vmatprep.subr.bf16.mxu0 %v4849_v17 }
 0xa86   :  { %3115 = vmatpush3.bf16.msra.mxu0 %v4331_v21 }
 0xa87   :  { %3116 = vmatprep.subr.bf16.mxu0 %v4849_v17 }
 0xa8a   :  { %3117 = vmatpush3.bf16.msra.mxu0 %v4335_v23 }
 0xa8b   :  { %3142 = vmatprep.subr.bf16.mxu0 %v4849_v17 }
 0xb40   :  { %v1411_v38 = vpop.f32.mrb[72].mxu0 }
 0xb41   :  { %v1412_v35 = vadd.f32 %v1411_v38, %v527_v53  ;;  %v3080_v40 = vpop.f32.mrb[73].mxu0 }
 0xb42   :  { %v1414_v1 = vpop.f32.mrb[74].mxu0 }
 0xb43   :  { %3529 = vtanh.f32 %v1412_v35  ;;  %v1415_v2 = vadd.f32 %v1414_v1, %v530_v32  ;;  %v3081_v4 = vpop.f32.mrb[75].mxu0 }
 0xb45   :  { %3531 = vtanh.f32 %v1415_v2 }
 0xb4d   :  { %v3530_v42 = vpop.eup %3529 }
 0xb4e   :  { %v1422_v44 = vmul.f32 %v4401_v37, %v3530_v42 }
 0xb4f   :  { %v3532_v27 = vpop.eup %3531 }
 0xb50   :  { %v1423_v46 = vmul.f32 %v4401_v37, %v3532_v27  ;;  %v1424_v52 = vadd.f32 %v1422_v44, %v1418_v36 }
 0xb52   :  { %v1425_v41 = vadd.f32 %v1423_v46, %v1419_v50  ;;  %v1471_v25 = vmul.f32 %v1424_v52, %v3950_v34  ;;  %v551_v50 = vadd.f32 %v4394_v33, %v4087_v59 }
 0xb54   :  { %v1426_v18 = vpack.c.bf16 %v1425_v41, %v1424_v52  ;;  %v1472_v8 = vmul.f32 %v1425_v41, %v3950_v34  ;;  %v554_v52 = vadd.f32 %v4394_v33, %v4091_v61 }
 0xb56   :  { %3099 = vmatmul.mubr.bf16.vlgmr.msra.gmra.mrb[28].mxu1 %v1426_v18 }
 0xb57   :  { %3123 = vmatpush3.bf16.msra.mxu1 %v4253_v0  ;;  %3138 = vmatprep.mubr.msk.bf16.mxu1 %vm3742_vm0, %v4849_v17 }
 0xb58   :  { %3124 = vmatprep.subr.bf16.mxu1 %v4849_v17 }
 0xb5b   :  { %3125 = vmatpush3.bf16.msra.mxu1 %v4259_v26 }
 0xb5c   :  { %3126 = vmatprep.subr.bf16.mxu1 %v4849_v17 }
 0xb5f   :  { %3127 = vmatpush3.bf16.msra.mxu1 %v4263_v15 }
 0xb60   :  { %3128 = vmatprep.subr.bf16.mxu1 %v4849_v17 }
 0xb63   :  { %3129 = vmatpush3.bf16.msra.mxu1 %v4293_v39 }
 0xb64   :  { %3130 = vmatprep.subr.bf16.mxu1 %v4849_v17 }
 0xb67   :  { %3131 = vmatpush3.bf16.msra.mxu1 %v4297_v29 }
 0xb68   :  { %3132 = vmatprep.subr.bf16.mxu1 %v4849_v17 }
 0xb6b   :  { %3133 = vmatpush3.bf16.msra.mxu1 %v4327_v10 }
 0xb6c   :  { %3134 = vmatprep.subr.bf16.mxu1 %v4849_v17 }
 0xb6f   :  { %3135 = vmatpush3.bf16.msra.mxu1 %v4331_v21 }
 0xb70   :  { %3136 = vmatprep.subr.bf16.mxu1 %v4849_v17 }
 0xb73   :  { %3137 = vmatpush3.bf16.msra.mxu1 %v4335_v23 }
 0xb74   :  { %3162 = vmatprep.subr.bf16.mxu1 %v4849_v17 }
 0xc29   :  { %v1464_v22 = vpop.f32.mrb[28].mxu1 }
 0xc2a   :  { %v1465_v11 = vadd.f32 %v1464_v22, %v535_v48  ;;  %v3100_v30 = vpop.f32.mrb[29].mxu1 }
 0xc2b   :  { %v1467_v43 = vpop.f32.mrb[30].mxu1 }
 0xc2c   :  { %3533 = vtanh.f32 %v1465_v11  ;;  %v1468_v12 = vadd.f32 %v1467_v43, %v538_v28  ;;  %v3101_v31 = vpop.f32.mrb[31].mxu1 }
 0xc2e   :  { %3535 = vtanh.f32 %v1468_v12 }
 0xc36   :  { %v3534_v13 = vpop.eup %3533 }
 0xc37   :  { %v1475_v45 = vmul.f32 %v4401_v37, %v3534_v13 }
 0xc38   :  { %v3536_v47 = vpop.eup %3535 }
 0xc39   :  { %v1476_v55 = vmul.f32 %v4401_v37, %v3536_v47  ;;  %v1477_v19 = vadd.f32 %v1475_v45, %v1471_v25  ;;  %v559_v45 = vadd.f32 %v4394_v33, %v4085_v58 }
 0xc3b   :  { %v1478_v51 = vadd.f32 %v1476_v55, %v1472_v8  ;;  %v1524_v2 = vmul.f32 %v1477_v19, %v3950_v34  ;;  %v562_v8 = vadd.f32 %v4394_v33, %v4089_v60 }
 0xc3d   :  { %v1479_v57 = vpack.c.bf16 %v1478_v51, %v1477_v19  ;;  %v1525_v36 = vmul.f32 %v1478_v51, %v3950_v34 }
 0xc3f   :  { %3119 = vmatmul.mubr.bf16.vlgmr.msra.gmra.mrb[76].mxu0 %v1479_v57 }
 0xc40   :  { %3143 = vmatpush3.bf16.msra.mxu0 %v4253_v0  ;;  %3158 = vmatprep.mubr.msk.bf16.mxu0 %vm3742_vm0, %v4849_v17 }
 0xc41   :  { %3144 = vmatprep.subr.bf16.mxu0 %v4849_v17 }
 0xc44   :  { %3145 = vmatpush3.bf16.msra.mxu0 %v4259_v26 }
 0xc45   :  { %3146 = vmatprep.subr.bf16.mxu0 %v4849_v17 }
 0xc48   :  { %3147 = vmatpush3.bf16.msra.mxu0 %v4263_v15 }
 0xc49   :  { %3148 = vmatprep.subr.bf16.mxu0 %v4849_v17 }
 0xc4c   :  { %3149 = vmatpush3.bf16.msra.mxu0 %v4293_v39 }
 0xc4d   :  { %3150 = vmatprep.subr.bf16.mxu0 %v4849_v17 }
 0xc50   :  { %3151 = vmatpush3.bf16.msra.mxu0 %v4297_v29 }
 0xc51   :  { %3152 = vmatprep.subr.bf16.mxu0 %v4849_v17 }
 0xc54   :  { %3153 = vmatpush3.bf16.msra.mxu0 %v4327_v10 }
 0xc55   :  { %3154 = vmatprep.subr.bf16.mxu0 %v4849_v17 }
 0xc58   :  { %3155 = vmatpush3.bf16.msra.mxu0 %v4331_v21 }
 0xc59   :  { %3156 = vmatprep.subr.bf16.mxu0 %v4849_v17 }
 0xc5c   :  { %3157 = vmatpush3.bf16.msra.mxu0 %v4335_v23 }
 0xc5d   :  { %3182 = vmatprep.subr.bf16.mxu0 %v4849_v17 }
 0xd12   :  { %v1517_v20 = vpop.f32.mrb[76].mxu0 }
 0xd13   :  { %v1518_v53 = vadd.f32 %v1517_v20, %v543_v49  ;;  %v3120_v38 = vpop.f32.mrb[77].mxu0 }
 0xd14   :  { %v1520_v32 = vpop.f32.mrb[78].mxu0 }
 0xd15   :  { %3537 = vtanh.f32 %v1518_v53  ;;  %v1521_v35 = vadd.f32 %v1520_v32, %v546_v24  ;;  %v3121_v40 = vpop.f32.mrb[79].mxu0 }
 0xd17   :  { %3539 = vtanh.f32 %v1521_v35 }
 0xd1f   :  { %v3538_v1 = vpop.eup %3537 }
 0xd20   :  { %v1528_v4 = vmul.f32 %v4401_v37, %v3538_v1  ;;  %v567_v1 = vadd.f32 %v4394_v33, %v4095_v63 }
 0xd21   :  { %v3540_v42 = vpop.eup %3539 }
 0xd22   :  { %v1529_v54 = vmul.f32 %v4401_v37, %v3540_v42  ;;  %v1530_v44 = vadd.f32 %v1528_v4, %v1524_v2  ;;  %v570_v4 = vadd.f32 %v4394_v33, %v4099_v5 }
 0xd24   :  { %v1531_v27 = vadd.f32 %v1529_v54, %v1525_v36  ;;  %v1577_v30 = vmul.f32 %v1530_v44, %v3950_v34 }
 0xd26   :  { %v1532_v56 = vpack.c.bf16 %v1531_v27, %v1530_v44  ;;  %v1578_v31 = vmul.f32 %v1531_v27, %v3950_v34 }
 0xd28   :  { %3139 = vmatmul.mubr.bf16.vlgmr.msra.gmra.mrb[32].mxu1 %v1532_v56 }
 0xd29   :  { %3163 = vmatpush3.bf16.msra.mxu1 %v4253_v0  ;;  %3178 = vmatprep.mubr.msk.bf16.mxu1 %vm3742_vm0, %v4849_v17 }
 0xd2a   :  { %3164 = vmatprep.subr.bf16.mxu1 %v4849_v17 }
 0xd2d   :  { %3165 = vmatpush3.bf16.msra.mxu1 %v4259_v26 }
 0xd2e   :  { %3166 = vmatprep.subr.bf16.mxu1 %v4849_v17 }
 0xd31   :  { %3167 = vmatpush3.bf16.msra.mxu1 %v4263_v15 }
 0xd32   :  { %3168 = vmatprep.subr.bf16.mxu1 %v4849_v17 }
 0xd35   :  { %3169 = vmatpush3.bf16.msra.mxu1 %v4293_v39 }
 0xd36   :  { %3170 = vmatprep.subr.bf16.mxu1 %v4849_v17 }
 0xd39   :  { %3171 = vmatpush3.bf16.msra.mxu1 %v4297_v29 }
 0xd3a   :  { %3172 = vmatprep.subr.bf16.mxu1 %v4849_v17 }
 0xd3d   :  { %3173 = vmatpush3.bf16.msra.mxu1 %v4327_v10 }
 0xd3e   :  { %3174 = vmatprep.subr.bf16.mxu1 %v4849_v17 }
 0xd41   :  { %3175 = vmatpush3.bf16.msra.mxu1 %v4331_v21 }
 0xd42   :  { %3176 = vmatprep.subr.bf16.mxu1 %v4849_v17 }
 0xd45   :  { %3177 = vmatpush3.bf16.msra.mxu1 %v4335_v23 }
 0xd46   :  { %3202 = vmatprep.subr.bf16.mxu1 %v4849_v17 }
 0xdfb   :  { %v1570_v46 = vpop.f32.mrb[32].mxu1 }
 0xdfc   :  { %v1571_v41 = vadd.f32 %v1570_v46, %v551_v50  ;;  %v3140_v18 = vpop.f32.mrb[33].mxu1 }
 0xdfd   :  { %v1573_v48 = vpop.f32.mrb[34].mxu1 }
 0xdfe   :  { %3541 = vtanh.f32 %v1571_v41  ;;  %v1574_v22 = vadd.f32 %v1573_v48, %v554_v52  ;;  %v3141_v28 = vpop.f32.mrb[35].mxu1 }
 0xe00   :  { %3543 = vtanh.f32 %v1574_v22  ;;  %v575_v22 = vadd.f32 %v4394_v33, %v4093_v62 }
 0xe08   :  { %v3542_v11 = vpop.eup %3541 }
 0xe09   :  { %v1581_v43 = vmul.f32 %v4401_v37, %v3542_v11  ;;  %v578_v11 = vadd.f32 %v4394_v33, %v4097_v3 }
 0xe0a   :  { %v3544_v12 = vpop.eup %3543 }
 0xe0b   :  { %v1582_v59 = vmul.f32 %v4401_v37, %v3544_v12  ;;  %v1583_v13 = vadd.f32 %v1581_v43, %v1577_v30 }
 0xe0d   :  { %v1584_v25 = vadd.f32 %v1582_v59, %v1578_v31  ;;  %v1630_v24 = vmul.f32 %v1583_v13, %v3950_v34 }
 0xe0f   :  { %v1585_v61 = vpack.c.bf16 %v1584_v25, %v1583_v13  ;;  %v1631_v32 = vmul.f32 %v1584_v25, %v3950_v34 }
 0xe11   :  { %3159 = vmatmul.mubr.bf16.vlgmr.msra.gmra.mrb[80].mxu0 %v1585_v61 }
 0xe12   :  { %3183 = vmatpush3.bf16.msra.mxu0 %v4253_v0  ;;  %3198 = vmatprep.mubr.msk.bf16.mxu0 %vm3742_vm0, %v4849_v17 }
 0xe13   :  { %3184 = vmatprep.subr.bf16.mxu0 %v4849_v17 }
 0xe16   :  { %3185 = vmatpush3.bf16.msra.mxu0 %v4259_v26 }
 0xe17   :  { %3186 = vmatprep.subr.bf16.mxu0 %v4849_v17 }
 0xe1a   :  { %3187 = vmatpush3.bf16.msra.mxu0 %v4263_v15 }
 0xe1b   :  { %3188 = vmatprep.subr.bf16.mxu0 %v4849_v17 }
 0xe1e   :  { %3189 = vmatpush3.bf16.msra.mxu0 %v4293_v39 }
 0xe1f   :  { %3190 = vmatprep.subr.bf16.mxu0 %v4849_v17 }
 0xe22   :  { %3191 = vmatpush3.bf16.msra.mxu0 %v4297_v29 }
 0xe23   :  { %3192 = vmatprep.subr.bf16.mxu0 %v4849_v17 }
 0xe26   :  { %3193 = vmatpush3.bf16.msra.mxu0 %v4327_v10 }
 0xe27   :  { %3194 = vmatprep.subr.bf16.mxu0 %v4849_v17 }
 0xe2a   :  { %3195 = vmatpush3.bf16.msra.mxu0 %v4331_v21 }
 0xe2b   :  { %3196 = vmatprep.subr.bf16.mxu0 %v4849_v17 }
 0xe2e   :  { %3197 = vmatpush3.bf16.msra.mxu0 %v4335_v23 }
 0xe2f   :  { %3222 = vmatprep.subr.bf16.mxu0 %v4849_v17 }
 0xee4   :  { %v1623_v47 = vpop.f32.mrb[80].mxu0 }
 0xee5   :  { %v1624_v55 = vadd.f32 %v1623_v47, %v559_v45  ;;  %v3160_v19 = vpop.f32.mrb[81].mxu0 }
 0xee6   :  { %v1626_v51 = vpop.f32.mrb[82].mxu0  ;;  %v583_v19 = vadd.f32 %v4394_v33, %v4103_v7 }
 0xee7   :  { %3545 = vtanh.f32 %v1624_v55  ;;  %v1627_v57 = vadd.f32 %v1626_v51, %v562_v8  ;;  %v3161_v49 = vpop.f32.mrb[83].mxu0 }
 0xee9   :  { %3547 = vtanh.f32 %v1627_v57  ;;  %v586_v57 = vadd.f32 %v4394_v33, %v4107_v14 }
 0xef1   :  { %v3546_v20 = vpop.eup %3545 }
 0xef2   :  { %v1634_v53 = vmul.f32 %v4401_v37, %v3546_v20 }
 0xef3   :  { %v3548_v38 = vpop.eup %3547 }
 0xef4   :  { %v1635_v58 = vmul.f32 %v4401_v37, %v3548_v38  ;;  %v1636_v35 = vadd.f32 %v1634_v53, %v1630_v24 }
 0xef6   :  { %v1637_v40 = vadd.f32 %v1635_v58, %v1631_v32  ;;  %v1683_v50 = vmul.f32 %v1636_v35, %v3950_v34 }
 0xef8   :  { %v1638_v60 = vpack.c.bf16 %v1637_v40, %v1636_v35  ;;  %v1684_v41 = vmul.f32 %v1637_v40, %v3950_v34 }
 0xefa   :  { %3179 = vmatmul.mubr.bf16.vlgmr.msra.gmra.mrb[36].mxu1 %v1638_v60 }
 0xefb   :  { %3203 = vmatpush3.bf16.msra.mxu1 %v4253_v0  ;;  %3218 = vmatprep.mubr.msk.bf16.mxu1 %vm3742_vm0, %v4849_v17 }
 0xefc   :  { %3204 = vmatprep.subr.bf16.mxu1 %v4849_v17 }
 0xeff   :  { %3205 = vmatpush3.bf16.msra.mxu1 %v4259_v26 }
 0xf00   :  { %3206 = vmatprep.subr.bf16.mxu1 %v4849_v17 }
 0xf03   :  { %3207 = vmatpush3.bf16.msra.mxu1 %v4263_v15 }
 0xf04   :  { %3208 = vmatprep.subr.bf16.mxu1 %v4849_v17 }
 0xf07   :  { %3209 = vmatpush3.bf16.msra.mxu1 %v4293_v39 }
 0xf08   :  { %3210 = vmatprep.subr.bf16.mxu1 %v4849_v17 }
 0xf0b   :  { %3211 = vmatpush3.bf16.msra.mxu1 %v4297_v29 }
 0xf0c   :  { %3212 = vmatprep.subr.bf16.mxu1 %v4849_v17 }
 0xf0f   :  { %3213 = vmatpush3.bf16.msra.mxu1 %v4327_v10 }
 0xf10   :  { %3214 = vmatprep.subr.bf16.mxu1 %v4849_v17 }
 0xf13   :  { %3215 = vmatpush3.bf16.msra.mxu1 %v4331_v21 }
 0xf14   :  { %3216 = vmatprep.subr.bf16.mxu1 %v4849_v17 }
 0xf17   :  { %3217 = vmatpush3.bf16.msra.mxu1 %v4335_v23 }
 0xf18   :  { %3242 = vmatprep.subr.bf16.mxu1 %v4849_v17 }
 0xfcd   :  { %v1676_v2 = vpop.f32.mrb[36].mxu1 }
 0xfce   :  { %v1677_v42 = vadd.f32 %v1676_v2, %v567_v1  ;;  %v3180_v36 = vpop.f32.mrb[37].mxu1 }
 0xfcf   :  { %v1679_v54 = vpop.f32.mrb[38].mxu1  ;;  %v594_v36 = vadd.f32 %v4394_v33, %v4105_v9 }
 0xfd0   :  { %3549 = vtanh.f32 %v1677_v42  ;;  %v1680_v44 = vadd.f32 %v1679_v54, %v570_v4  ;;  %v3181_v27 = vpop.f32.mrb[39].mxu1  ;;  %v591_v4 = vadd.f32 %v4394_v33, %v4101_v6 }
 0xfd2   :  { %3551 = vtanh.f32 %v1680_v44 }
 0xfda   :  { %v3550_v56 = vpop.eup %3549 }
 0xfdb   :  { %v1687_v46 = vmul.f32 %v4401_v37, %v3550_v56 }
 0xfdc   :  { %v3552_v52 = vpop.eup %3551 }
 0xfdd   :  { %v1688_v63 = vmul.f32 %v4401_v37, %v3552_v52  ;;  %v1689_v18 = vadd.f32 %v1687_v46, %v1683_v50 }
 0xfdf   :  { %v1690_v48 = vadd.f32 %v1688_v63, %v1684_v41  ;;  %v1736_v25 = vmul.f32 %v1689_v18, %v3950_v34 }
 0xfe1   :  { %v1691_v5 = vpack.c.bf16 %v1690_v48, %v1689_v18  ;;  %v1737_v47 = vmul.f32 %v1690_v48, %v3950_v34 }
 0xfe3   :  { %3199 = vmatmul.mubr.bf16.vlgmr.msra.gmra.mrb[84].mxu0 %v1691_v5 }
 0xfe4   :  { %3223 = vmatpush3.bf16.msra.mxu0 %v4253_v0  ;;  %3238 = vmatprep.mubr.msk.bf16.mxu0 %vm3742_vm0, %v4849_v17 }
 0xfe5   :  { %3224 = vmatprep.subr.bf16.mxu0 %v4849_v17 }
 0xfe8   :  { %3225 = vmatpush3.bf16.msra.mxu0 %v4259_v26 }
 0xfe9   :  { %3226 = vmatprep.subr.bf16.mxu0 %v4849_v17 }
 0xfec   :  { %3227 = vmatpush3.bf16.msra.mxu0 %v4263_v15 }
 0xfed   :  { %3228 = vmatprep.subr.bf16.mxu0 %v4849_v17 }
 0xff0   :  { %3229 = vmatpush3.bf16.msra.mxu0 %v4293_v39 }
 0xff1   :  { %3230 = vmatprep.subr.bf16.mxu0 %v4849_v17 }
 0xff4   :  { %3231 = vmatpush3.bf16.msra.mxu0 %v4297_v29 }
 0xff5   :  { %3232 = vmatprep.subr.bf16.mxu0 %v4849_v17 }
 0xff8   :  { %3233 = vmatpush3.bf16.msra.mxu0 %v4327_v10 }
 0xff9   :  { %3234 = vmatprep.subr.bf16.mxu0 %v4849_v17 }
 0xffc   :  { %3235 = vmatpush3.bf16.msra.mxu0 %v4331_v21 }
 0xffd   :  { %3236 = vmatprep.subr.bf16.mxu0 %v4849_v17 }
0x1000   :  { %3237 = vmatpush3.bf16.msra.mxu0 %v4335_v23 }
0x1001   :  { %3262 = vmatprep.subr.bf16.mxu0 %v4849_v17 }
0x10b6   :  { %v1729_v28 = vpop.f32.mrb[84].mxu0 }
0x10b7   :  { %v1730_v30 = vadd.f32 %v1729_v28, %v575_v22  ;;  %v3200_v43 = vpop.f32.mrb[85].mxu0 }
0x10b8   :  { %v1732_v12 = vpop.f32.mrb[86].mxu0 }
0x10b9   :  { %3553 = vtanh.f32 %v1730_v30  ;;  %v1733_v31 = vadd.f32 %v1732_v12, %v578_v11  ;;  %v3201_v59 = vpop.f32.mrb[87].mxu0 }
0x10bb   :  { %3555 = vtanh.f32 %v1733_v31 }
0x10c3   :  { %v3554_v13 = vpop.eup %3553 }
0x10c4   :  { %v1740_v61 = vmul.f32 %v4401_v37, %v3554_v13 }
0x10c5   :  { %v3556_v45 = vpop.eup %3555 }
0x10c6   :  { %v1741_v62 = vmul.f32 %v4401_v37, %v3556_v45  ;;  %v1742_v8 = vadd.f32 %v1740_v61, %v1736_v25 }
0x10c8   :  { %v1743_v55 = vadd.f32 %v1741_v62, %v1737_v47  ;;  %v1789_v58 = vmul.f32 %v1742_v8, %v3950_v34 }
0x10ca   :  { %v1744_v3 = vpack.c.bf16 %v1743_v55, %v1742_v8  ;;  %v1790_v60 = vmul.f32 %v1743_v55, %v3950_v34  ;;  %v4640_v8 = vld [vmem:[#allocation8] sm:$0xff]   ;;  %v4646_v55 = vld [vmem:[#allocation8 + $0x8] sm:$0xff]  }
0x10cc   :  { %3219 = vmatmul.mubr.bf16.vlgmr.msra.gmra.mrb[40].mxu1 %v1744_v3  ;;  %v4650_v3 = vld [vmem:[#allocation8 + $0x10] sm:$0xff]  }
0x10cd   :  { %3243 = vmatpush3.bf16.msra.mxu1 %v4253_v0  ;;  %3258 = vmatprep.mubr.msk.bf16.mxu1 %vm3742_vm0, %v4849_v17 }
0x10ce   :  { %3244 = vmatprep.subr.bf16.mxu1 %v4849_v17 }
0x10d1   :  { %3245 = vmatpush3.bf16.msra.mxu1 %v4259_v26 }
0x10d2   :  { %3246 = vmatprep.subr.bf16.mxu1 %v4849_v17 }
0x10d5   :  { %3247 = vmatpush3.bf16.msra.mxu1 %v4263_v15 }
0x10d6   :  { %3248 = vmatprep.subr.bf16.mxu1 %v4849_v17 }
0x10d9   :  { %3249 = vmatpush3.bf16.msra.mxu1 %v4293_v39 }
0x10da   :  { %3250 = vmatprep.subr.bf16.mxu1 %v4849_v17 }
0x10dd   :  { %3251 = vmatpush3.bf16.msra.mxu1 %v4297_v29 }
0x10de   :  { %3252 = vmatprep.subr.bf16.mxu1 %v4849_v17 }
0x10e1   :  { %3253 = vmatpush3.bf16.msra.mxu1 %v4327_v10 }
0x10e2   :  { %3254 = vmatprep.subr.bf16.mxu1 %v4849_v17 }
0x10e5   :  { %3255 = vmatpush3.bf16.msra.mxu1 %v4331_v21 }
0x10e6   :  { %3256 = vmatprep.subr.bf16.mxu1 %v4849_v17 }
0x10e9   :  { %3257 = vmatpush3.bf16.msra.mxu1 %v4335_v23 }
0x10ea   :  { %3282 = vmatprep.subr.bf16.mxu1 %v4849_v17 }
0x119f   :  { %v1782_v51 = vpop.f32.mrb[40].mxu1 }
0x11a0   :  { %v1783_v49 = vadd.f32 %v1782_v51, %v583_v19  ;;  %v3220_v20 = vpop.f32.mrb[41].mxu1  ;;  %v4859_v19 = vld [vmem:[#allocation18_spill] sm:$0xff] }
0x11a1   :  { %v1785_v24 = vpop.f32.mrb[42].mxu1 }
0x11a2   :  { %3557 = vtanh.f32 %v1783_v49  ;;  %v1786_v53 = vadd.f32 %v1785_v24, %v586_v57  ;;  %v3221_v38 = vpop.f32.mrb[43].mxu1  ;;  %v4860_v57 = vld [vmem:[#allocation19_spill] sm:$0xff] }
0x11a4   :  { %3559 = vtanh.f32 %v1786_v53 }
0x11ac   :  { %v3558_v32 = vpop.eup %3557 }
0x11ad   :  { %v1793_v35 = vmul.f32 %v4401_v37, %v3558_v32 }
0x11ae   :  { %v3560_v40 = vpop.eup %3559 }
0x11af   :  { %v1794_v7 = vmul.f32 %v4401_v37, %v3560_v40  ;;  %v1795_v1 = vadd.f32 %v1793_v35, %v1789_v58 }
0x11b1   :  { %v1796_v2 = vadd.f32 %v1794_v7, %v1790_v60  ;;  %v1842_v52 = vmul.f32 %v1795_v1, %v3950_v34 }
0x11b3   :  { %v1797_v14 = vpack.c.bf16 %v1796_v2, %v1795_v1  ;;  %v1843_v18 = vmul.f32 %v1796_v2, %v3950_v34 }
0x11b5   :  { %3239 = vmatmul.mubr.bf16.vlgmr.msra.gmra.mrb[88].mxu0 %v1797_v14 }
0x11b6   :  { %3263 = vmatpush3.bf16.msra.mxu0 %v4253_v0  ;;  %3278 = vmatprep.mubr.msk.bf16.mxu0 %vm3742_vm0, %v4849_v17 }
0x11b7   :  { %3264 = vmatprep.subr.bf16.mxu0 %v4849_v17 }
0x11ba   :  { %3265 = vmatpush3.bf16.msra.mxu0 %v4259_v26 }
0x11bb   :  { %3266 = vmatprep.subr.bf16.mxu0 %v4849_v17 }
0x11be   :  { %3267 = vmatpush3.bf16.msra.mxu0 %v4263_v15 }
0x11bf   :  { %3268 = vmatprep.subr.bf16.mxu0 %v4849_v17 }
0x11c2   :  { %3269 = vmatpush3.bf16.msra.mxu0 %v4293_v39 }
0x11c3   :  { %3270 = vmatprep.subr.bf16.mxu0 %v4849_v17 }
0x11c6   :  { %3271 = vmatpush3.bf16.msra.mxu0 %v4297_v29 }
0x11c7   :  { %3272 = vmatprep.subr.bf16.mxu0 %v4849_v17 }
0x11ca   :  { %3273 = vmatpush3.bf16.msra.mxu0 %v4327_v10 }
0x11cb   :  { %3274 = vmatprep.subr.bf16.mxu0 %v4849_v17 }
0x11ce   :  { %3275 = vmatpush3.bf16.msra.mxu0 %v4331_v21 }
0x11cf   :  { %3276 = vmatprep.subr.bf16.mxu0 %v4849_v17 }
0x11d2   :  { %3277 = vmatpush3.bf16.msra.mxu0 %v4335_v23 }
0x11d3   :  { %3302 = vmatprep.subr.bf16.mxu0 %v4849_v17 }
0x1288   :  { %v1835_v42 = vpop.f32.mrb[88].mxu0 }
0x1289   :  { %v1836_v54 = vadd.f32 %v1835_v42, %v591_v4  ;;  %v3240_v44 = vpop.f32.mrb[89].mxu0  ;;  %v4680_v4 = vld [vmem:[#allocation8 + $0x18] sm:$0xff]   ;;  %v4684_v42 = vld [vmem:[#allocation8 + $0x20] sm:$0xff]  }
0x128a   :  { %v1838_v27 = vpop.f32.mrb[90].mxu0 }
0x128b   :  { %3561 = vtanh.f32 %v1836_v54  ;;  %v1839_v56 = vadd.f32 %v1838_v27, %v594_v36  ;;  %v3241_v50 = vpop.f32.mrb[91].mxu0  ;;  %v4861_v36 = vld [vmem:[#allocation22_spill] sm:$0xff]  ;;  %v4862_v27 = vld [vmem:[#allocation24_spill] sm:$0xff] }
0x128c   :  { %v615_v54 = vadd.f32 %v4394_v33, %v4861_v36 }
0x128d   :  { %3563 = vtanh.f32 %v1839_v56  ;;  %v618_v56 = vadd.f32 %v4394_v33, %v4862_v27 }
0x1295   :  { %v3562_v46 = vpop.eup %3561 }
0x1296   :  { %v1846_v41 = vmul.f32 %v4401_v37, %v3562_v46 }
0x1297   :  { %v3564_v63 = vpop.eup %3563 }
0x1298   :  { %v1847_v6 = vmul.f32 %v4401_v37, %v3564_v63  ;;  %v1848_v48 = vadd.f32 %v1846_v41, %v1842_v52 }
0x129a   :  { %v1849_v5 = vadd.f32 %v1847_v6, %v1843_v18  ;;  %v1895_v59 = vmul.f32 %v1848_v48, %v3950_v34 }
0x129c   :  { %v1850_v9 = vpack.c.bf16 %v1849_v5, %v1848_v48  ;;  %v1896_v61 = vmul.f32 %v1849_v5, %v3950_v34 }
0x129e   :  { %3259 = vmatmul.mubr.bf16.vlgmr.msra.gmra.mrb[44].mxu1 %v1850_v9 }
0x129f   :  { %3283 = vmatpush3.bf16.msra.mxu1 %v4253_v0  ;;  %3298 = vmatprep.mubr.msk.bf16.mxu1 %vm3742_vm0, %v4849_v17  ;;  %v599_v0 = vadd.f32 %v4394_v33, %v4111_v16 }
0x12a0   :  { %3284 = vmatprep.subr.bf16.mxu1 %v4849_v17 }
0x12a3   :  { %3285 = vmatpush3.bf16.msra.mxu1 %v4259_v26 }
0x12a4   :  { %3286 = vmatprep.subr.bf16.mxu1 %v4849_v17 }
0x12a7   :  { %3287 = vmatpush3.bf16.msra.mxu1 %v4263_v15  ;;  %v4858_v15 = vld [vmem:[#allocation20_spill] sm:$0xff] }
0x12a8   :  { %3288 = vmatprep.subr.bf16.mxu1 %v4849_v17  ;;  %v602_v22 = vadd.f32 %v4394_v33, %v4858_v15  ;;  %v4718_v15 = vld [vmem:[#allocation8 + $0x30] sm:$0xff]  }
0x12ab   :  { %3289 = vmatpush3.bf16.msra.mxu1 %v4293_v39 }
0x12ac   :  { %3290 = vmatprep.subr.bf16.mxu1 %v4849_v17 }
0x12af   :  { %3291 = vmatpush3.bf16.msra.mxu1 %v4297_v29 }
0x12b0   :  { %3292 = vmatprep.subr.bf16.mxu1 %v4849_v17 }
0x12b3   :  { %3293 = vmatpush3.bf16.msra.mxu1 %v4327_v10 }
0x12b4   :  { %3294 = vmatprep.subr.bf16.mxu1 %v4849_v17 }
0x12b7   :  { %3295 = vmatpush3.bf16.msra.mxu1 %v4331_v21 }
0x12b8   :  { %3296 = vmatprep.subr.bf16.mxu1 %v4849_v17 }
0x12bb   :  { %3297 = vmatpush3.bf16.msra.mxu1 %v4335_v23 }
0x12bc   :  { %3322 = vmatprep.subr.bf16.mxu1 %v4849_v17 }
0x1371   :  { %v1888_v26 = vpop.f32.mrb[44].mxu1 }
0x1372   :  { %v1889_v28 = vadd.f32 %v1888_v26, %v599_v0  ;;  %v3260_v11 = vpop.f32.mrb[45].mxu1  ;;  %v4714_v26 = vld [vmem:[#allocation8 + $0x28] sm:$0xff]  }
0x1373   :  { %v1891_v30 = vpop.f32.mrb[46].mxu1 }
0x1374   :  { %3565 = vtanh.f32 %v1889_v28  ;;  %v1892_v43 = vadd.f32 %v1891_v30, %v602_v22  ;;  %v3261_v12 = vpop.f32.mrb[47].mxu1  ;;  %v4722_v22 = vld [vmem:[#allocation8 + $0x38] sm:$0xff]  }
0x1375   :  { %v4863_v28 = vld [vmem:[#allocation21_spill] sm:$0xff] }
0x1376   :  { %3567 = vtanh.f32 %v1892_v43  ;;  %v623_v11 = vadd.f32 %v4394_v33, %v4863_v28  ;;  %v4864_v43 = vld [vmem:[#allocation23_spill] sm:$0xff]  ;;  %v4869_v28 = vld [vmem:[#allocation30_spill] sm:$0xff] }
0x1377   :  { %v626_v12 = vadd.f32 %v4394_v33, %v4864_v43  ;;  %v4870_v43 = vld [vmem:[#allocation32_spill] sm:$0xff] }
0x137e   :  { %v3566_v31 = vpop.eup %3565 }
0x137f   :  { %v1899_v13 = vmul.f32 %v4401_v37, %v3566_v31 }
0x1380   :  { %v3568_v25 = vpop.eup %3567 }
0x1381   :  { %v1900_v16 = vmul.f32 %v4401_v37, %v3568_v25  ;;  %v1901_v45 = vadd.f32 %v1899_v13, %v1895_v59 }
0x1383   :  { %v1902_v47 = vadd.f32 %v1900_v16, %v1896_v61  ;;  %v1948_v58 = vmul.f32 %v1901_v45, %v3950_v34 }
0x1385   :  { %v1903_v62 = vpack.c.bf16 %v1902_v47, %v1901_v45  ;;  %v1949_v60 = vmul.f32 %v1902_v47, %v3950_v34 }
0x1387   :  { %3279 = vmatmul.mubr.bf16.vlgmr.msra.gmra.mrb[92].mxu0 %v1903_v62 }
0x1388   :  { %3303 = vmatpush3.bf16.msra.mxu0 %v4640_v8  ;;  %3318 = vmatprep.mubr.msk.bf16.mxu0 %vm3742_vm0, %v4849_v17 }
0x1389   :  { %3304 = vmatprep.subr.bf16.mxu0 %v4849_v17 }
0x138c   :  { %3305 = vmatpush3.bf16.msra.mxu0 %v4646_v55 }
0x138d   :  { %3306 = vmatprep.subr.bf16.mxu0 %v4849_v17 }
0x1390   :  { %3307 = vmatpush3.bf16.msra.mxu0 %v4650_v3 }
0x1391   :  { %3308 = vmatprep.subr.bf16.mxu0 %v4849_v17 }
0x1394   :  { %3309 = vmatpush3.bf16.msra.mxu0 %v4293_v39  ;;  %v607_v39 = vadd.f32 %v4394_v33, %v4859_v19 }
0x1395   :  { %3310 = vmatprep.subr.bf16.mxu0 %v4849_v17 }
0x1398   :  { %3311 = vmatpush3.bf16.msra.mxu0 %v4297_v29  ;;  %v610_v29 = vadd.f32 %v4394_v33, %v4860_v57 }
0x1399   :  { %3312 = vmatprep.subr.bf16.mxu0 %v4849_v17 }
0x139c   :  { %3313 = vmatpush3.bf16.msra.mxu0 %v4327_v10 }
0x139d   :  { %3314 = vmatprep.subr.bf16.mxu0 %v4849_v17 }
0x13a0   :  { %3315 = vmatpush3.bf16.msra.mxu0 %v4331_v21 }
0x13a1   :  { %3316 = vmatprep.subr.bf16.mxu0 %v4849_v17 }
0x13a4   :  { %3317 = vmatpush3.bf16.msra.mxu0 %v4335_v23 }
0x13a5   :  { %3342 = vmatprep.subr.bf16.mxu0 %v4849_v17 }
0x145a   :  { %v1941_v51 = vpop.f32.mrb[92].mxu0 }
0x145b   :  { %v1942_v49 = vadd.f32 %v1941_v51, %v607_v39  ;;  %v3280_v20 = vpop.f32.mrb[93].mxu0 }
0x145c   :  { %v1944_v24 = vpop.f32.mrb[94].mxu0 }
0x145d   :  { %3569 = vtanh.f32 %v1942_v49  ;;  %v1945_v53 = vadd.f32 %v1944_v24, %v610_v29  ;;  %v3281_v38 = vpop.f32.mrb[95].mxu0  ;;  %v4865_v49 = vld [vmem:[#allocation26_spill] sm:$0xff] }
0x145e   :  { %v631_v20 = vadd.f32 %v4394_v33, %v4865_v49  ;;  %v3476_v49 = vld [vmem:[#allocation11 + $0x18] sm:$0xff]  }
0x145f   :  { %3571 = vtanh.f32 %v1945_v53  ;;  %v4866_v53 = vld [vmem:[#allocation28_spill] sm:$0xff] }
0x1460   :  { %v634_v38 = vadd.f32 %v4394_v33, %v4866_v53  ;;  %v3479_v53 = vld [vmem:[#allocation11 + $0x30] sm:$0xff]  }
0x1467   :  { %v3570_v32 = vpop.eup %3569 }
0x1468   :  { %v1952_v35 = vmul.f32 %v4401_v37, %v3570_v32 }
0x1469   :  { %v3572_v40 = vpop.eup %3571 }
0x146a   :  { %v1953_v7 = vmul.f32 %v4401_v37, %v3572_v40  ;;  %v1954_v1 = vadd.f32 %v1952_v35, %v1948_v58 }
0x146c   :  { %v1955_v2 = vadd.f32 %v1953_v7, %v1949_v60  ;;  %v2001_v63 = vmul.f32 %v1954_v1, %v3950_v34 }
0x146e   :  { %v1956_v14 = vpack.c.bf16 %v1955_v2, %v1954_v1  ;;  %v2002_v6 = vmul.f32 %v1955_v2, %v3950_v34 }
0x1470   :  { %3299 = vmatmul.mubr.bf16.vlgmr.msra.gmra.mrb[48].mxu1 %v1956_v14 }
0x1471   :  { %3323 = vmatpush3.bf16.msra.mxu1 %v4640_v8  ;;  %3338 = vmatprep.mubr.msk.bf16.mxu1 %vm3742_vm0, %v4849_v17 }
0x1472   :  { %3324 = vmatprep.subr.bf16.mxu1 %v4849_v17 }
0x1475   :  { %3325 = vmatpush3.bf16.msra.mxu1 %v4646_v55 }
0x1476   :  { %3326 = vmatprep.subr.bf16.mxu1 %v4849_v17 }
0x1479   :  { %3327 = vmatpush3.bf16.msra.mxu1 %v4650_v3 }
0x147a   :  { %3328 = vmatprep.subr.bf16.mxu1 %v4849_v17 }
0x147d   :  { %3329 = vmatpush3.bf16.msra.mxu1 %v4680_v4 }
0x147e   :  { %3330 = vmatprep.subr.bf16.mxu1 %v4849_v17 }
0x1481   :  { %3331 = vmatpush3.bf16.msra.mxu1 %v4684_v42 }
0x1482   :  { %3332 = vmatprep.subr.bf16.mxu1 %v4849_v17 }
0x1485   :  { %3333 = vmatpush3.bf16.msra.mxu1 %v4327_v10 }
0x1486   :  { %3334 = vmatprep.subr.bf16.mxu1 %v4849_v17 }
0x1489   :  { %3335 = vmatpush3.bf16.msra.mxu1 %v4331_v21 }
0x148a   :  { %3336 = vmatprep.subr.bf16.mxu1 %v4849_v17 }
0x148d   :  { %3337 = vmatpush3.bf16.msra.mxu1 %v4335_v23 }
0x148e   :  { %3362 = vmatprep.subr.bf16.mxu1 %v4849_v17 }
0x1543   :  { %v1994_v44 = vpop.f32.mrb[48].mxu1 }
0x1544   :  { %v1995_v50 = vadd.f32 %v1994_v44, %v615_v54  ;;  %v3300_v46 = vpop.f32.mrb[49].mxu1 }
0x1545   :  { %v1997_v10 = vpop.f32.mrb[50].mxu1 }
0x1546   :  { %3573 = vtanh.f32 %v1995_v50  ;;  %v1998_v52 = vadd.f32 %v1997_v10, %v618_v56  ;;  %v3301_v41 = vpop.f32.mrb[51].mxu1 }
0x1548   :  { %3575 = vtanh.f32 %v1998_v52 }
0x1550   :  { %v3574_v21 = vpop.eup %3573 }
0x1551   :  { %v2005_v23 = vmul.f32 %v4401_v37, %v3574_v21 }
0x1552   :  { %v3576_v18 = vpop.eup %3575 }
0x1553   :  { %v2006_v48 = vmul.f32 %v4401_v37, %v3576_v18  ;;  %v2007_v5 = vadd.f32 %v2005_v23, %v2001_v63  ;;  %v4787_v63 = vld [vmem:[#allocation3] ss:$0 sm:$0xff] }
0x1555   :  { %v2008_v9 = vadd.f32 %v2006_v48, %v2002_v6  ;;  %v2054_v45 = vmul.f32 %v2007_v5, %v3950_v34 }
0x1557   :  { %v2009_v0 = vpack.c.bf16 %v2008_v9, %v2007_v5  ;;  %v2055_v19 = vmul.f32 %v2008_v9, %v3950_v34 }
0x1559   :  { %3319 = vmatmul.mubr.bf16.vlgmr.msra.gmra.mrb[96].mxu0 %v2009_v0 }
0x155a   :  { %3343 = vmatpush3.bf16.msra.mxu0 %v4640_v8  ;;  %3358 = vmatprep.mubr.msk.bf16.mxu0 %vm3742_vm0, %v4849_v17 }
0x155b   :  { %3344 = vmatprep.subr.bf16.mxu0 %v4849_v17 }
0x155e   :  { %3345 = vmatpush3.bf16.msra.mxu0 %v4646_v55 }
0x155f   :  { %3346 = vmatprep.subr.bf16.mxu0 %v4849_v17 }
0x1562   :  { %3347 = vmatpush3.bf16.msra.mxu0 %v4650_v3 }
0x1563   :  { %3348 = vmatprep.subr.bf16.mxu0 %v4849_v17 }
0x1566   :  { %3349 = vmatpush3.bf16.msra.mxu0 %v4680_v4 }
0x1567   :  { %3350 = vmatprep.subr.bf16.mxu0 %v4849_v17 }
0x156a   :  { %3351 = vmatpush3.bf16.msra.mxu0 %v4684_v42 }
0x156b   :  { %3352 = vmatprep.subr.bf16.mxu0 %v4849_v17 }
0x156e   :  { %3353 = vmatpush3.bf16.msra.mxu0 %v4714_v26 }
0x156f   :  { %3354 = vmatprep.subr.bf16.mxu0 %v4849_v17 }
0x1572   :  { %3355 = vmatpush3.bf16.msra.mxu0 %v4718_v15 }
0x1573   :  { %3356 = vmatprep.subr.bf16.mxu0 %v4849_v17 }
0x1576   :  { %3357 = vmatpush3.bf16.msra.mxu0 %v4722_v22 }
0x1577   :  { %3382 = vmatprep.subr.bf16.mxu0 %v4849_v17 }
0x162c   :  { %v2047_v30 = vpop.f32.mrb[96].mxu0 }
0x162d   :  { %v2048_v31 = vadd.f32 %v2047_v30, %v623_v11  ;;  %v3320_v59 = vpop.f32.mrb[97].mxu0 }
0x162e   :  { %v2050_v13 = vpop.f32.mrb[98].mxu0 }
0x162f   :  { %3577 = vtanh.f32 %v2048_v31  ;;  %v2051_v25 = vadd.f32 %v2050_v13, %v626_v12  ;;  %v3321_v61 = vpop.f32.mrb[99].mxu0 }
0x1631   :  { %3579 = vtanh.f32 %v2051_v25 }
0x1639   :  { %v3578_v16 = vpop.eup %3577 }
0x163a   :  { %v2058_v47 = vmul.f32 %v4401_v37, %v3578_v16 }
0x163b   :  { %v3580_v62 = vpop.eup %3579 }
0x163c   :  { %v2059_v39 = vmul.f32 %v4401_v37, %v3580_v62  ;;  %v2060_v51 = vadd.f32 %v2058_v47, %v2054_v45 }
0x163e   :  { %v2061_v57 = vadd.f32 %v2059_v39, %v2055_v19  ;;  %v2107_v1 = vmul.f32 %v2060_v51, %v3950_v34 }
0x1640   :  { %v2062_v29 = vpack.c.bf16 %v2061_v57, %v2060_v51  ;;  %v2108_v36 = vmul.f32 %v2061_v57, %v3950_v34 }
0x1642   :  { %3339 = vmatmul.mubr.bf16.vlgmr.msra.gmra.mrb[52].mxu1 %v2062_v29 }
0x1643   :  { %3363 = vmatpush3.bf16.msra.mxu1 %v4640_v8  ;;  %3378 = vmatprep.mubr.msk.bf16.mxu1 %vm3742_vm0, %v4849_v17 }
0x1644   :  { %3364 = vmatprep.subr.bf16.mxu1 %v4849_v17 }
0x1647   :  { %3365 = vmatpush3.bf16.msra.mxu1 %v4646_v55 }
0x1648   :  { %3366 = vmatprep.subr.bf16.mxu1 %v4849_v17 }
0x164b   :  { %3367 = vmatpush3.bf16.msra.mxu1 %v4650_v3 }
0x164c   :  { %3368 = vmatprep.subr.bf16.mxu1 %v4849_v17 }
0x164f   :  { %3369 = vmatpush3.bf16.msra.mxu1 %v4680_v4 }
0x1650   :  { %3370 = vmatprep.subr.bf16.mxu1 %v4849_v17 }
0x1653   :  { %3371 = vmatpush3.bf16.msra.mxu1 %v4684_v42 }
0x1654   :  { %3372 = vmatprep.subr.bf16.mxu1 %v4849_v17 }
0x1657   :  { %3373 = vmatpush3.bf16.msra.mxu1 %v4714_v26 }
0x1658   :  { %3374 = vmatprep.subr.bf16.mxu1 %v4849_v17 }
0x165b   :  { %3375 = vmatpush3.bf16.msra.mxu1 %v4718_v15 }
0x165c   :  { %3376 = vmatprep.subr.bf16.mxu1 %v4849_v17 }
0x165f   :  { %3377 = vmatpush3.bf16.msra.mxu1 %v4722_v22 }
0x1660   :  { %3402 = vmatprep.subr.bf16.mxu1 %v4849_v17 }
0x1715   :  { %v2100_v24 = vpop.f32.mrb[52].mxu1 }
0x1716   :  { %v2101_v32 = vadd.f32 %v2100_v24, %v631_v20  ;;  %v3340_v58 = vpop.f32.mrb[53].mxu1  ;;  %v3477_v20 = vld [vmem:[#allocation11 + $0x20] sm:$0xff]   ;;  %v3478_v24 = vld [vmem:[#allocation11 + $0x28] sm:$0xff]  }
0x1717   :  { %v2103_v35 = vpop.f32.mrb[54].mxu1 }
0x1718   :  { %3581 = vtanh.f32 %v2101_v32  ;;  %v2104_v40 = vadd.f32 %v2103_v35, %v634_v38  ;;  %v3341_v60 = vpop.f32.mrb[55].mxu1  ;;  %v3480_v38 = vld [vmem:[#allocation11 + $0x38] sm:$0xff]   ;;  %v4871_v32 = vld [vmem:[#allocation29_spill] sm:$0xff] }
0x171a   :  { %3583 = vtanh.f32 %v2104_v40  ;;  %v4872_v40 = vld [vmem:[#allocation31_spill] sm:$0xff] }
0x1722   :  { %v3582_v7 = vpop.eup %3581 }
0x1723   :  { %v2111_v2 = vmul.f32 %v4401_v37, %v3582_v7 }
0x1724   :  { %v3584_v14 = vpop.eup %3583 }
0x1725   :  { %v2112_v54 = vmul.f32 %v4401_v37, %v3584_v14  ;;  %v2113_v44 = vadd.f32 %v2111_v2, %v2107_v1  ;;  %v4780_v37 = vld [vmem:[%s4835_s3] ss:$0 sm:$0xff] }
0x1726   :  { %v647_v11 = vadd.f32 %v4780_v37, %v4869_v28  ;;  %v650_v12 = vadd.f32 %v4780_v37, %v4870_v43  ;;  %v655_v58 = vadd.f32 %v4780_v37, %v4871_v32  ;;  %v658_v60 = vadd.f32 %v4780_v37, %v4872_v40 }
0x1727   :  { %v2114_v27 = vadd.f32 %v2112_v54, %v2108_v36  ;;  %v2160_v21 = vmul.f32 %v2113_v44, %v3950_v34 }
0x1729   :  { %v2115_v33 = vpack.c.bf16 %v2114_v27, %v2113_v44  ;;  %v2161_v6 = vmul.f32 %v2114_v27, %v3950_v34 }
0x172b   :  { %3359 = vmatmul.mubr.bf16.vlgmr.msra.gmra.mrb[100].mxu0 %v2115_v33 }
0x172c   :  { %3383 = vmatpush3.bf16.msra.mxu0 %v4640_v8  ;;  %3398 = vmatprep.mubr.msk.bf16.mxu0 %vm3742_vm0, %v4849_v17  ;;  %v4867_v8 = vld [vmem:[#allocation25_spill] sm:$0xff] }
0x172d   :  { %3384 = vmatprep.subr.bf16.mxu0 %v4849_v17 }
0x1730   :  { %3385 = vmatpush3.bf16.msra.mxu0 %v4646_v55  ;;  %v639_v55 = vadd.f32 %v4780_v37, %v4867_v8 }
0x1731   :  { %3386 = vmatprep.subr.bf16.mxu0 %v4849_v17 }
0x1734   :  { %3387 = vmatpush3.bf16.msra.mxu0 %v4650_v3 }
0x1735   :  { %3388 = vmatprep.subr.bf16.mxu0 %v4849_v17 }
0x1738   :  { %3389 = vmatpush3.bf16.msra.mxu0 %v4680_v4  ;;  %v4868_v4 = vld [vmem:[#allocation27_spill] sm:$0xff] }
0x1739   :  { %3390 = vmatprep.subr.bf16.mxu0 %v4849_v17 }
0x173c   :  { %3391 = vmatpush3.bf16.msra.mxu0 %v4684_v42  ;;  %v642_v42 = vadd.f32 %v4780_v37, %v4868_v4  ;;  %v2482_v4 = vld [vmem:[%s4838_s6] ss:$0 sm:$0xff] }
0x173d   :  { %3392 = vmatprep.subr.bf16.mxu0 %v4849_v17 }
0x1740   :  { %3393 = vmatpush3.bf16.msra.mxu0 %v4714_v26  ;;  %v3473_v26 = vld [vmem:[#allocation11] sm:$0xff]  }
0x1741   :  { %3394 = vmatprep.subr.bf16.mxu0 %v4849_v17 }
0x1744   :  { %3395 = vmatpush3.bf16.msra.mxu0 %v4718_v15  ;;  %v3474_v15 = vld [vmem:[#allocation11 + $0x8] sm:$0xff]  }
0x1745   :  { %3396 = vmatprep.subr.bf16.mxu0 %v4849_v17 }
0x1748   :  { %3397 = vmatpush3.bf16.msra.mxu0 %v4722_v22  ;;  %v3475_v22 = vld [vmem:[#allocation11 + $0x10] sm:$0xff]  }
0x17fe   :  { %v2153_v3 = vpop.f32.mrb[100].mxu0 }
0x17ff   :  { %v2154_v56 = vadd.f32 %v2153_v3, %v639_v55  ;;  %v3360_v50 = vpop.f32.mrb[101].mxu0 }
0x1800   :  { %v2156_v46 = vpop.f32.mrb[102].mxu0 }
0x1801   :  { %3585 = vtanh.f32 %v2154_v56  ;;  %v2157_v10 = vadd.f32 %v2156_v46, %v642_v42  ;;  %v3361_v52 = vpop.f32.mrb[103].mxu0 }
0x1803   :  { %3587 = vtanh.f32 %v2157_v10 }
0x180b   :  { %v3586_v41 = vpop.eup %3585 }
0x180c   :  { %v2164_v23 = vmul.f32 %v4787_v63, %v3586_v41 }
0x180d   :  { %v3588_v18 = vpop.eup %3587 }
0x180e   :  { %v2165_v48 = vmul.f32 %v4787_v63, %v3588_v18  ;;  %v2166_v5 = vadd.f32 %v2164_v23, %v2160_v21 }
0x1810   :  { %v2167_v9 = vadd.f32 %v2165_v48, %v2161_v6  ;;  %v2213_v45 = vmul.f32 %v2166_v5, %v3950_v34 }
0x1812   :  { %v2168_v0 = vpack.c.bf16 %v2167_v9, %v2166_v5  ;;  %v2214_v19 = vmul.f32 %v2167_v9, %v3950_v34 }
0x1814   :  { %3379 = vmatmul.mubr.bf16.vlgmr.msra.gmra.mrb[56].mxu1 %v2168_v0 }
0x1815   :  { %3418 = vmatprep.mubr.msk.bf16.mxu1 %vm3742_vm0, %v4849_v17  ;;  %3403 = vmatpush3.bf16.msra.mxu1 %v3473_v26 }
0x1816   :  { %3404 = vmatprep.subr.bf16.mxu1 %v4849_v17 }
0x1819   :  { %3405 = vmatpush3.bf16.msra.mxu1 %v3474_v15 }
0x181a   :  { %3406 = vmatprep.subr.bf16.mxu1 %v4849_v17 }
0x181d   :  { %3407 = vmatpush3.bf16.msra.mxu1 %v3475_v22 }
0x181e   :  { %3408 = vmatprep.subr.bf16.mxu1 %v4849_v17 }
0x1821   :  { %3409 = vmatpush3.bf16.msra.mxu1 %v3476_v49 }
0x1822   :  { %3410 = vmatprep.subr.bf16.mxu1 %v4849_v17 }
0x1825   :  { %3411 = vmatpush3.bf16.msra.mxu1 %v3477_v20 }
0x1826   :  { %3412 = vmatprep.subr.bf16.mxu1 %v4849_v17 }
0x1829   :  { %3413 = vmatpush3.bf16.msra.mxu1 %v3478_v24 }
0x182a   :  { %3414 = vmatprep.subr.bf16.mxu1 %v4849_v17 }
0x182d   :  { %3415 = vmatpush3.bf16.msra.mxu1 %v3479_v53 }
0x182e   :  { %3416 = vmatprep.subr.bf16.mxu1 %v4849_v17 }
0x1831   :  { %3417 = vmatpush3.bf16.msra.mxu1 %v3480_v38 }
0x18e7   :  { %v2206_v30 = vpop.f32.mrb[56].mxu1 }
0x18e8   :  { %v2207_v31 = vadd.f32 %v2206_v30, %v647_v11  ;;  %v3380_v59 = vpop.f32.mrb[57].mxu1 }
0x18e9   :  { %v2209_v13 = vpop.f32.mrb[58].mxu1 }
0x18ea   :  { %3589 = vtanh.f32 %v2207_v31  ;;  %v2210_v25 = vadd.f32 %v2209_v13, %v650_v12  ;;  %v3381_v61 = vpop.f32.mrb[59].mxu1 }
0x18ec   :  { %3591 = vtanh.f32 %v2210_v25 }
0x18f4   :  { %v3590_v16 = vpop.eup %3589 }
0x18f5   :  { %v2217_v47 = vmul.f32 %v4787_v63, %v3590_v16 }
0x18f6   :  { %v3592_v62 = vpop.eup %3591 }
0x18f7   :  { %v2218_v39 = vmul.f32 %v4787_v63, %v3592_v62  ;;  %v2219_v51 = vadd.f32 %v2217_v47, %v2213_v45 }
0x18f9   :  { %v2220_v57 = vadd.f32 %v2218_v39, %v2214_v19  ;;  %v2266_v44 = vmul.f32 %v2219_v51, %v3950_v34 }
0x18fb   :  { %v2221_v29 = vpack.c.bf16 %v2220_v57, %v2219_v51  ;;  %v2267_v33 = vmul.f32 %v2220_v57, %v3950_v34 }
0x18fd   :  { %3399 = vmatmul.mubr.bf16.vlgmr.msra.gmra.mrb[104].mxu0 %v2221_v29 }
0x19d0   :  { %v2259_v35 = vpop.f32.mrb[104].mxu0 }
0x19d1   :  { %v2260_v7 = vadd.f32 %v2259_v35, %v655_v58  ;;  %v3400_v1 = vpop.f32.mrb[105].mxu0 }
0x19d2   :  { %v2262_v2 = vpop.f32.mrb[106].mxu0 }
0x19d3   :  { %3593 = vtanh.f32 %v2260_v7  ;;  %v2263_v14 = vadd.f32 %v2262_v2, %v658_v60  ;;  %v3401_v36 = vpop.f32.mrb[107].mxu0 }
0x19d5   :  { %3595 = vtanh.f32 %v2263_v14 }
0x19dd   :  { %v3594_v54 = vpop.eup %3593 }
0x19de   :  { %v2270_v17 = vmul.f32 %v4787_v63, %v3594_v54 }
0x19df   :  { %v3596_v27 = vpop.eup %3595 }
0x19e0   :  { %v2271_v8 = vmul.f32 %v4787_v63, %v3596_v27  ;;  %v2272_v55 = vadd.f32 %v2270_v17, %v2266_v44 }
0x19e2   :  { %v2273_v3 = vadd.f32 %v2271_v8, %v2267_v33 }
0x19e4   :  { %v2279_v37 = vpack.c.bf16 %v2273_v3, %v2272_v55 }
0x19e6   :  { %3419 = vmatmul.mubr.bf16.vlgmr.msra.gmra.mrb[60].mxu1 %v2279_v37 }
0x1ab9   :  { %v2385_v42 = vpop.f32.mrb[60].mxu1 }
0x1aba   :  { %v2386_v56 = vadd.f32 %v2482_v4, %v2385_v42  ;;  %v3420_v50 = vpop.f32.mrb[61].mxu1 }
0x1abb   :  { %v2388_v46 = vpop.f32.mrb[62].mxu1 }
0x1abc   :  { %2392 = vst [vmem:[#allocation13] sm:$0xff] %v2386_v56  ;;  %v2389_v10 = vadd.f32 %v2482_v4, %v2388_v46  ;;  %v3421_v34 = vpop.f32.mrb[63].mxu1 }
0x1abe   :  { %2393 = vst [vmem:[#allocation13 + $0x8] sm:$0xff] %v2389_v10 }
0x1abf   :  { %3716 = shalt.err (!%p3713_p8)
}
0x1ac0   :  { %s3717_s15 = scalar_lea.hbm %s4839_s7, 256 }
0x1ac1   :  { %p3718_p9 = scmp.ne.s32.totalorder %s4839_s7, %s3717_s15  ;;  %p3721_p10 = scmp.lt.u32.totalorder %s3717_s15, %s4839_s7 }
0x1ac3   :  { %p3723_p11 = pnand %p3721_p10, %p3718_p9 }
0x1ac5   :  { %3726 = shalt.err (!%p3723_p11)
}
0x1ac6   :  { %s3745_s18 = smov 128   ;;  %s3746_s19 = smov 8  }
0x1ac7   :  { %2405 = dma.vmem_to_hbm [thread:$0]  %s2400_s10, 256, %s4839_s7, [#allocation7], %s3745_s18, %s3745_s18, %s3746_s19  }
0x1ac8   :  { %3733 = dma.done.wait [#allocation7], 256  }
0x1ac9   :  { %3734 = vsyncadd [#allocation7], 4294967040 }
0x1aca   :  { %2409 = vsyncpa [#allocation6], 1 }
0x1acb   :  { %2410 = vsyncpa [#allocation9], 1 }
0x1acc   :  { %2411 = vsyncpa [#allocation12], 1 }
0x1acd   :  { %2412 = vsyncpa [#allocation7], 1 }

// kernel: tpu_custom_call.1
= control target key start
LH: loop header
LB: loop body
LE: loop exit
PB: predicated region body
PF: predicated region fallthrough
CT: control target
= control target key end

     0   :  { %12 = vsyncpa [#allocation6], 0  ;;  %s4832_s0 = inlined_call_operand.hbm [shape: bf16[28,16,28], index: 0, kind: input, shape index: {}]   ;;  %s4833_s1 = inlined_call_operand.hbm [shape: bf16[128,128], index: 1, kind: input, shape index: {}]   ;;  %s4834_s2 = inlined_call_operand.hbm [shape: bf16[28,128], index: 2, kind: input, shape index: {}]   ;;  %s4835_s3 = inlined_call_operand.vmem [shape: f32[1,128], index: 3, kind: input, shape index: {}]   ;;  %s4836_s4 = inlined_call_operand.vmem [shape: f32[1,128], index: 4, kind: input, shape index: {}]   ;;  %s4837_s5 = inlined_call_operand.hbm [shape: bf16[128,128], index: 5, kind: input, shape index: {}]   ;;  %s4838_s6 = inlined_call_operand.vmem [shape: f32[1,128], index: 6, kind: input, shape index: {}]   ;;  %s4839_s7 = inlined_call_operand.hbm [shape: f32[16,128], index: 7, kind: output, shape index: {}]  }
   0x1   :  { %13 = vsyncpa [#allocation9], 0 }
   0x2   :  { %14 = vsyncpa [#allocation12], 0 }
   0x3   :  { %15 = vsyncpa [#allocation7], 0  ;;  %s3735_s24 = smov [#allocation8]   ;;  %s3736_s26 = smov [#allocation5]  }
   0x4   :  { %s33_s25 = sshll.u32 %s3735_s24, 4  ;;  %s21_s27 = sshll.u32 %s3736_s26, 4  ;;  %s34_s25 = int_to_ptr.vmem [resolvable:$true] %s33_s25  ;;  %s3787_s27 = int_to_ptr.vmem [resolvable:$true] %s21_s27 }
   0x5   :  { %s3617_s30 = scalar_lea.hbm %s4833_s1, 1024 }
   0x6   :  { %p3618_p0 = scmp.ne.s32.totalorder %s4833_s1, %s3617_s30  ;;  %p3621_p1 = scmp.lt.u32.totalorder %s3617_s30, %s4833_s1 }
   0x8   :  { %p3623_p2 = pnand %p3621_p1, %p3618_p0 }
   0xa   :  { %3626 = shalt.err (!%p3623_p2)
}
   0xb   :  { %s3627_s12 = scalar_lea.vmem %s34_s25, 1024  ;;  %p3632_p4 = scmp.lt.s32.totalorder %s34_s25, %s34_s25 }
   0xc   :  { %p3628_p3 = scmp.ne.s32.totalorder %s34_s25, %s3627_s12  ;;  %p3633_p5 = scmp.lt.s32.totalorder %s3627_s12, %s3627_s12 }
   0xe   :  { %p3634_p6 = por %p3633_p5, %p3632_p4 }
  0x10   :  { %p3635_p7 = pnand %p3634_p6, %p3628_p3 }
  0x12   :  { %3638 = shalt.err (!%p3635_p7)
}
  0x13   :  { %s3737_s13 = smov 64   ;;  %s3738_s14 = smov 4  }
  0x14   :  { %39 = dma.hbm_to_vmem [thread:$0]  %s4833_s1, 1024, %s34_s25, [#allocation9], %s3737_s13, %s3737_s13, %s3738_s14  }
  0x15   :  { %s3639_s19 = scalar_lea.hbm %s4832_s0, 3584 }
  0x16   :  { %p3640_p8 = scmp.ne.s32.totalorder %s4832_s0, %s3639_s19  ;;  %p3643_p9 = scmp.lt.u32.totalorder %s3639_s19, %s4832_s0 }
  0x18   :  { %p3645_p10 = pnand %p3643_p9, %p3640_p8 }
  0x1a   :  { %3648 = shalt.err (!%p3645_p10)
}
  0x1b   :  { %s3649_s24 = scalar_lea.vmem %s3787_s27, 3584  ;;  %p3654_p12 = scmp.lt.s32.totalorder %s3787_s27, %s3787_s27 }
  0x1c   :  { %p3650_p11 = scmp.ne.s32.totalorder %s3787_s27, %s3649_s24  ;;  %p3655_p13 = scmp.lt.s32.totalorder %s3649_s24, %s3649_s24 }
  0x1e   :  { %p3656_p0 = por %p3655_p13, %p3654_p12 }
  0x20   :  { %p3657_p1 = pnand %p3656_p0, %p3650_p11 }
  0x22   :  { %3660 = shalt.err (!%p3657_p1)
}
  0x23   :  { %27 = dma.hbm_to_vmem [thread:$0]  %s4832_s0, 3584, %s3787_s27, [#allocation6], %s3737_s13, %s3737_s13, %s3738_s14  }
  0x24   :  { %s3739_s26 = smov [#allocation10]   ;;  %s3740_s29 = smov [#allocation11]  }
  0x25   :  { %s45_s28 = sshll.u32 %s3739_s26, 4  ;;  %s61_s30 = sshll.u32 %s3740_s29, 4  ;;  %s46_s28 = int_to_ptr.vmem [resolvable:$true] %s45_s28  ;;  %s3824_s30 = int_to_ptr.vmem [resolvable:$true] %s61_s30 }
  0x26   :  { %s3661_s10 = scalar_lea.hbm %s4834_s2, 256 }
  0x27   :  { %p3662_p2 = scmp.ne.s32.totalorder %s4834_s2, %s3661_s10  ;;  %p3665_p3 = scmp.lt.u32.totalorder %s3661_s10, %s4834_s2 }
  0x29   :  { %p3667_p4 = pnand %p3665_p3, %p3662_p2 }
  0x2b   :  { %3670 = shalt.err (!%p3667_p4)
}
  0x2c   :  { %s3671_s0 = scalar_lea.vmem %s46_s28, 256  ;;  %p3676_p6 = scmp.lt.s32.totalorder %s46_s28, %s46_s28 }
  0x2d   :  { %p3672_p5 = scmp.ne.s32.totalorder %s46_s28, %s3671_s0  ;;  %p3677_p7 = scmp.lt.s32.totalorder %s3671_s0, %s3671_s0 }
  0x2f   :  { %p3678_p8 = por %p3677_p7, %p3676_p6 }
  0x31   :  { %p3679_p9 = pnand %p3678_p8, %p3672_p5 }
  0x33   :  { %3682 = shalt.err (!%p3679_p9)
}
  0x34   :  { %51 = dma.hbm_to_vmem [thread:$0]  %s4834_s2, 256, %s46_s28, [#allocation9], %s3737_s13, %s3737_s13, %s3738_s14  }
  0x35   :  { %s3683_s20 = scalar_lea.hbm %s4837_s5, 1024 }
  0x36   :  { %p3684_p10 = scmp.ne.s32.totalorder %s4837_s5, %s3683_s20  ;;  %p3687_p11 = scmp.lt.u32.totalorder %s3683_s20, %s4837_s5 }
  0x38   :  { %p3689_p12 = pnand %p3687_p11, %p3684_p10 }
  0x3a   :  { %3692 = shalt.err (!%p3689_p12)
}
  0x3b   :  { %s3693_s1 = scalar_lea.vmem %s3824_s30, 1024  ;;  %p3698_p0 = scmp.lt.s32.totalorder %s3824_s30, %s3824_s30 }
  0x3c   :  { %p3694_p13 = scmp.ne.s32.totalorder %s3824_s30, %s3693_s1  ;;  %p3699_p1 = scmp.lt.s32.totalorder %s3693_s1, %s3693_s1 }
  0x3e   :  { %p3700_p2 = por %p3699_p1, %p3698_p0 }
  0x40   :  { %p3701_p3 = pnand %p3700_p2, %p3694_p13 }
  0x42   :  { %3704 = shalt.err (!%p3701_p3)
}
  0x43   :  { %67 = dma.hbm_to_vmem [thread:$0]  %s4837_s5, 1024, %s3824_s30, [#allocation12], %s3737_s13, %s3737_s13, %s3738_s14  }
  0x44   :  { %3727 = dma.done.wait [#allocation6], 3584  }
  0x45   :  { %3728 = vsyncadd [#allocation6], 4294963712 }
  0x46   :  { %3729 = dma.done.wait [#allocation9], 1280  }
  0x47   :  { %3730 = vsyncadd [#allocation9], 4294966016 }
  0x48   :  { %3731 = dma.done.wait [#allocation12], 1024  }
  0x49   :  { %3732 = vsyncadd [#allocation12], 4294966272  ;;  %v4840_v0 = vmov 0.0   ;;  %vm3742_vm0 = vmmov 0   ;;  %v3864_v1 = vld [vmem:[#allocation8] sm:$0xff]   ;;  %v3867_v2 = vld [vmem:[#allocation8 + $0x8] sm:$0xff]  }
  0x4a   :  { %2842 = vmatprep.subr.bf16.mxu1 %v4840_v0  ;;  %2858 = vmatprep.mubr.msk.bf16.mxu1 %vm3742_vm0, %v4840_v0  ;;  %v3440_v3 = vld [vmem:[#allocation10] sm:$0xff]   ;;  %vm400_vm1 = vcmask 1045504   ;;  %v3871_v4 = vld [vmem:[#allocation8 + $0x10] sm:$0xff]   ;;  %vm315_vm2 = vcmask 228352   ;;  %v3442_v5 = vld [vmem:[#allocation10 + $0x8] sm:$0x3f]  }
  0x4b   :  { %2843 = vmatpush3.bf16.msra.mxu1 %v3864_v1  ;;  %2782 = vmatprep.subr.bf16.mxu0 %v3440_v3  ;;  %v3443_v6 = vld [vmem:[#allocation5] sm:$0xff]   ;;  %v402_v7 = vsel %vm400_vm1, %v3442_v5, 0  ;;  %v3875_v8 = vld [vmem:[#allocation8 + $0x18] sm:$0xff]   ;;  %v3445_v9 = vld [vmem:[#allocation5 + $0x8] sm:$0xff]   ;;  %v3743_v14 = vmov 0.0|0.0   ;;  %s3744_s9 = smov [#allocation13]  }
  0x4c   :  { %2844 = vmatprep.subr.bf16.mxu1 %v4840_v0  ;;  %2783 = vmatpush3.bf16.msra.mxu0 %v3440_v3  ;;  %v3879_v10 = vld [vmem:[#allocation8 + $0x20] sm:$0xff]   ;;  %v3885_v11 = vld [vmem:[#allocation8 + $0x28] sm:$0xff]   ;;  %v3891_v12 = vld [vmem:[#allocation8 + $0x30] sm:$0xff]   ;;  %s2399_s10 = sshll.u32 %s3744_s9, 4  ;;  %s2400_s10 = int_to_ptr.vmem [resolvable:$true] %s2399_s10 }
  0x4d   :  { %3422 = vmatprep.subr.msk.bf16.mxu0 %vm400_vm1, %v3442_v5  ;;  %2786 = vmatprep.mubr.msk.bf16.mxu0 %vm315_vm2, %v3443_v6  ;;  %v3897_v13 = vld [vmem:[#allocation8 + $0x38] sm:$0xff]   ;;  %v3447_v43 = vld [vmem:[#allocation5 + $0x10] sm:$0xff]   ;;  %v3449_v45 = vld [vmem:[#allocation5 + $0x20] sm:$0xff]   ;;  %s3705_s11 = scalar_lea.vmem %s2400_s10, 256  ;;  %p3710_p5 = scmp.lt.s32.totalorder %s2400_s10, %s2400_s10 }
  0x4e   :  { %v89_v15 = vld [vmem:[%s4836_s4] sm:$0x1]  ;;  %v3450_v46 = vld [vmem:[#allocation5 + $0x28] sm:$0xff]   ;;  %v3451_v47 = vld [vmem:[#allocation5 + $0x30] sm:$0xff]   ;;  %p3706_p4 = scmp.ne.s32.totalorder %s2400_s10, %s3705_s11  ;;  %p3711_p6 = scmp.lt.s32.totalorder %s3705_s11, %s3705_s11 }
  0x4f   :  { %2845 = vmatpush3.bf16.msra.mxu1 %v3867_v2  ;;  %v2413_v16 = vmul.f32 -1.442695, %v89_v15  ;;  %v3943_v24 = vld [vmem:[%s4835_s3] ss:$0 sm:$0xff]  ;;  %v3453_v49 = vld [vmem:[#allocation5 + $0x40] sm:$0xff]   ;;  %v3454_v50 = vld [vmem:[#allocation5 + $0x48] sm:$0xff]  }
  0x50   :  { %2846 = vmatprep.subr.bf16.mxu1 %v4840_v0  ;;  %2785 = vmatpush3.bf16.msra.mxu0 %v402_v7  ;;  %v3448_v44 = vld [vmem:[#allocation5 + $0x18] sm:$0xff]   ;;  %v3455_v51 = vld [vmem:[#allocation5 + $0x50] sm:$0xff]   ;;  %v3457_v53 = vld [vmem:[#allocation5 + $0x60] sm:$0xff]   ;;  %p3712_p7 = por %p3711_p6, %p3710_p5 }
  0x51   :  { %2902 = vmatprep.subr.bf16.mxu0 %v4840_v0  ;;  %3481 = vpow2.f32 %v2413_v16  ;;  %v3452_v48 = vld [vmem:[#allocation5 + $0x38] sm:$0xff]   ;;  %v3458_v54 = vld [vmem:[#allocation5 + $0x68] sm:$0xff]   ;;  %v3459_v55 = vld [vmem:[#allocation5 + $0x70] sm:$0xff]  }
  0x52   :  { %v3456_v52 = vld [vmem:[#allocation5 + $0x58] sm:$0xff]   ;;  %v3461_v57 = vld [vmem:[#allocation5 + $0x80] sm:$0xff]   ;;  %v3462_v58 = vld [vmem:[#allocation5 + $0x88] sm:$0xff]   ;;  %p3713_p8 = pnand %p3712_p7, %p3706_p4 }
  0x53   :  { %2847 = vmatpush3.bf16.msra.mxu1 %v3871_v4  ;;  %2787 = vmatmul.mubr.msk.bf16.vlgmr.msra.gmra.mrb[0].mxu0 %vm315_vm2, %v3445_v9  ;;  %v3460_v56 = vld [vmem:[#allocation5 + $0x78] sm:$0xff]   ;;  %v3463_v59 = vld [vmem:[#allocation5 + $0x90] sm:$0xff]   ;;  %v3465_v61 = vld [vmem:[#allocation5 + $0xa0] sm:$0xff]  }
  0x54   :  { %2848 = vmatprep.subr.bf16.mxu1 %v4840_v0  ;;  %2903 = vmatpush3.bf16.msra.mxu0 %v3864_v1  ;;  %v3464_v60 = vld [vmem:[#allocation5 + $0x98] sm:$0xff]   ;;  %v3466_v62 = vld [vmem:[#allocation5 + $0xa8] sm:$0xff]   ;;  %v3467_v63 = vld [vmem:[#allocation5 + $0xb0] sm:$0xff]  }
  0x55   :  { %2904 = vmatprep.subr.bf16.mxu0 %v4840_v0  ;;  %2790 = vmatprep.mubr.msk.bf16.mxu0 %vm315_vm2, %v3447_v43  ;;  %v3468_v3 = vld [vmem:[#allocation5 + $0xb8] sm:$0xff]  }
  0x57   :  { %2849 = vmatpush3.bf16.msra.mxu1 %v3875_v8 }
  0x58   :  { %2850 = vmatprep.subr.bf16.mxu1 %v4840_v0  ;;  %2905 = vmatpush3.bf16.msra.mxu0 %v3867_v2 }
  0x59   :  { %2906 = vmatprep.subr.bf16.mxu0 %v4840_v0 }
  0x5b   :  { %2851 = vmatpush3.bf16.msra.mxu1 %v3879_v10  ;;  %v3482_v17 = vpop.eup %3481  ;;  %2791 = vmatmul.mubr.msk.bf16.gmra.mrb[4].mxu0 %vm315_vm2, %v3448_v44 }
  0x5c   :  { %2852 = vmatprep.subr.bf16.mxu1 %v4840_v0  ;;  %2907 = vmatpush3.bf16.msra.mxu0 %v3871_v4  ;;  %v93_v18 = vadd.f32 1.0, %v3482_v17 }
  0x5d   :  { %2908 = vmatprep.subr.bf16.mxu0 %v4840_v0  ;;  %2794 = vmatprep.mubr.msk.bf16.mxu0 %vm315_vm2, %v3449_v45 }
  0x5e   :  { %3483 = vrcp.f32 %v93_v18 }
  0x5f   :  { %2853 = vmatpush3.bf16.msra.mxu1 %v3885_v11 }
  0x60   :  { %2854 = vmatprep.subr.bf16.mxu1 %v4840_v0  ;;  %2909 = vmatpush3.bf16.msra.mxu0 %v3875_v8 }
  0x61   :  { %2910 = vmatprep.subr.bf16.mxu0 %v4840_v0 }
  0x63   :  { %2855 = vmatpush3.bf16.msra.mxu1 %v3891_v12  ;;  %2795 = vmatmul.mubr.msk.bf16.gmra.mrb[8].mxu0 %vm315_vm2, %v3450_v46 }
  0x64   :  { %2856 = vmatprep.subr.bf16.mxu1 %v4840_v0  ;;  %2911 = vmatpush3.bf16.msra.mxu0 %v3879_v10 }
  0x65   :  { %2912 = vmatprep.subr.bf16.mxu0 %v4840_v0  ;;  %2798 = vmatprep.mubr.msk.bf16.mxu0 %vm315_vm2, %v3451_v47 }
  0x67   :  { %2857 = vmatpush3.bf16.msra.mxu1 %v3897_v13 }
  0x68   :  { %2862 = vmatprep.subr.bf16.mxu1 %v4840_v0  ;;  %2913 = vmatpush3.bf16.msra.mxu0 %v3885_v11  ;;  %v3484_v19 = vpop.eup %3483 }
  0x69   :  { %2914 = vmatprep.subr.bf16.mxu0 %v4840_v0  ;;  %96 = vst [vmem:[#allocation3] sm:$0x1] %v3484_v19 }
  0x6a   :  { %2859 = vmatmul.mubr.bf16.vlgmr.msra.gmra.mrb[0].mxu1 %v3743_v14 }
  0x6b   :  { %2863 = vmatpush3.bf16.msra.mxu1 %v3864_v1  ;;  %2878 = vmatprep.mubr.msk.bf16.mxu1 %vm3742_vm0, %v4840_v0 }
  0x6c   :  { %2864 = vmatprep.subr.bf16.mxu1 %v4840_v0  ;;  %2915 = vmatpush3.bf16.msra.mxu0 %v3891_v12 }
  0x6d   :  { %2916 = vmatprep.subr.bf16.mxu0 %v4840_v0  ;;  %2799 = vmatmul.mubr.msk.bf16.gmra.mrb[12].mxu0 %vm315_vm2, %v3452_v48 }
  0x6e   :  { %2802 = vmatprep.mubr.msk.bf16.mxu0 %vm315_vm2, %v3453_v49 }
  0x6f   :  { %2865 = vmatpush3.bf16.msra.mxu1 %v3867_v2 }
  0x70   :  { %2866 = vmatprep.subr.bf16.mxu1 %v4840_v0  ;;  %2917 = vmatpush3.bf16.msra.mxu0 %v3897_v13  ;;  %v3947_v33 = vld [vmem:[#allocation3] ss:$0 sm:$0xff] }
  0x71   :  { %2942 = vmatprep.subr.bf16.mxu0 %v4840_v0  ;;  %v3950_v34 = vsub.f32 1.0, %v3947_v33 }
  0x73   :  { %2867 = vmatpush3.bf16.msra.mxu1 %v3871_v4  ;;  %v835_v36 = vmul.f32 0.0, %v3950_v34 }
  0x74   :  { %2868 = vmatprep.subr.bf16.mxu1 %v4840_v0 }
  0x75   :  { %2803 = vmatmul.mubr.msk.bf16.gmra.mrb[16].mxu0 %vm315_vm2, %v3454_v50 }
  0x76   :  { %2806 = vmatprep.mubr.msk.bf16.mxu0 %vm315_vm2, %v3455_v51 }
  0x77   :  { %2869 = vmatpush3.bf16.msra.mxu1 %v3875_v8 }
  0x78   :  { %2870 = vmatprep.subr.bf16.mxu1 %v4840_v0 }
  0x7b   :  { %2871 = vmatpush3.bf16.msra.mxu1 %v3879_v10 }
  0x7c   :  { %2872 = vmatprep.subr.bf16.mxu1 %v4840_v0 }
  0x7d   :  { %2807 = vmatmul.mubr.msk.bf16.gmra.mrb[20].mxu0 %vm315_vm2, %v3456_v52 }
  0x7e   :  { %2810 = vmatprep.mubr.msk.bf16.mxu0 %vm315_vm2, %v3457_v53 }
  0x7f   :  { %2873 = vmatpush3.bf16.msra.mxu1 %v3885_v11 }
  0x80   :  { %2874 = vmatprep.subr.bf16.mxu1 %v4840_v0 }
  0x83   :  { %2875 = vmatpush3.bf16.msra.mxu1 %v3891_v12 }
  0x84   :  { %2876 = vmatprep.subr.bf16.mxu1 %v4840_v0 }
  0x85   :  { %2811 = vmatmul.mubr.msk.bf16.gmra.mrb[24].mxu0 %vm315_vm2, %v3458_v54 }
  0x86   :  { %2814 = vmatprep.mubr.msk.bf16.mxu0 %vm315_vm2, %v3459_v55 }
  0x87   :  { %2877 = vmatpush3.bf16.msra.mxu1 %v3897_v13 }
  0x88   :  { %2882 = vmatprep.subr.bf16.mxu1 %v4840_v0 }
  0x8d   :  { %2815 = vmatmul.mubr.msk.bf16.gmra.mrb[28].mxu0 %vm315_vm2, %v3460_v56 }
  0x8e   :  { %2818 = vmatprep.mubr.msk.bf16.mxu0 %vm315_vm2, %v3461_v57 }
  0x95   :  { %2819 = vmatmul.mubr.msk.bf16.gmra.mrb[32].mxu0 %vm315_vm2, %v3462_v58 }
  0x96   :  { %2822 = vmatprep.mubr.msk.bf16.mxu0 %vm315_vm2, %v3463_v59 }
  0x9d   :  { %2823 = vmatmul.mubr.msk.bf16.gmra.mrb[36].mxu0 %vm315_vm2, %v3464_v60 }
  0x9e   :  { %2826 = vmatprep.mubr.msk.bf16.mxu0 %vm315_vm2, %v3465_v61 }
  0xa5   :  { %2827 = vmatmul.mubr.msk.bf16.gmra.mrb[40].mxu0 %vm315_vm2, %v3466_v62 }
  0xa6   :  { %2830 = vmatprep.mubr.msk.bf16.mxu0 %vm315_vm2, %v3467_v63 }
  0xad   :  { %2831 = vmatmul.mubr.msk.bf16.gmra.mrb[44].mxu0 %vm315_vm2, %v3468_v3 }
 0x126   :  { %v3936_v20 = vpop.f32.mrb[0].mxu0 }
 0x127   :  { %v438_v21 = vpop.f32.mrb[1].mxu0  ;;  %v447_v5 = vadd.f32 %v3936_v20, %v3943_v24 }
 0x128   :  { %v3938_v22 = vpop.f32.mrb[2].mxu0  ;;  %v439_v25 = vadd.f32 %v3943_v24, %v438_v21 }
 0x129   :  { %v441_v23 = vpop.f32.mrb[3].mxu0  ;;  %v450_v7 = vadd.f32 %v3938_v22, %v3943_v24 }
 0x12a   :  { %v442_v27 = vadd.f32 %v3943_v24, %v441_v23 }
 0x13d   :  { %v828_v26 = vpop.f32.mrb[0].mxu1 }
 0x13e   :  { %v829_v28 = vadd.f32 %v828_v26, %v439_v25  ;;  %v2860_v29 = vpop.f32.mrb[1].mxu1 }
 0x13f   :  { %v831_v30 = vpop.f32.mrb[2].mxu1 }
 0x140   :  { %3485 = vtanh.f32 %v829_v28  ;;  %v832_v31 = vadd.f32 %v831_v30, %v442_v27  ;;  %v2861_v32 = vpop.f32.mrb[3].mxu1  ;;  %v4035_v28 = vpop.f32.mrb[4].mxu0 }
 0x141   :  { %v454_v29 = vpop.f32.mrb[5].mxu0  ;;  %v3469_v32 = vld [vmem:[#allocation5 + $0xc0] sm:$0xff]  }
 0x142   :  { %3487 = vtanh.f32 %v832_v31  ;;  %v4037_v30 = vpop.f32.mrb[6].mxu0  ;;  %2834 = vmatprep.mubr.msk.bf16.mxu0 %vm315_vm2, %v3469_v32 }
 0x143   :  { %v457_v31 = vpop.f32.mrb[7].mxu0 }
 0x144   :  { %v458_v32 = vadd.f32 %v3943_v24, %v457_v31 }
 0x14a   :  { %v3486_v35 = vpop.eup %3485 }
 0x14b   :  { %v839_v37 = vmul.f32 %v3486_v35, %v3947_v33  ;;  %v3470_v35 = vld [vmem:[#allocation5 + $0xc8] sm:$0xff]  }
 0x14c   :  { %v3488_v38 = vpop.eup %3487  ;;  %2835 = vmatmul.mubr.msk.bf16.gmra.mrb[48].mxu0 %vm315_vm2, %v3470_v35 }
 0x14d   :  { %v840_v39 = vmul.f32 %v3488_v38, %v3947_v33  ;;  %v3955_v40 = vadd.f32 %v839_v37, %v835_v36  ;;  %v3472_v37 = vld [vmem:[#allocation5 + $0xd8] sm:$0xff]   ;;  %v4045_v38 = vpop.f32.mrb[8].mxu0 }
 0x14f   :  { %v3957_v41 = vadd.f32 %v840_v39, %v835_v36  ;;  %v888_v19 = vmul.f32 %v3955_v40, %v3950_v34  ;;  %v3471_v36 = vld [vmem:[#allocation5 + $0xd0] sm:$0xff]   ;;  %v4047_v39 = vpop.f32.mrb[9].mxu0 }
 0x150   :  { %2838 = vmatprep.mubr.msk.bf16.mxu0 %vm315_vm2, %v3471_v36 }
 0x151   :  { %v843_v42 = vpack.c.bf16 %v3957_v41, %v3955_v40  ;;  %v889_v20 = vmul.f32 %v3957_v41, %v3950_v34  ;;  %v4049_v40 = vpop.f32.mrb[10].mxu0 }
 0x152   :  { %v4051_v41 = vpop.f32.mrb[11].mxu0 }
 0x153   :  { %2879 = vmatmul.mubr.bf16.vlgmr.msra.gmra.mrb[4].mxu1 %v843_v42  ;;  %v4053_v42 = vpop.f32.mrb[12].mxu0 }
 0x154   :  { %2883 = vmatpush3.bf16.msra.mxu1 %v3864_v1  ;;  %2898 = vmatprep.mubr.msk.bf16.mxu1 %vm3742_vm0, %v4840_v0  ;;  %v4055_v43 = vpop.f32.mrb[13].mxu0 }
 0x155   :  { %2884 = vmatprep.subr.bf16.mxu1 %v4840_v0  ;;  %2839 = vmatmul.mubr.msk.bf16.gmra.mrb[52].mxu0 %vm315_vm2, %v3472_v37  ;;  %v4057_v44 = vpop.f32.mrb[14].mxu0 }
 0x156   :  { %2918 = vmatprep.mubr.msk.bf16.mxu0 %vm3742_vm0, %v4840_v0  ;;  %v4059_v45 = vpop.f32.mrb[15].mxu0 }
 0x157   :  { %v4061_v46 = vpop.f32.mrb[16].mxu0 }
 0x158   :  { %2885 = vmatpush3.bf16.msra.mxu1 %v3867_v2  ;;  %v4063_v47 = vpop.f32.mrb[17].mxu0 }
 0x159   :  { %2886 = vmatprep.subr.bf16.mxu1 %v4840_v0  ;;  %v4065_v48 = vpop.f32.mrb[18].mxu0 }
 0x15a   :  { %v4067_v49 = vpop.f32.mrb[19].mxu0 }
 0x15b   :  { %v4069_v50 = vpop.f32.mrb[20].mxu0 }
 0x15c   :  { %2887 = vmatpush3.bf16.msra.mxu1 %v3871_v4  ;;  %v4071_v51 = vpop.f32.mrb[21].mxu0 }
 0x15d   :  { %2888 = vmatprep.subr.bf16.mxu1 %v4840_v0  ;;  %v4073_v52 = vpop.f32.mrb[22].mxu0 }
 0x15e   :  { %v4075_v53 = vpop.f32.mrb[23].mxu0 }
 0x15f   :  { %v4077_v54 = vpop.f32.mrb[24].mxu0 }
 0x160   :  { %2889 = vmatpush3.bf16.msra.mxu1 %v3875_v8  ;;  %v4079_v55 = vpop.f32.mrb[25].mxu0 }
 0x161   :  { %2890 = vmatprep.subr.bf16.mxu1 %v4840_v0  ;;  %v4081_v56 = vpop.f32.mrb[26].mxu0 }
 0x162   :  { %v4083_v57 = vpop.f32.mrb[27].mxu0 }
 0x163   :  { %v4085_v58 = vpop.f32.mrb[28].mxu0 }
 0x164   :  { %2891 = vmatpush3.bf16.msra.mxu1 %v3879_v10  ;;  %v4087_v59 = vpop.f32.mrb[29].mxu0 }
 0x165   :  { %2892 = vmatprep.subr.bf16.mxu1 %v4840_v0  ;;  %v4089_v60 = vpop.f32.mrb[30].mxu0 }
 0x166   :  { %v4091_v61 = vpop.f32.mrb[31].mxu0 }
 0x168   :  { %2893 = vmatpush3.bf16.msra.mxu1 %v3885_v11  ;;  %v4093_v62 = vpop.f32.mrb[32].mxu0 }
 0x169   :  { %2894 = vmatprep.subr.bf16.mxu1 %v4840_v0  ;;  %v4095_v63 = vpop.f32.mrb[33].mxu0 }
 0x16a   :  { %v4097_v3 = vpop.f32.mrb[34].mxu0 }
 0x16c   :  { %2895 = vmatpush3.bf16.msra.mxu1 %v3891_v12 }
 0x16d   :  { %2896 = vmatprep.subr.bf16.mxu1 %v4840_v0 }
 0x170   :  { %2897 = vmatpush3.bf16.msra.mxu1 %v3897_v13 }
 0x171   :  { %2922 = vmatprep.subr.bf16.mxu1 %v4840_v0 }
 0x226   :  { %v881_v6 = vpop.f32.mrb[4].mxu1 }
 0x227   :  { %v882_v9 = vadd.f32 %v881_v6, %v447_v5  ;;  %v2880_v14 = vpop.f32.mrb[5].mxu1  ;;  %v4099_v5 = vpop.f32.mrb[35].mxu0 }
 0x228   :  { %v884_v15 = vpop.f32.mrb[6].mxu1  ;;  %v4101_v6 = vpop.f32.mrb[36].mxu0 }
 0x229   :  { %3489 = vtanh.f32 %v882_v9  ;;  %v885_v16 = vadd.f32 %v884_v15, %v450_v7  ;;  %v2881_v17 = vpop.f32.mrb[7].mxu1  ;;  %v4103_v7 = vpop.f32.mrb[37].mxu0 }
 0x22a   :  { %v4105_v9 = vpop.f32.mrb[38].mxu0 }
 0x22b   :  { %3491 = vtanh.f32 %v885_v16  ;;  %v4107_v14 = vpop.f32.mrb[39].mxu0 }
 0x22c   :  { %v4109_v15 = vpop.f32.mrb[40].mxu0 }
 0x22d   :  { %4842 = vst [vmem:[#allocation18_spill] sm:$0xff] %v4109_v15  ;;  %v4111_v16 = vpop.f32.mrb[41].mxu0 }
 0x22e   :  { %v4113_v17 = vpop.f32.mrb[42].mxu0 }
 0x22f   :  { %4843 = vst [vmem:[#allocation19_spill] sm:$0xff] %v4113_v17 }
 0x233   :  { %v3490_v18 = vpop.eup %3489 }
 0x234   :  { %v892_v21 = vmul.f32 %v3490_v18, %v3947_v33  ;;  %v4115_v18 = vpop.f32.mrb[43].mxu0 }
 0x235   :  { %v3492_v23 = vpop.eup %3491  ;;  %4844 = vst [vmem:[#allocation20_spill] sm:$0xff] %v4115_v18 }
 0x236   :  { %v893_v25 = vmul.f32 %v3492_v23, %v3947_v33  ;;  %v4011_v22 = vadd.f32 %v892_v21, %v888_v19  ;;  %v4117_v19 = vpop.f32.mrb[44].mxu0 }
 0x237   :  { %4845 = vst [vmem:[#allocation21_spill] sm:$0xff] %v4117_v19  ;;  %v4119_v21 = vpop.f32.mrb[45].mxu0 }
 0x238   :  { %v4013_v26 = vadd.f32 %v893_v25, %v889_v20  ;;  %4846 = vst [vmem:[#allocation22_spill] sm:$0xff] %v4119_v21  ;;  %v4121_v23 = vpop.f32.mrb[46].mxu0  ;;  %v455_v25 = vadd.f32 %v3943_v24, %v454_v29  ;;  %v941_v19 = vmul.f32 %v4011_v22, %v3950_v34 }
 0x239   :  { %4847 = vst [vmem:[#allocation23_spill] sm:$0xff] %v4121_v23  ;;  %v4123_v20 = vpop.f32.mrb[47].mxu0 }
 0x23a   :  { %v896_v27 = vpack.c.bf16 %v4013_v26, %v4011_v22  ;;  %4848 = vst [vmem:[#allocation24_spill] sm:$0xff] %v4123_v20  ;;  %v942_v29 = vmul.f32 %v4013_v26, %v3950_v34 }
 0x23c   :  { %2899 = vmatmul.mubr.bf16.vlgmr.msra.gmra.mrb[8].mxu1 %v896_v27 }
 0x23d   :  { %2923 = vmatpush3.bf16.msra.mxu1 %v3864_v1  ;;  %2938 = vmatprep.mubr.msk.bf16.mxu1 %vm3742_vm0, %v4840_v0 }
 0x23e   :  { %2924 = vmatprep.subr.bf16.mxu1 %v4840_v0 }
 0x241   :  { %2925 = vmatpush3.bf16.msra.mxu1 %v3867_v2 }
 0x242   :  { %2926 = vmatprep.subr.bf16.mxu1 %v4840_v0 }
 0x245   :  { %2927 = vmatpush3.bf16.msra.mxu1 %v3871_v4 }
 0x246   :  { %2928 = vmatprep.subr.bf16.mxu1 %v4840_v0 }
 0x249   :  { %2929 = vmatpush3.bf16.msra.mxu1 %v3875_v8 }
 0x24a   :  { %2930 = vmatprep.subr.bf16.mxu1 %v4840_v0 }
 0x24d   :  { %2931 = vmatpush3.bf16.msra.mxu1 %v3879_v10 }
 0x24e   :  { %2932 = vmatprep.subr.bf16.mxu1 %v4840_v0 }
 0x251   :  { %2933 = vmatpush3.bf16.msra.mxu1 %v3885_v11 }
 0x252   :  { %2934 = vmatprep.subr.bf16.mxu1 %v4840_v0 }
 0x255   :  { %2935 = vmatpush3.bf16.msra.mxu1 %v3891_v12 }
 0x256   :  { %2936 = vmatprep.subr.bf16.mxu1 %v4840_v0 }
 0x259   :  { %2937 = vmatpush3.bf16.msra.mxu1 %v3897_v13 }
 0x25a   :  { %2962 = vmatprep.subr.bf16.mxu1 %v4840_v0 }
 0x30f   :  { %v934_v27 = vpop.f32.mrb[8].mxu1 }
 0x310   :  { %v935_v35 = vadd.f32 %v934_v27, %v455_v25  ;;  %v2900_v36 = vpop.f32.mrb[9].mxu1 }
 0x311   :  { %v937_v37 = vpop.f32.mrb[10].mxu1  ;;  %v466_v36 = vadd.f32 %v4037_v30, %v3943_v24 }
 0x312   :  { %3493 = vtanh.f32 %v935_v35  ;;  %v938_v0 = vadd.f32 %v937_v37, %v458_v32  ;;  %v2901_v17 = vpop.f32.mrb[11].mxu1  ;;  %v463_v32 = vadd.f32 %v4035_v28, %v3943_v24 }
 0x313   :  { %v4849_v17 = vmov 0.0  }
 0x314   :  { %3495 = vtanh.f32 %v938_v0  ;;  %v4151_v0 = vpop.f32.mrb[48].mxu0 }
 0x315   :  { %4850 = vst [vmem:[#allocation25_spill] sm:$0xff] %v4151_v0  ;;  %v4153_v22 = vpop.f32.mrb[49].mxu0 }
 0x316   :  { %4851 = vst [vmem:[#allocation26_spill] sm:$0xff] %v4153_v22  ;;  %v4155_v26 = vpop.f32.mrb[50].mxu0 }
 0x317   :  { %4852 = vst [vmem:[#allocation27_spill] sm:$0xff] %v4155_v26 }
 0x31c   :  { %v3494_v15 = vpop.eup %3493 }
 0x31d   :  { %v945_v23 = vmul.f32 %v3494_v15, %v3947_v33  ;;  %v4157_v15 = vpop.f32.mrb[51].mxu0 }
 0x31e   :  { %v3496_v21 = vpop.eup %3495  ;;  %4853 = vst [vmem:[#allocation28_spill] sm:$0xff] %v4157_v15 }
 0x31f   :  { %v946_v20 = vmul.f32 %v3496_v21, %v3947_v33  ;;  %v947_v31 = vadd.f32 %v945_v23, %v941_v19  ;;  %v4159_v19 = vpop.f32.mrb[52].mxu0 }
 0x320   :  { %4854 = vst [vmem:[#allocation29_spill] sm:$0xff] %v4159_v19  ;;  %v4161_v21 = vpop.f32.mrb[53].mxu0 }
 0x321   :  { %v948_v25 = vadd.f32 %v946_v20, %v942_v29  ;;  %4855 = vst [vmem:[#allocation30_spill] sm:$0xff] %v4161_v21  ;;  %v4163_v23 = vpop.f32.mrb[54].mxu0  ;;  %v994_v21 = vmul.f32 %v947_v31, %v3950_v34 }
 0x322   :  { %4856 = vst [vmem:[#allocation31_spill] sm:$0xff] %v4163_v23  ;;  %v4165_v20 = vpop.f32.mrb[55].mxu0 }
 0x323   :  { %v949_v27 = vpack.c.bf16 %v948_v25, %v947_v31  ;;  %4857 = vst [vmem:[#allocation32_spill] sm:$0xff] %v4165_v20  ;;  %v995_v15 = vmul.f32 %v948_v25, %v3950_v34  ;;  %v471_v31 = vadd.f32 %v3943_v24, %v4047_v39 }
 0x325   :  { %2919 = vmatmul.mubr.bf16.vlgmr.msra.gmra.mrb[56].mxu0 %v949_v27 }
 0x326   :  { %2943 = vmatpush3.bf16.msra.mxu0 %v3864_v1  ;;  %2958 = vmatprep.mubr.msk.bf16.mxu0 %vm3742_vm0, %v4849_v17 }
 0x327   :  { %2944 = vmatprep.subr.bf16.mxu0 %v4849_v17 }
 0x32a   :  { %2945 = vmatpush3.bf16.msra.mxu0 %v3867_v2 }
 0x32b   :  { %2946 = vmatprep.subr.bf16.mxu0 %v4849_v17 }
 0x32e   :  { %2947 = vmatpush3.bf16.msra.mxu0 %v3871_v4 }
 0x32f   :  { %2948 = vmatprep.subr.bf16.mxu0 %v4849_v17 }
 0x332   :  { %2949 = vmatpush3.bf16.msra.mxu0 %v3875_v8 }
 0x333   :  { %2950 = vmatprep.subr.bf16.mxu0 %v4849_v17 }
 0x336   :  { %2951 = vmatpush3.bf16.msra.mxu0 %v3879_v10 }
 0x337   :  { %2952 = vmatprep.subr.bf16.mxu0 %v4849_v17 }
 0x33a   :  { %2953 = vmatpush3.bf16.msra.mxu0 %v3885_v11 }
 0x33b   :  { %2954 = vmatprep.subr.bf16.mxu0 %v4849_v17 }
 0x33e   :  { %2955 = vmatpush3.bf16.msra.mxu0 %v3891_v12 }
 0x33f   :  { %2956 = vmatprep.subr.bf16.mxu0 %v4849_v17 }
 0x342   :  { %2957 = vmatpush3.bf16.msra.mxu0 %v3897_v13 }
 0x343   :  { %2982 = vmatprep.subr.bf16.mxu0 %v4849_v17 }
 0x3f8   :  { %v987_v35 = vpop.f32.mrb[56].mxu0 }
 0x3f9   :  { %v988_v37 = vadd.f32 %v987_v35, %v463_v32  ;;  %v2920_v29 = vpop.f32.mrb[57].mxu0 }
 0x3fa   :  { %v990_v27 = vpop.f32.mrb[58].mxu0 }
 0x3fb   :  { %3497 = vtanh.f32 %v988_v37  ;;  %v991_v26 = vadd.f32 %v990_v27, %v466_v36  ;;  %v2921_v0 = vpop.f32.mrb[59].mxu0 }
 0x3fc   :  { %v474_v0 = vadd.f32 %v3943_v24, %v4051_v41 }
 0x3fd   :  { %3499 = vtanh.f32 %v991_v26 }
 0x405   :  { %v3498_v19 = vpop.eup %3497 }
 0x406   :  { %v998_v23 = vmul.f32 %v3498_v19, %v3947_v33 }
 0x407   :  { %v3500_v20 = vpop.eup %3499 }
 0x408   :  { %v999_v28 = vmul.f32 %v3500_v20, %v3947_v33  ;;  %v1000_v22 = vadd.f32 %v998_v23, %v994_v21 }
 0x40a   :  { %v1001_v18 = vadd.f32 %v999_v28, %v995_v15  ;;  %v1047_v32 = vmul.f32 %v1000_v22, %v3950_v34  ;;  %v482_v28 = vadd.f32 %v4049_v40, %v3943_v24 }
 0x40c   :  { %v1002_v30 = vpack.c.bf16 %v1001_v18, %v1000_v22  ;;  %v1048_v37 = vmul.f32 %v1001_v18, %v3950_v34  ;;  %v479_v18 = vadd.f32 %v4045_v38, %v3943_v24 }
 0x40e   :  { %2939 = vmatmul.mubr.bf16.vlgmr.msra.gmra.mrb[12].mxu1 %v1002_v30 }
 0x40f   :  { %2963 = vmatpush3.bf16.msra.mxu1 %v3864_v1  ;;  %2978 = vmatprep.mubr.msk.bf16.mxu1 %vm3742_vm0, %v4849_v17 }
 0x410   :  { %2964 = vmatprep.subr.bf16.mxu1 %v4849_v17 }
 0x413   :  { %2965 = vmatpush3.bf16.msra.mxu1 %v3867_v2 }
 0x414   :  { %2966 = vmatprep.subr.bf16.mxu1 %v4849_v17 }
 0x417   :  { %2967 = vmatpush3.bf16.msra.mxu1 %v3871_v4 }
 0x418   :  { %2968 = vmatprep.subr.bf16.mxu1 %v4849_v17 }
 0x41b   :  { %2969 = vmatpush3.bf16.msra.mxu1 %v3875_v8 }
 0x41c   :  { %2970 = vmatprep.subr.bf16.mxu1 %v4849_v17 }
 0x41f   :  { %2971 = vmatpush3.bf16.msra.mxu1 %v3879_v10 }
 0x420   :  { %2972 = vmatprep.subr.bf16.mxu1 %v4849_v17 }
 0x423   :  { %2973 = vmatpush3.bf16.msra.mxu1 %v3885_v11 }
 0x424   :  { %2974 = vmatprep.subr.bf16.mxu1 %v4849_v17 }
 0x427   :  { %2975 = vmatpush3.bf16.msra.mxu1 %v3891_v12 }
 0x428   :  { %2976 = vmatprep.subr.bf16.mxu1 %v4849_v17 }
 0x42b   :  { %2977 = vmatpush3.bf16.msra.mxu1 %v3897_v13 }
 0x42c   :  { %3002 = vmatprep.subr.bf16.mxu1 %v4849_v17 }
 0x4e1   :  { %v1040_v25 = vpop.f32.mrb[12].mxu1 }
 0x4e2   :  { %v1041_v26 = vadd.f32 %v1040_v25, %v471_v31  ;;  %v2940_v15 = vpop.f32.mrb[13].mxu1 }
 0x4e3   :  { %v1043_v19 = vpop.f32.mrb[14].mxu1 }
 0x4e4   :  { %3501 = vtanh.f32 %v1041_v26  ;;  %v1044_v21 = vadd.f32 %v1043_v19, %v474_v0  ;;  %v2941_v23 = vpop.f32.mrb[15].mxu1 }
 0x4e6   :  { %3503 = vtanh.f32 %v1044_v21 }
 0x4ee   :  { %v3502_v20 = vpop.eup %3501 }
 0x4ef   :  { %v1051_v35 = vmul.f32 %v3502_v20, %v3947_v33 }
 0x4f0   :  { %v3504_v36 = vpop.eup %3503 }
 0x4f1   :  { %v1052_v39 = vmul.f32 %v3504_v36, %v3947_v33  ;;  %v1053_v29 = vadd.f32 %v1051_v35, %v1047_v32 }
 0x4f3   :  { %v1054_v27 = vadd.f32 %v1052_v39, %v1048_v37  ;;  %v1100_v19 = vmul.f32 %v1053_v29, %v3950_v34 }
 0x4f5   :  { %v1055_v41 = vpack.c.bf16 %v1054_v27, %v1053_v29  ;;  %v1101_v20 = vmul.f32 %v1054_v27, %v3950_v34 }
 0x4f7   :  { %2959 = vmatmul.mubr.bf16.vlgmr.msra.gmra.mrb[60].mxu0 %v1055_v41 }
 0x4f8   :  { %2983 = vmatpush3.bf16.msra.mxu0 %v3864_v1  ;;  %2998 = vmatprep.mubr.msk.bf16.mxu0 %vm3742_vm0, %v4849_v17 }
 0x4f9   :  { %2984 = vmatprep.subr.bf16.mxu0 %v4849_v17 }
 0x4fc   :  { %2985 = vmatpush3.bf16.msra.mxu0 %v3867_v2 }
 0x4fd   :  { %2986 = vmatprep.subr.bf16.mxu0 %v4849_v17 }
 0x500   :  { %2987 = vmatpush3.bf16.msra.mxu0 %v3871_v4 }
 0x501   :  { %2988 = vmatprep.subr.bf16.mxu0 %v4849_v17 }
 0x504   :  { %2989 = vmatpush3.bf16.msra.mxu0 %v3875_v8 }
 0x505   :  { %2990 = vmatprep.subr.bf16.mxu0 %v4849_v17 }
 0x508   :  { %2991 = vmatpush3.bf16.msra.mxu0 %v3879_v10 }
 0x509   :  { %2992 = vmatprep.subr.bf16.mxu0 %v4849_v17 }
 0x50c   :  { %2993 = vmatpush3.bf16.msra.mxu0 %v3885_v11 }
 0x50d   :  { %2994 = vmatprep.subr.bf16.mxu0 %v4849_v17 }
 0x510   :  { %2995 = vmatpush3.bf16.msra.mxu0 %v3891_v12 }
 0x511   :  { %2996 = vmatprep.subr.bf16.mxu0 %v4849_v17 }
 0x514   :  { %2997 = vmatpush3.bf16.msra.mxu0 %v3897_v13 }
 0x515   :  { %3022 = vmatprep.subr.bf16.mxu0 %v4849_v17 }
 0x5ca   :  { %v1093_v22 = vpop.f32.mrb[60].mxu0 }
 0x5cb   :  { %v1094_v30 = vadd.f32 %v1093_v22, %v479_v18  ;;  %v2960_v31 = vpop.f32.mrb[61].mxu0 }
 0x5cc   :  { %v1096_v25 = vpop.f32.mrb[62].mxu0 }
 0x5cd   :  { %3505 = vtanh.f32 %v1094_v30  ;;  %v1097_v0 = vadd.f32 %v1096_v25, %v482_v28  ;;  %v2961_v26 = vpop.f32.mrb[63].mxu0 }
 0x5ce   :  { %v4259_v26 = vld [vmem:[#allocation8 + $0x8] sm:$0xff]  }
 0x5cf   :  { %3507 = vtanh.f32 %v1097_v0  ;;  %v4253_v0 = vld [vmem:[#allocation8] sm:$0xff]  }
 0x5d7   :  { %v3506_v15 = vpop.eup %3505 }
 0x5d8   :  { %v1104_v21 = vmul.f32 %v3506_v15, %v3947_v33  ;;  %v4263_v15 = vld [vmem:[#allocation8 + $0x10] sm:$0xff]  }
 0x5d9   :  { %v3508_v23 = vpop.eup %3507 }
 0x5da   :  { %v1105_v38 = vmul.f32 %v3508_v23, %v3947_v33  ;;  %v1106_v32 = vadd.f32 %v1104_v21, %v1100_v19 }
 0x5dc   :  { %v1107_v35 = vadd.f32 %v1105_v38, %v1101_v20  ;;  %v1153_v18 = vmul.f32 %v1106_v32, %v3950_v34 }
 0x5de   :  { %v1108_v40 = vpack.c.bf16 %v1107_v35, %v1106_v32  ;;  %v1154_v30 = vmul.f32 %v1107_v35, %v3950_v34 }
 0x5e0   :  { %2979 = vmatmul.mubr.bf16.vlgmr.msra.gmra.mrb[16].mxu1 %v1108_v40 }
 0x5e1   :  { %3003 = vmatpush3.bf16.msra.mxu1 %v3864_v1  ;;  %3018 = vmatprep.mubr.msk.bf16.mxu1 %vm3742_vm0, %v4849_v17  ;;  %v487_v1 = vadd.f32 %v3943_v24, %v4055_v43 }
 0x5e2   :  { %3004 = vmatprep.subr.bf16.mxu1 %v4849_v17 }
 0x5e5   :  { %3005 = vmatpush3.bf16.msra.mxu1 %v3867_v2 }
 0x5e6   :  { %3006 = vmatprep.subr.bf16.mxu1 %v4849_v17 }
 0x5e9   :  { %3007 = vmatpush3.bf16.msra.mxu1 %v3871_v4  ;;  %v490_v4 = vadd.f32 %v3943_v24, %v4059_v45 }
 0x5ea   :  { %3008 = vmatprep.subr.bf16.mxu1 %v4849_v17 }
 0x5ed   :  { %3009 = vmatpush3.bf16.msra.mxu1 %v3875_v8 }
 0x5ee   :  { %3010 = vmatprep.subr.bf16.mxu1 %v4849_v17 }
 0x5f1   :  { %3011 = vmatpush3.bf16.msra.mxu1 %v3879_v10 }
 0x5f2   :  { %3012 = vmatprep.subr.bf16.mxu1 %v4849_v17 }
 0x5f5   :  { %3013 = vmatpush3.bf16.msra.mxu1 %v3885_v11 }
 0x5f6   :  { %3014 = vmatprep.subr.bf16.mxu1 %v4849_v17 }
 0x5f9   :  { %3015 = vmatpush3.bf16.msra.mxu1 %v3891_v12 }
 0x5fa   :  { %3016 = vmatprep.subr.bf16.mxu1 %v4849_v17 }
 0x5fd   :  { %3017 = vmatpush3.bf16.msra.mxu1 %v3897_v13 }
 0x5fe   :  { %3042 = vmatprep.subr.bf16.mxu1 %v4849_v17 }
 0x6b3   :  { %v1146_v2 = vpop.f32.mrb[16].mxu1 }
 0x6b4   :  { %v1147_v36 = vadd.f32 %v1146_v2, %v487_v1  ;;  %v2980_v37 = vpop.f32.mrb[17].mxu1 }
 0x6b5   :  { %v1149_v39 = vpop.f32.mrb[18].mxu1 }
 0x6b6   :  { %3509 = vtanh.f32 %v1147_v36  ;;  %v1150_v29 = vadd.f32 %v1149_v39, %v490_v4  ;;  %v2981_v27 = vpop.f32.mrb[19].mxu1  ;;  %v4293_v39 = vld [vmem:[#allocation8 + $0x18] sm:$0xff]  }
 0x6b7   :  { %v503_v27 = vadd.f32 %v3943_v24, %v4063_v47 }
 0x6b8   :  { %3511 = vtanh.f32 %v1150_v29  ;;  %v4297_v29 = vld [vmem:[#allocation8 + $0x20] sm:$0xff]  }
 0x6c0   :  { %v3510_v41 = vpop.eup %3509 }
 0x6c1   :  { %v1157_v22 = vmul.f32 %v3510_v41, %v3947_v33 }
 0x6c2   :  { %v3512_v28 = vpop.eup %3511 }
 0x6c3   :  { %v1158_v43 = vmul.f32 %v3512_v28, %v3947_v33  ;;  %v1159_v31 = vadd.f32 %v1157_v22, %v1153_v18  ;;  %v506_v18 = vadd.f32 %v3943_v24, %v4067_v49 }
 0x6c5   :  { %v1160_v25 = vadd.f32 %v1158_v43, %v1154_v30  ;;  %v1206_v40 = vmul.f32 %v1159_v31, %v3950_v34 }
 0x6c7   :  { %v1161_v45 = vpack.c.bf16 %v1160_v25, %v1159_v31  ;;  %v1207_v4 = vmul.f32 %v1160_v25, %v3950_v34 }
 0x6c9   :  { %2999 = vmatmul.mubr.bf16.vlgmr.msra.gmra.mrb[64].mxu0 %v1161_v45 }
 0x6ca   :  { %3023 = vmatpush3.bf16.msra.mxu0 %v4253_v0  ;;  %3038 = vmatprep.mubr.msk.bf16.mxu0 %vm3742_vm0, %v4849_v17 }
 0x6cb   :  { %3024 = vmatprep.subr.bf16.mxu0 %v4849_v17 }
 0x6ce   :  { %3025 = vmatpush3.bf16.msra.mxu0 %v4259_v26 }
 0x6cf   :  { %3026 = vmatprep.subr.bf16.mxu0 %v4849_v17 }
 0x6d2   :  { %3027 = vmatpush3.bf16.msra.mxu0 %v4263_v15 }
 0x6d3   :  { %3028 = vmatprep.subr.bf16.mxu0 %v4849_v17 }
 0x6d6   :  { %3029 = vmatpush3.bf16.msra.mxu0 %v3875_v8  ;;  %v495_v8 = vadd.f32 %v4053_v42, %v3943_v24 }
 0x6d7   :  { %3030 = vmatprep.subr.bf16.mxu0 %v4849_v17 }
 0x6da   :  { %3031 = vmatpush3.bf16.msra.mxu0 %v3879_v10  ;;  %v498_v10 = vadd.f32 %v4057_v44, %v3943_v24 }
 0x6db   :  { %3032 = vmatprep.subr.bf16.mxu0 %v4849_v17 }
 0x6de   :  { %3033 = vmatpush3.bf16.msra.mxu0 %v3885_v11 }
 0x6df   :  { %3034 = vmatprep.subr.bf16.mxu0 %v4849_v17 }
 0x6e2   :  { %3035 = vmatpush3.bf16.msra.mxu0 %v3891_v12 }
 0x6e3   :  { %3036 = vmatprep.subr.bf16.mxu0 %v4849_v17 }
 0x6e6   :  { %3037 = vmatpush3.bf16.msra.mxu0 %v3897_v13 }
 0x6e7   :  { %3062 = vmatprep.subr.bf16.mxu0 %v4849_v17 }
 0x79c   :  { %v1199_v19 = vpop.f32.mrb[64].mxu0 }
 0x79d   :  { %v1200_v21 = vadd.f32 %v1199_v19, %v495_v8  ;;  %v3000_v23 = vpop.f32.mrb[65].mxu0 }
 0x79e   :  { %v1202_v20 = vpop.f32.mrb[66].mxu0  ;;  %v4335_v23 = vld [vmem:[#allocation8 + $0x38] sm:$0xff]  }
 0x79f   :  { %3513 = vtanh.f32 %v1200_v21  ;;  %v1203_v38 = vadd.f32 %v1202_v20, %v498_v10  ;;  %v3001_v32 = vpop.f32.mrb[67].mxu0  ;;  %v4327_v10 = vld [vmem:[#allocation8 + $0x28] sm:$0xff]   ;;  %v4331_v21 = vld [vmem:[#allocation8 + $0x30] sm:$0xff]   ;;  %v511_v20 = vadd.f32 %v4061_v46, %v3943_v24 }
 0x7a0   :  { %v514_v32 = vadd.f32 %v4065_v48, %v3943_v24 }
 0x7a1   :  { %3515 = vtanh.f32 %v1203_v38 }
 0x7a9   :  { %v3514_v35 = vpop.eup %3513 }
 0x7aa   :  { %v1210_v1 = vmul.f32 %v3514_v35, %v3947_v33 }
 0x7ab   :  { %v3516_v2 = vpop.eup %3515 }
 0x7ac   :  { %v1211_v42 = vmul.f32 %v3516_v2, %v3947_v33  ;;  %v1212_v36 = vadd.f32 %v1210_v1, %v1206_v40 }
 0x7ae   :  { %v1213_v37 = vadd.f32 %v1211_v42, %v1207_v4  ;;  %v1259_v31 = vmul.f32 %v1212_v36, %v3950_v34 }
 0x7b0   :  { %v1214_v44 = vpack.c.bf16 %v1213_v37, %v1212_v36  ;;  %v1260_v45 = vmul.f32 %v1213_v37, %v3950_v34 }
 0x7b2   :  { %3019 = vmatmul.mubr.bf16.vlgmr.msra.gmra.mrb[20].mxu1 %v1214_v44 }
 0x7b3   :  { %3043 = vmatpush3.bf16.msra.mxu1 %v4253_v0  ;;  %3058 = vmatprep.mubr.msk.bf16.mxu1 %vm3742_vm0, %v4849_v17 }
 0x7b4   :  { %3044 = vmatprep.subr.bf16.mxu1 %v4849_v17 }
 0x7b7   :  { %3045 = vmatpush3.bf16.msra.mxu1 %v4259_v26 }
 0x7b8   :  { %3046 = vmatprep.subr.bf16.mxu1 %v4849_v17 }
 0x7bb   :  { %3047 = vmatpush3.bf16.msra.mxu1 %v4263_v15 }
 0x7bc   :  { %3048 = vmatprep.subr.bf16.mxu1 %v4849_v17 }
 0x7bf   :  { %3049 = vmatpush3.bf16.msra.mxu1 %v4293_v39 }
 0x7c0   :  { %3050 = vmatprep.subr.bf16.mxu1 %v4849_v17 }
 0x7c3   :  { %3051 = vmatpush3.bf16.msra.mxu1 %v4297_v29 }
 0x7c4   :  { %3052 = vmatprep.subr.bf16.mxu1 %v4849_v17 }
 0x7c7   :  { %3053 = vmatpush3.bf16.msra.mxu1 %v3885_v11 }
 0x7c8   :  { %3054 = vmatprep.subr.bf16.mxu1 %v4849_v17 }
 0x7cb   :  { %3055 = vmatpush3.bf16.msra.mxu1 %v3891_v12 }
 0x7cc   :  { %3056 = vmatprep.subr.bf16.mxu1 %v4849_v17 }
 0x7cf   :  { %3057 = vmatpush3.bf16.msra.mxu1 %v3897_v13 }
 0x7d0   :  { %3082 = vmatprep.subr.bf16.mxu1 %v4849_v17 }
 0x885   :  { %v1252_v41 = vpop.f32.mrb[20].mxu1 }
 0x886   :  { %v1253_v22 = vadd.f32 %v1252_v41, %v503_v27  ;;  %v3020_v28 = vpop.f32.mrb[21].mxu1 }
 0x887   :  { %v1255_v11 = vpop.f32.mrb[22].mxu1 }
 0x888   :  { %3517 = vtanh.f32 %v1253_v22  ;;  %v1256_v30 = vadd.f32 %v1255_v11, %v506_v18  ;;  %v3021_v43 = vpop.f32.mrb[23].mxu1  ;;  %v519_v22 = vadd.f32 %v3943_v24, %v4071_v51  ;;  %v522_v11 = vadd.f32 %v3943_v24, %v4075_v53 }
 0x88a   :  { %3519 = vtanh.f32 %v1256_v30 }
 0x892   :  { %v3518_v12 = vpop.eup %3517 }
 0x893   :  { %v1263_v13 = vmul.f32 %v3518_v12, %v3947_v33 }
 0x894   :  { %v3520_v25 = vpop.eup %3519 }
 0x895   :  { %v1264_v47 = vmul.f32 %v3520_v25, %v3947_v33  ;;  %v1265_v8 = vadd.f32 %v1263_v13, %v1259_v31 }
 0x897   :  { %v1266_v19 = vadd.f32 %v1264_v47, %v1260_v45  ;;  %v1312_v36 = vmul.f32 %v1265_v8, %v3950_v34 }
 0x899   :  { %v1267_v49 = vpack.c.bf16 %v1266_v19, %v1265_v8  ;;  %v1313_v27 = vmul.f32 %v1266_v19, %v3950_v34 }
 0x89b   :  { %3039 = vmatmul.mubr.bf16.vlgmr.msra.gmra.mrb[68].mxu0 %v1267_v49 }
 0x89c   :  { %3063 = vmatpush3.bf16.msra.mxu0 %v4253_v0  ;;  %3078 = vmatprep.mubr.msk.bf16.mxu0 %vm3742_vm0, %v4849_v17 }
 0x89d   :  { %3064 = vmatprep.subr.bf16.mxu0 %v4849_v17 }
 0x8a0   :  { %3065 = vmatpush3.bf16.msra.mxu0 %v4259_v26 }
 0x8a1   :  { %3066 = vmatprep.subr.bf16.mxu0 %v4849_v17 }
 0x8a4   :  { %3067 = vmatpush3.bf16.msra.mxu0 %v4263_v15 }
 0x8a5   :  { %3068 = vmatprep.subr.bf16.mxu0 %v4849_v17 }
 0x8a8   :  { %3069 = vmatpush3.bf16.msra.mxu0 %v4293_v39 }
 0x8a9   :  { %3070 = vmatprep.subr.bf16.mxu0 %v4849_v17 }
 0x8ac   :  { %3071 = vmatpush3.bf16.msra.mxu0 %v4297_v29 }
 0x8ad   :  { %3072 = vmatprep.subr.bf16.mxu0 %v4849_v17 }
 0x8b0   :  { %3073 = vmatpush3.bf16.msra.mxu0 %v4327_v10 }
 0x8b1   :  { %3074 = vmatprep.subr.bf16.mxu0 %v4849_v17 }
 0x8b4   :  { %3075 = vmatpush3.bf16.msra.mxu0 %v4331_v21 }
 0x8b5   :  { %3076 = vmatprep.subr.bf16.mxu0 %v4849_v17 }
 0x8b8   :  { %3077 = vmatpush3.bf16.msra.mxu0 %v4335_v23 }
 0x8b9   :  { %3102 = vmatprep.subr.bf16.mxu0 %v4849_v17 }
 0x96e   :  { %v1305_v38 = vpop.f32.mrb[68].mxu0 }
 0x96f   :  { %v1306_v35 = vadd.f32 %v1305_v38, %v511_v20  ;;  %v3040_v40 = vpop.f32.mrb[69].mxu0 }
 0x970   :  { %v1308_v1 = vpop.f32.mrb[70].mxu0 }
 0x971   :  { %3521 = vtanh.f32 %v1306_v35  ;;  %v1309_v2 = vadd.f32 %v1308_v1, %v514_v32  ;;  %v3041_v4 = vpop.f32.mrb[71].mxu0 }
 0x973   :  { %3523 = vtanh.f32 %v1309_v2 }
 0x97b   :  { %v3522_v42 = vpop.eup %3521 }
 0x97c   :  { %v1316_v37 = vmul.f32 %v3522_v42, %v3947_v33 }
 0x97d   :  { %v3524_v44 = vpop.eup %3523 }
 0x97e   :  { %v1317_v46 = vmul.f32 %v3524_v44, %v3947_v33  ;;  %v1318_v41 = vadd.f32 %v1316_v37, %v1312_v36  ;;  %v4401_v37 = vld [vmem:[#allocation3] ss:$0 sm:$0xff] }
 0x980   :  { %v1319_v18 = vadd.f32 %v1317_v46, %v1313_v27  ;;  %v1365_v45 = vmul.f32 %v1318_v41, %v3950_v34 }
 0x982   :  { %v1320_v48 = vpack.c.bf16 %v1319_v18, %v1318_v41  ;;  %v1366_v19 = vmul.f32 %v1319_v18, %v3950_v34 }
 0x984   :  { %3059 = vmatmul.mubr.bf16.vlgmr.msra.gmra.mrb[24].mxu1 %v1320_v48 }
 0x985   :  { %3083 = vmatpush3.bf16.msra.mxu1 %v4253_v0  ;;  %3098 = vmatprep.mubr.msk.bf16.mxu1 %vm3742_vm0, %v4849_v17 }
 0x986   :  { %3084 = vmatprep.subr.bf16.mxu1 %v4849_v17 }
 0x989   :  { %3085 = vmatpush3.bf16.msra.mxu1 %v4259_v26 }
 0x98a   :  { %3086 = vmatprep.subr.bf16.mxu1 %v4849_v17 }
 0x98d   :  { %3087 = vmatpush3.bf16.msra.mxu1 %v4263_v15 }
 0x98e   :  { %3088 = vmatprep.subr.bf16.mxu1 %v4849_v17 }
 0x991   :  { %3089 = vmatpush3.bf16.msra.mxu1 %v4293_v39 }
 0x992   :  { %3090 = vmatprep.subr.bf16.mxu1 %v4849_v17 }
 0x995   :  { %3091 = vmatpush3.bf16.msra.mxu1 %v4297_v29 }
 0x996   :  { %3092 = vmatprep.subr.bf16.mxu1 %v4849_v17 }
 0x999   :  { %3093 = vmatpush3.bf16.msra.mxu1 %v4327_v10 }
 0x99a   :  { %3094 = vmatprep.subr.bf16.mxu1 %v4849_v17 }
 0x99d   :  { %3095 = vmatpush3.bf16.msra.mxu1 %v4331_v21 }
 0x99e   :  { %3096 = vmatprep.subr.bf16.mxu1 %v4849_v17 }
 0x9a1   :  { %3097 = vmatpush3.bf16.msra.mxu1 %v4335_v23 }
 0x9a2   :  { %3122 = vmatprep.subr.bf16.mxu1 %v4849_v17 }
 0xa57   :  { %v1358_v28 = vpop.f32.mrb[24].mxu1 }
 0xa58   :  { %v1359_v30 = vadd.f32 %v1358_v28, %v519_v22  ;;  %v3060_v43 = vpop.f32.mrb[25].mxu1 }
 0xa59   :  { %v1361_v12 = vpop.f32.mrb[26].mxu1 }
 0xa5a   :  { %3525 = vtanh.f32 %v1359_v30  ;;  %v1362_v31 = vadd.f32 %v1361_v12, %v522_v11  ;;  %v3061_v13 = vpop.f32.mrb[27].mxu1 }
 0xa5c   :  { %3527 = vtanh.f32 %v1362_v31 }
 0xa64   :  { %v3526_v25 = vpop.eup %3525 }
 0xa65   :  { %v1369_v47 = vmul.f32 %v3526_v25, %v3947_v33 }
 0xa66   :  { %v3528_v8 = vpop.eup %3527 }
 0xa67   :  { %v1370_v51 = vmul.f32 %v3528_v8, %v3947_v33  ;;  %v1371_v49 = vadd.f32 %v1369_v47, %v1365_v45  ;;  %v4394_v33 = vld [vmem:[%s4835_s3] ss:$0 sm:$0xff] }
 0xa68   :  { %v527_v53 = vadd.f32 %v4394_v33, %v4069_v50  ;;  %v530_v32 = vadd.f32 %v4394_v33, %v4073_v52  ;;  %v535_v48 = vadd.f32 %v4394_v33, %v4079_v55  ;;  %v538_v28 = vadd.f32 %v4394_v33, %v4083_v57 }
 0xa69   :  { %v1372_v20 = vadd.f32 %v1370_v51, %v1366_v19  ;;  %v1418_v36 = vmul.f32 %v1371_v49, %v3950_v34 }
 0xa6b   :  { %v1373_v24 = vpack.c.bf16 %v1372_v20, %v1371_v49  ;;  %v1419_v50 = vmul.f32 %v1372_v20, %v3950_v34  ;;  %v543_v49 = vadd.f32 %v4394_v33, %v4077_v54 }
 0xa6d   :  { %3079 = vmatmul.mubr.bf16.vlgmr.msra.gmra.mrb[72].mxu0 %v1373_v24  ;;  %v546_v24 = vadd.f32 %v4394_v33, %v4081_v56 }
 0xa6e   :  { %3103 = vmatpush3.bf16.msra.mxu0 %v4253_v0  ;;  %3118 = vmatprep.mubr.msk.bf16.mxu0 %vm3742_vm0, %v4849_v17 }
 0xa6f   :  { %3104 = vmatprep.subr.bf16.mxu0 %v4849_v17 }
 0xa72   :  { %3105 = vmatpush3.bf16.msra.mxu0 %v4259_v26 }
 0xa73   :  { %3106 = vmatprep.subr.bf16.mxu0 %v4849_v17 }
 0xa76   :  { %3107 = vmatpush3.bf16.msra.mxu0 %v4263_v15 }
 0xa77   :  { %3108 = vmatprep.subr.bf16.mxu0 %v4849_v17 }
 0xa7a   :  { %3109 = vmatpush3.bf16.msra.mxu0 %v4293_v39 }
 0xa7b   :  { %3110 = vmatprep.subr.bf16.mxu0 %v4849_v17 }
 0xa7e   :  { %3111 = vmatpush3.bf16.msra.mxu0 %v4297_v29 }
 0xa7f   :  { %3112 = vmatprep.subr.bf16.mxu0 %v4849_v17 }
 0xa82   :  { %3113 = vmatpush3.bf16.msra.mxu0 %v4327_v10 }
 0xa83   :  { %3114 = vmatprep.subr.bf16.mxu0 %v4849_v17 }
 0xa86   :  { %3115 = vmatpush3.bf16.msra.mxu0 %v4331_v21 }
 0xa87   :  { %3116 = vmatprep.subr.bf16.mxu0 %v4849_v17 }
 0xa8a   :  { %3117 = vmatpush3.bf16.msra.mxu0 %v4335_v23 }
 0xa8b   :  { %3142 = vmatprep.subr.bf16.mxu0 %v4849_v17 }
 0xb40   :  { %v1411_v38 = vpop.f32.mrb[72].mxu0 }
 0xb41   :  { %v1412_v35 = vadd.f32 %v1411_v38, %v527_v53  ;;  %v3080_v40 = vpop.f32.mrb[73].mxu0 }
 0xb42   :  { %v1414_v1 = vpop.f32.mrb[74].mxu0 }
 0xb43   :  { %3529 = vtanh.f32 %v1412_v35  ;;  %v1415_v2 = vadd.f32 %v1414_v1, %v530_v32  ;;  %v3081_v4 = vpop.f32.mrb[75].mxu0 }
 0xb45   :  { %3531 = vtanh.f32 %v1415_v2 }
 0xb4d   :  { %v3530_v42 = vpop.eup %3529 }
 0xb4e   :  { %v1422_v44 = vmul.f32 %v4401_v37, %v3530_v42 }
 0xb4f   :  { %v3532_v27 = vpop.eup %3531 }
 0xb50   :  { %v1423_v46 = vmul.f32 %v4401_v37, %v3532_v27  ;;  %v1424_v52 = vadd.f32 %v1422_v44, %v1418_v36 }
 0xb52   :  { %v1425_v41 = vadd.f32 %v1423_v46, %v1419_v50  ;;  %v1471_v25 = vmul.f32 %v1424_v52, %v3950_v34  ;;  %v551_v50 = vadd.f32 %v4394_v33, %v4087_v59 }
 0xb54   :  { %v1426_v18 = vpack.c.bf16 %v1425_v41, %v1424_v52  ;;  %v1472_v8 = vmul.f32 %v1425_v41, %v3950_v34  ;;  %v554_v52 = vadd.f32 %v4394_v33, %v4091_v61 }
 0xb56   :  { %3099 = vmatmul.mubr.bf16.vlgmr.msra.gmra.mrb[28].mxu1 %v1426_v18 }
 0xb57   :  { %3123 = vmatpush3.bf16.msra.mxu1 %v4253_v0  ;;  %3138 = vmatprep.mubr.msk.bf16.mxu1 %vm3742_vm0, %v4849_v17 }
 0xb58   :  { %3124 = vmatprep.subr.bf16.mxu1 %v4849_v17 }
 0xb5b   :  { %3125 = vmatpush3.bf16.msra.mxu1 %v4259_v26 }
 0xb5c   :  { %3126 = vmatprep.subr.bf16.mxu1 %v4849_v17 }
 0xb5f   :  { %3127 = vmatpush3.bf16.msra.mxu1 %v4263_v15 }
 0xb60   :  { %3128 = vmatprep.subr.bf16.mxu1 %v4849_v17 }
 0xb63   :  { %3129 = vmatpush3.bf16.msra.mxu1 %v4293_v39 }
 0xb64   :  { %3130 = vmatprep.subr.bf16.mxu1 %v4849_v17 }
 0xb67   :  { %3131 = vmatpush3.bf16.msra.mxu1 %v4297_v29 }
 0xb68   :  { %3132 = vmatprep.subr.bf16.mxu1 %v4849_v17 }
 0xb6b   :  { %3133 = vmatpush3.bf16.msra.mxu1 %v4327_v10 }
 0xb6c   :  { %3134 = vmatprep.subr.bf16.mxu1 %v4849_v17 }
 0xb6f   :  { %3135 = vmatpush3.bf16.msra.mxu1 %v4331_v21 }
 0xb70   :  { %3136 = vmatprep.subr.bf16.mxu1 %v4849_v17 }
 0xb73   :  { %3137 = vmatpush3.bf16.msra.mxu1 %v4335_v23 }
 0xb74   :  { %3162 = vmatprep.subr.bf16.mxu1 %v4849_v17 }
 0xc29   :  { %v1464_v22 = vpop.f32.mrb[28].mxu1 }
 0xc2a   :  { %v1465_v11 = vadd.f32 %v1464_v22, %v535_v48  ;;  %v3100_v30 = vpop.f32.mrb[29].mxu1 }
 0xc2b   :  { %v1467_v43 = vpop.f32.mrb[30].mxu1 }
 0xc2c   :  { %3533 = vtanh.f32 %v1465_v11  ;;  %v1468_v12 = vadd.f32 %v1467_v43, %v538_v28  ;;  %v3101_v31 = vpop.f32.mrb[31].mxu1 }
 0xc2e   :  { %3535 = vtanh.f32 %v1468_v12 }
 0xc36   :  { %v3534_v13 = vpop.eup %3533 }
 0xc37   :  { %v1475_v45 = vmul.f32 %v4401_v37, %v3534_v13 }
 0xc38   :  { %v3536_v47 = vpop.eup %3535 }
 0xc39   :  { %v1476_v55 = vmul.f32 %v4401_v37, %v3536_v47  ;;  %v1477_v19 = vadd.f32 %v1475_v45, %v1471_v25  ;;  %v559_v45 = vadd.f32 %v4394_v33, %v4085_v58 }
 0xc3b   :  { %v1478_v51 = vadd.f32 %v1476_v55, %v1472_v8  ;;  %v1524_v2 = vmul.f32 %v1477_v19, %v3950_v34  ;;  %v562_v8 = vadd.f32 %v4394_v33, %v4089_v60 }
 0xc3d   :  { %v1479_v57 = vpack.c.bf16 %v1478_v51, %v1477_v19  ;;  %v1525_v36 = vmul.f32 %v1478_v51, %v3950_v34 }
 0xc3f   :  { %3119 = vmatmul.mubr.bf16.vlgmr.msra.gmra.mrb[76].mxu0 %v1479_v57 }
 0xc40   :  { %3143 = vmatpush3.bf16.msra.mxu0 %v4253_v0  ;;  %3158 = vmatprep.mubr.msk.bf16.mxu0 %vm3742_vm0, %v4849_v17 }
 0xc41   :  { %3144 = vmatprep.subr.bf16.mxu0 %v4849_v17 }
 0xc44   :  { %3145 = vmatpush3.bf16.msra.mxu0 %v4259_v26 }
 0xc45   :  { %3146 = vmatprep.subr.bf16.mxu0 %v4849_v17 }
 0xc48   :  { %3147 = vmatpush3.bf16.msra.mxu0 %v4263_v15 }
 0xc49   :  { %3148 = vmatprep.subr.bf16.mxu0 %v4849_v17 }
 0xc4c   :  { %3149 = vmatpush3.bf16.msra.mxu0 %v4293_v39 }
 0xc4d   :  { %3150 = vmatprep.subr.bf16.mxu0 %v4849_v17 }
 0xc50   :  { %3151 = vmatpush3.bf16.msra.mxu0 %v4297_v29 }
 0xc51   :  { %3152 = vmatprep.subr.bf16.mxu0 %v4849_v17 }
 0xc54   :  { %3153 = vmatpush3.bf16.msra.mxu0 %v4327_v10 }
 0xc55   :  { %3154 = vmatprep.subr.bf16.mxu0 %v4849_v17 }
 0xc58   :  { %3155 = vmatpush3.bf16.msra.mxu0 %v4331_v21 }
 0xc59   :  { %3156 = vmatprep.subr.bf16.mxu0 %v4849_v17 }
 0xc5c   :  { %3157 = vmatpush3.bf16.msra.mxu0 %v4335_v23 }
 0xc5d   :  { %3182 = vmatprep.subr.bf16.mxu0 %v4849_v17 }
 0xd12   :  { %v1517_v20 = vpop.f32.mrb[76].mxu0 }
 0xd13   :  { %v1518_v53 = vadd.f32 %v1517_v20, %v543_v49  ;;  %v3120_v38 = vpop.f32.mrb[77].mxu0 }
 0xd14   :  { %v1520_v32 = vpop.f32.mrb[78].mxu0 }
 0xd15   :  { %3537 = vtanh.f32 %v1518_v53  ;;  %v1521_v35 = vadd.f32 %v1520_v32, %v546_v24  ;;  %v3121_v40 = vpop.f32.mrb[79].mxu0 }
 0xd17   :  { %3539 = vtanh.f32 %v1521_v35 }
 0xd1f   :  { %v3538_v1 = vpop.eup %3537 }
 0xd20   :  { %v1528_v4 = vmul.f32 %v4401_v37, %v3538_v1  ;;  %v567_v1 = vadd.f32 %v4394_v33, %v4095_v63 }
 0xd21   :  { %v3540_v42 = vpop.eup %3539 }
 0xd22   :  { %v1529_v54 = vmul.f32 %v4401_v37, %v3540_v42  ;;  %v1530_v44 = vadd.f32 %v1528_v4, %v1524_v2  ;;  %v570_v4 = vadd.f32 %v4394_v33, %v4099_v5 }
 0xd24   :  { %v1531_v27 = vadd.f32 %v1529_v54, %v1525_v36  ;;  %v1577_v30 = vmul.f32 %v1530_v44, %v3950_v34 }
 0xd26   :  { %v1532_v56 = vpack.c.bf16 %v1531_v27, %v1530_v44  ;;  %v1578_v31 = vmul.f32 %v1531_v27, %v3950_v34 }
 0xd28   :  { %3139 = vmatmul.mubr.bf16.vlgmr.msra.gmra.mrb[32].mxu1 %v1532_v56 }
 0xd29   :  { %3163 = vmatpush3.bf16.msra.mxu1 %v4253_v0  ;;  %3178 = vmatprep.mubr.msk.bf16.mxu1 %vm3742_vm0, %v4849_v17 }
 0xd2a   :  { %3164 = vmatprep.subr.bf16.mxu1 %v4849_v17 }
 0xd2d   :  { %3165 = vmatpush3.bf16.msra.mxu1 %v4259_v26 }
 0xd2e   :  { %3166 = vmatprep.subr.bf16.mxu1 %v4849_v17 }
 0xd31   :  { %3167 = vmatpush3.bf16.msra.mxu1 %v4263_v15 }
 0xd32   :  { %3168 = vmatprep.subr.bf16.mxu1 %v4849_v17 }
 0xd35   :  { %3169 = vmatpush3.bf16.msra.mxu1 %v4293_v39 }
 0xd36   :  { %3170 = vmatprep.subr.bf16.mxu1 %v4849_v17 }
 0xd39   :  { %3171 = vmatpush3.bf16.msra.mxu1 %v4297_v29 }
 0xd3a   :  { %3172 = vmatprep.subr.bf16.mxu1 %v4849_v17 }
 0xd3d   :  { %3173 = vmatpush3.bf16.msra.mxu1 %v4327_v10 }
 0xd3e   :  { %3174 = vmatprep.subr.bf16.mxu1 %v4849_v17 }
 0xd41   :  { %3175 = vmatpush3.bf16.msra.mxu1 %v4331_v21 }
 0xd42   :  { %3176 = vmatprep.subr.bf16.mxu1 %v4849_v17 }
 0xd45   :  { %3177 = vmatpush3.bf16.msra.mxu1 %v4335_v23 }
 0xd46   :  { %3202 = vmatprep.subr.bf16.mxu1 %v4849_v17 }
 0xdfb   :  { %v1570_v46 = vpop.f32.mrb[32].mxu1 }
 0xdfc   :  { %v1571_v41 = vadd.f32 %v1570_v46, %v551_v50  ;;  %v3140_v18 = vpop.f32.mrb[33].mxu1 }
 0xdfd   :  { %v1573_v48 = vpop.f32.mrb[34].mxu1 }
 0xdfe   :  { %3541 = vtanh.f32 %v1571_v41  ;;  %v1574_v22 = vadd.f32 %v1573_v48, %v554_v52  ;;  %v3141_v28 = vpop.f32.mrb[35].mxu1 }
 0xe00   :  { %3543 = vtanh.f32 %v1574_v22  ;;  %v575_v22 = vadd.f32 %v4394_v33, %v4093_v62 }
 0xe08   :  { %v3542_v11 = vpop.eup %3541 }
 0xe09   :  { %v1581_v43 = vmul.f32 %v4401_v37, %v3542_v11  ;;  %v578_v11 = vadd.f32 %v4394_v33, %v4097_v3 }
 0xe0a   :  { %v3544_v12 = vpop.eup %3543 }
 0xe0b   :  { %v1582_v59 = vmul.f32 %v4401_v37, %v3544_v12  ;;  %v1583_v13 = vadd.f32 %v1581_v43, %v1577_v30 }
 0xe0d   :  { %v1584_v25 = vadd.f32 %v1582_v59, %v1578_v31  ;;  %v1630_v24 = vmul.f32 %v1583_v13, %v3950_v34 }
 0xe0f   :  { %v1585_v61 = vpack.c.bf16 %v1584_v25, %v1583_v13  ;;  %v1631_v32 = vmul.f32 %v1584_v25, %v3950_v34 }
 0xe11   :  { %3159 = vmatmul.mubr.bf16.vlgmr.msra.gmra.mrb[80].mxu0 %v1585_v61 }
 0xe12   :  { %3183 = vmatpush3.bf16.msra.mxu0 %v4253_v0  ;;  %3198 = vmatprep.mubr.msk.bf16.mxu0 %vm3742_vm0, %v4849_v17 }
 0xe13   :  { %3184 = vmatprep.subr.bf16.mxu0 %v4849_v17 }
 0xe16   :  { %3185 = vmatpush3.bf16.msra.mxu0 %v4259_v26 }
 0xe17   :  { %3186 = vmatprep.subr.bf16.mxu0 %v4849_v17 }
 0xe1a   :  { %3187 = vmatpush3.bf16.msra.mxu0 %v4263_v15 }
 0xe1b   :  { %3188 = vmatprep.subr.bf16.mxu0 %v4849_v17 }
 0xe1e   :  { %3189 = vmatpush3.bf16.msra.mxu0 %v4293_v39 }
 0xe1f   :  { %3190 = vmatprep.subr.bf16.mxu0 %v4849_v17 }
 0xe22   :  { %3191 = vmatpush3.bf16.msra.mxu0 %v4297_v29 }
 0xe23   :  { %3192 = vmatprep.subr.bf16.mxu0 %v4849_v17 }
 0xe26   :  { %3193 = vmatpush3.bf16.msra.mxu0 %v4327_v10 }
 0xe27   :  { %3194 = vmatprep.subr.bf16.mxu0 %v4849_v17 }
 0xe2a   :  { %3195 = vmatpush3.bf16.msra.mxu0 %v4331_v21 }
 0xe2b   :  { %3196 = vmatprep.subr.bf16.mxu0 %v4849_v17 }
 0xe2e   :  { %3197 = vmatpush3.bf16.msra.mxu0 %v4335_v23 }
 0xe2f   :  { %3222 = vmatprep.subr.bf16.mxu0 %v4849_v17 }
 0xee4   :  { %v1623_v47 = vpop.f32.mrb[80].mxu0 }
 0xee5   :  { %v1624_v55 = vadd.f32 %v1623_v47, %v559_v45  ;;  %v3160_v19 = vpop.f32.mrb[81].mxu0 }
 0xee6   :  { %v1626_v51 = vpop.f32.mrb[82].mxu0  ;;  %v583_v19 = vadd.f32 %v4394_v33, %v4103_v7 }
 0xee7   :  { %3545 = vtanh.f32 %v1624_v55  ;;  %v1627_v57 = vadd.f32 %v1626_v51, %v562_v8  ;;  %v3161_v49 = vpop.f32.mrb[83].mxu0 }
 0xee9   :  { %3547 = vtanh.f32 %v1627_v57  ;;  %v586_v57 = vadd.f32 %v4394_v33, %v4107_v14 }
 0xef1   :  { %v3546_v20 = vpop.eup %3545 }
 0xef2   :  { %v1634_v53 = vmul.f32 %v4401_v37, %v3546_v20 }
 0xef3   :  { %v3548_v38 = vpop.eup %3547 }
 0xef4   :  { %v1635_v58 = vmul.f32 %v4401_v37, %v3548_v38  ;;  %v1636_v35 = vadd.f32 %v1634_v53, %v1630_v24 }
 0xef6   :  { %v1637_v40 = vadd.f32 %v1635_v58, %v1631_v32  ;;  %v1683_v50 = vmul.f32 %v1636_v35, %v3950_v34 }
 0xef8   :  { %v1638_v60 = vpack.c.bf16 %v1637_v40, %v1636_v35  ;;  %v1684_v41 = vmul.f32 %v1637_v40, %v3950_v34 }
 0xefa   :  { %3179 = vmatmul.mubr.bf16.vlgmr.msra.gmra.mrb[36].mxu1 %v1638_v60 }
 0xefb   :  { %3203 = vmatpush3.bf16.msra.mxu1 %v4253_v0  ;;  %3218 = vmatprep.mubr.msk.bf16.mxu1 %vm3742_vm0, %v4849_v17 }
 0xefc   :  { %3204 = vmatprep.subr.bf16.mxu1 %v4849_v17 }
 0xeff   :  { %3205 = vmatpush3.bf16.msra.mxu1 %v4259_v26 }
 0xf00   :  { %3206 = vmatprep.subr.bf16.mxu1 %v4849_v17 }
 0xf03   :  { %3207 = vmatpush3.bf16.msra.mxu1 %v4263_v15 }
 0xf04   :  { %3208 = vmatprep.subr.bf16.mxu1 %v4849_v17 }
 0xf07   :  { %3209 = vmatpush3.bf16.msra.mxu1 %v4293_v39 }
 0xf08   :  { %3210 = vmatprep.subr.bf16.mxu1 %v4849_v17 }
 0xf0b   :  { %3211 = vmatpush3.bf16.msra.mxu1 %v4297_v29 }
 0xf0c   :  { %3212 = vmatprep.subr.bf16.mxu1 %v4849_v17 }
 0xf0f   :  { %3213 = vmatpush3.bf16.msra.mxu1 %v4327_v10 }
 0xf10   :  { %3214 = vmatprep.subr.bf16.mxu1 %v4849_v17 }
 0xf13   :  { %3215 = vmatpush3.bf16.msra.mxu1 %v4331_v21 }
 0xf14   :  { %3216 = vmatprep.subr.bf16.mxu1 %v4849_v17 }
 0xf17   :  { %3217 = vmatpush3.bf16.msra.mxu1 %v4335_v23 }
 0xf18   :  { %3242 = vmatprep.subr.bf16.mxu1 %v4849_v17 }
 0xfcd   :  { %v1676_v2 = vpop.f32.mrb[36].mxu1 }
 0xfce   :  { %v1677_v42 = vadd.f32 %v1676_v2, %v567_v1  ;;  %v3180_v36 = vpop.f32.mrb[37].mxu1 }
 0xfcf   :  { %v1679_v54 = vpop.f32.mrb[38].mxu1  ;;  %v594_v36 = vadd.f32 %v4394_v33, %v4105_v9 }
 0xfd0   :  { %3549 = vtanh.f32 %v1677_v42  ;;  %v1680_v44 = vadd.f32 %v1679_v54, %v570_v4  ;;  %v3181_v27 = vpop.f32.mrb[39].mxu1  ;;  %v591_v4 = vadd.f32 %v4394_v33, %v4101_v6 }
 0xfd2   :  { %3551 = vtanh.f32 %v1680_v44 }
 0xfda   :  { %v3550_v56 = vpop.eup %3549 }
 0xfdb   :  { %v1687_v46 = vmul.f32 %v4401_v37, %v3550_v56 }
 0xfdc   :  { %v3552_v52 = vpop.eup %3551 }
 0xfdd   :  { %v1688_v63 = vmul.f32 %v4401_v37, %v3552_v52  ;;  %v1689_v18 = vadd.f32 %v1687_v46, %v1683_v50 }
 0xfdf   :  { %v1690_v48 = vadd.f32 %v1688_v63, %v1684_v41  ;;  %v1736_v25 = vmul.f32 %v1689_v18, %v3950_v34 }
 0xfe1   :  { %v1691_v5 = vpack.c.bf16 %v1690_v48, %v1689_v18  ;;  %v1737_v47 = vmul.f32 %v1690_v48, %v3950_v34 }
 0xfe3   :  { %3199 = vmatmul.mubr.bf16.vlgmr.msra.gmra.mrb[84].mxu0 %v1691_v5 }
 0xfe4   :  { %3223 = vmatpush3.bf16.msra.mxu0 %v4253_v0  ;;  %3238 = vmatprep.mubr.msk.bf16.mxu0 %vm3742_vm0, %v4849_v17 }
 0xfe5   :  { %3224 = vmatprep.subr.bf16.mxu0 %v4849_v17 }
 0xfe8   :  { %3225 = vmatpush3.bf16.msra.mxu0 %v4259_v26 }
 0xfe9   :  { %3226 = vmatprep.subr.bf16.mxu0 %v4849_v17 }
 0xfec   :  { %3227 = vmatpush3.bf16.msra.mxu0 %v4263_v15 }
 0xfed   :  { %3228 = vmatprep.subr.bf16.mxu0 %v4849_v17 }
 0xff0   :  { %3229 = vmatpush3.bf16.msra.mxu0 %v4293_v39 }
 0xff1   :  { %3230 = vmatprep.subr.bf16.mxu0 %v4849_v17 }
 0xff4   :  { %3231 = vmatpush3.bf16.msra.mxu0 %v4297_v29 }
 0xff5   :  { %3232 = vmatprep.subr.bf16.mxu0 %v4849_v17 }
 0xff8   :  { %3233 = vmatpush3.bf16.msra.mxu0 %v4327_v10 }
 0xff9   :  { %3234 = vmatprep.subr.bf16.mxu0 %v4849_v17 }
 0xffc   :  { %3235 = vmatpush3.bf16.msra.mxu0 %v4331_v21 }
 0xffd   :  { %3236 = vmatprep.subr.bf16.mxu0 %v4849_v17 }
0x1000   :  { %3237 = vmatpush3.bf16.msra.mxu0 %v4335_v23 }
0x1001   :  { %3262 = vmatprep.subr.bf16.mxu0 %v4849_v17 }
0x10b6   :  { %v1729_v28 = vpop.f32.mrb[84].mxu0 }
0x10b7   :  { %v1730_v30 = vadd.f32 %v1729_v28, %v575_v22  ;;  %v3200_v43 = vpop.f32.mrb[85].mxu0 }
0x10b8   :  { %v1732_v12 = vpop.f32.mrb[86].mxu0 }
0x10b9   :  { %3553 = vtanh.f32 %v1730_v30  ;;  %v1733_v31 = vadd.f32 %v1732_v12, %v578_v11  ;;  %v3201_v59 = vpop.f32.mrb[87].mxu0 }
0x10bb   :  { %3555 = vtanh.f32 %v1733_v31 }
0x10c3   :  { %v3554_v13 = vpop.eup %3553 }
0x10c4   :  { %v1740_v61 = vmul.f32 %v4401_v37, %v3554_v13 }
0x10c5   :  { %v3556_v45 = vpop.eup %3555 }
0x10c6   :  { %v1741_v62 = vmul.f32 %v4401_v37, %v3556_v45  ;;  %v1742_v8 = vadd.f32 %v1740_v61, %v1736_v25 }
0x10c8   :  { %v1743_v55 = vadd.f32 %v1741_v62, %v1737_v47  ;;  %v1789_v58 = vmul.f32 %v1742_v8, %v3950_v34 }
0x10ca   :  { %v1744_v3 = vpack.c.bf16 %v1743_v55, %v1742_v8  ;;  %v1790_v60 = vmul.f32 %v1743_v55, %v3950_v34  ;;  %v4640_v8 = vld [vmem:[#allocation8] sm:$0xff]   ;;  %v4646_v55 = vld [vmem:[#allocation8 + $0x8] sm:$0xff]  }
0x10cc   :  { %3219 = vmatmul.mubr.bf16.vlgmr.msra.gmra.mrb[40].mxu1 %v1744_v3  ;;  %v4650_v3 = vld [vmem:[#allocation8 + $0x10] sm:$0xff]  }
0x10cd   :  { %3243 = vmatpush3.bf16.msra.mxu1 %v4253_v0  ;;  %3258 = vmatprep.mubr.msk.bf16.mxu1 %vm3742_vm0, %v4849_v17 }
0x10ce   :  { %3244 = vmatprep.subr.bf16.mxu1 %v4849_v17 }
0x10d1   :  { %3245 = vmatpush3.bf16.msra.mxu1 %v4259_v26 }
0x10d2   :  { %3246 = vmatprep.subr.bf16.mxu1 %v4849_v17 }
0x10d5   :  { %3247 = vmatpush3.bf16.msra.mxu1 %v4263_v15 }
0x10d6   :  { %3248 = vmatprep.subr.bf16.mxu1 %v4849_v17 }
0x10d9   :  { %3249 = vmatpush3.bf16.msra.mxu1 %v4293_v39 }
0x10da   :  { %3250 = vmatprep.subr.bf16.mxu1 %v4849_v17 }
0x10dd   :  { %3251 = vmatpush3.bf16.msra.mxu1 %v4297_v29 }
0x10de   :  { %3252 = vmatprep.subr.bf16.mxu1 %v4849_v17 }
0x10e1   :  { %3253 = vmatpush3.bf16.msra.mxu1 %v4327_v10 }
0x10e2   :  { %3254 = vmatprep.subr.bf16.mxu1 %v4849_v17 }
0x10e5   :  { %3255 = vmatpush3.bf16.msra.mxu1 %v4331_v21 }
0x10e6   :  { %3256 = vmatprep.subr.bf16.mxu1 %v4849_v17 }
0x10e9   :  { %3257 = vmatpush3.bf16.msra.mxu1 %v4335_v23 }
0x10ea   :  { %3282 = vmatprep.subr.bf16.mxu1 %v4849_v17 }
0x119f   :  { %v1782_v51 = vpop.f32.mrb[40].mxu1 }
0x11a0   :  { %v1783_v49 = vadd.f32 %v1782_v51, %v583_v19  ;;  %v3220_v20 = vpop.f32.mrb[41].mxu1  ;;  %v4859_v19 = vld [vmem:[#allocation18_spill] sm:$0xff] }
0x11a1   :  { %v1785_v24 = vpop.f32.mrb[42].mxu1 }
0x11a2   :  { %3557 = vtanh.f32 %v1783_v49  ;;  %v1786_v53 = vadd.f32 %v1785_v24, %v586_v57  ;;  %v3221_v38 = vpop.f32.mrb[43].mxu1  ;;  %v4860_v57 = vld [vmem:[#allocation19_spill] sm:$0xff] }
0x11a4   :  { %3559 = vtanh.f32 %v1786_v53 }
0x11ac   :  { %v3558_v32 = vpop.eup %3557 }
0x11ad   :  { %v1793_v35 = vmul.f32 %v4401_v37, %v3558_v32 }
0x11ae   :  { %v3560_v40 = vpop.eup %3559 }
0x11af   :  { %v1794_v7 = vmul.f32 %v4401_v37, %v3560_v40  ;;  %v1795_v1 = vadd.f32 %v1793_v35, %v1789_v58 }
0x11b1   :  { %v1796_v2 = vadd.f32 %v1794_v7, %v1790_v60  ;;  %v1842_v52 = vmul.f32 %v1795_v1, %v3950_v34 }
0x11b3   :  { %v1797_v14 = vpack.c.bf16 %v1796_v2, %v1795_v1  ;;  %v1843_v18 = vmul.f32 %v1796_v2, %v3950_v34 }
0x11b5   :  { %3239 = vmatmul.mubr.bf16.vlgmr.msra.gmra.mrb[88].mxu0 %v1797_v14 }
0x11b6   :  { %3263 = vmatpush3.bf16.msra.mxu0 %v4253_v0  ;;  %3278 = vmatprep.mubr.msk.bf16.mxu0 %vm3742_vm0, %v4849_v17 }
0x11b7   :  { %3264 = vmatprep.subr.bf16.mxu0 %v4849_v17 }
0x11ba   :  { %3265 = vmatpush3.bf16.msra.mxu0 %v4259_v26 }
0x11bb   :  { %3266 = vmatprep.subr.bf16.mxu0 %v4849_v17 }
0x11be   :  { %3267 = vmatpush3.bf16.msra.mxu0 %v4263_v15 }
0x11bf   :  { %3268 = vmatprep.subr.bf16.mxu0 %v4849_v17 }
0x11c2   :  { %3269 = vmatpush3.bf16.msra.mxu0 %v4293_v39 }
0x11c3   :  { %3270 = vmatprep.subr.bf16.mxu0 %v4849_v17 }
0x11c6   :  { %3271 = vmatpush3.bf16.msra.mxu0 %v4297_v29 }
0x11c7   :  { %3272 = vmatprep.subr.bf16.mxu0 %v4849_v17 }
0x11ca   :  { %3273 = vmatpush3.bf16.msra.mxu0 %v4327_v10 }
0x11cb   :  { %3274 = vmatprep.subr.bf16.mxu0 %v4849_v17 }
0x11ce   :  { %3275 = vmatpush3.bf16.msra.mxu0 %v4331_v21 }
0x11cf   :  { %3276 = vmatprep.subr.bf16.mxu0 %v4849_v17 }
0x11d2   :  { %3277 = vmatpush3.bf16.msra.mxu0 %v4335_v23 }
0x11d3   :  { %3302 = vmatprep.subr.bf16.mxu0 %v4849_v17 }
0x1288   :  { %v1835_v42 = vpop.f32.mrb[88].mxu0 }
0x1289   :  { %v1836_v54 = vadd.f32 %v1835_v42, %v591_v4  ;;  %v3240_v44 = vpop.f32.mrb[89].mxu0  ;;  %v4680_v4 = vld [vmem:[#allocation8 + $0x18] sm:$0xff]   ;;  %v4684_v42 = vld [vmem:[#allocation8 + $0x20] sm:$0xff]  }
0x128a   :  { %v1838_v27 = vpop.f32.mrb[90].mxu0 }
0x128b   :  { %3561 = vtanh.f32 %v1836_v54  ;;  %v1839_v56 = vadd.f32 %v1838_v27, %v594_v36  ;;  %v3241_v50 = vpop.f32.mrb[91].mxu0  ;;  %v4861_v36 = vld [vmem:[#allocation22_spill] sm:$0xff]  ;;  %v4862_v27 = vld [vmem:[#allocation24_spill] sm:$0xff] }
0x128c   :  { %v615_v54 = vadd.f32 %v4394_v33, %v4861_v36 }
0x128d   :  { %3563 = vtanh.f32 %v1839_v56  ;;  %v618_v56 = vadd.f32 %v4394_v33, %v4862_v27 }
0x1295   :  { %v3562_v46 = vpop.eup %3561 }
0x1296   :  { %v1846_v41 = vmul.f32 %v4401_v37, %v3562_v46 }
0x1297   :  { %v3564_v63 = vpop.eup %3563 }
0x1298   :  { %v1847_v6 = vmul.f32 %v4401_v37, %v3564_v63  ;;  %v1848_v48 = vadd.f32 %v1846_v41, %v1842_v52 }
0x129a   :  { %v1849_v5 = vadd.f32 %v1847_v6, %v1843_v18  ;;  %v1895_v59 = vmul.f32 %v1848_v48, %v3950_v34 }
0x129c   :  { %v1850_v9 = vpack.c.bf16 %v1849_v5, %v1848_v48  ;;  %v1896_v61 = vmul.f32 %v1849_v5, %v3950_v34 }
0x129e   :  { %3259 = vmatmul.mubr.bf16.vlgmr.msra.gmra.mrb[44].mxu1 %v1850_v9 }
0x129f   :  { %3283 = vmatpush3.bf16.msra.mxu1 %v4253_v0  ;;  %3298 = vmatprep.mubr.msk.bf16.mxu1 %vm3742_vm0, %v4849_v17  ;;  %v599_v0 = vadd.f32 %v4394_v33, %v4111_v16 }
0x12a0   :  { %3284 = vmatprep.subr.bf16.mxu1 %v4849_v17 }
0x12a3   :  { %3285 = vmatpush3.bf16.msra.mxu1 %v4259_v26 }
0x12a4   :  { %3286 = vmatprep.subr.bf16.mxu1 %v4849_v17 }
0x12a7   :  { %3287 = vmatpush3.bf16.msra.mxu1 %v4263_v15  ;;  %v4858_v15 = vld [vmem:[#allocation20_spill] sm:$0xff] }
0x12a8   :  { %3288 = vmatprep.subr.bf16.mxu1 %v4849_v17  ;;  %v602_v22 = vadd.f32 %v4394_v33, %v4858_v15  ;;  %v4718_v15 = vld [vmem:[#allocation8 + $0x30] sm:$0xff]  }
0x12ab   :  { %3289 = vmatpush3.bf16.msra.mxu1 %v4293_v39 }
0x12ac   :  { %3290 = vmatprep.subr.bf16.mxu1 %v4849_v17 }
0x12af   :  { %3291 = vmatpush3.bf16.msra.mxu1 %v4297_v29 }
0x12b0   :  { %3292 = vmatprep.subr.bf16.mxu1 %v4849_v17 }
0x12b3   :  { %3293 = vmatpush3.bf16.msra.mxu1 %v4327_v10 }
0x12b4   :  { %3294 = vmatprep.subr.bf16.mxu1 %v4849_v17 }
0x12b7   :  { %3295 = vmatpush3.bf16.msra.mxu1 %v4331_v21 }
0x12b8   :  { %3296 = vmatprep.subr.bf16.mxu1 %v4849_v17 }
0x12bb   :  { %3297 = vmatpush3.bf16.msra.mxu1 %v4335_v23 }
0x12bc   :  { %3322 = vmatprep.subr.bf16.mxu1 %v4849_v17 }
0x1371   :  { %v1888_v26 = vpop.f32.mrb[44].mxu1 }
0x1372   :  { %v1889_v28 = vadd.f32 %v1888_v26, %v599_v0  ;;  %v3260_v11 = vpop.f32.mrb[45].mxu1  ;;  %v4714_v26 = vld [vmem:[#allocation8 + $0x28] sm:$0xff]  }
0x1373   :  { %v1891_v30 = vpop.f32.mrb[46].mxu1 }
0x1374   :  { %3565 = vtanh.f32 %v1889_v28  ;;  %v1892_v43 = vadd.f32 %v1891_v30, %v602_v22  ;;  %v3261_v12 = vpop.f32.mrb[47].mxu1  ;;  %v4722_v22 = vld [vmem:[#allocation8 + $0x38] sm:$0xff]  }
0x1375   :  { %v4863_v28 = vld [vmem:[#allocation21_spill] sm:$0xff] }
0x1376   :  { %3567 = vtanh.f32 %v1892_v43  ;;  %v623_v11 = vadd.f32 %v4394_v33, %v4863_v28  ;;  %v4864_v43 = vld [vmem:[#allocation23_spill] sm:$0xff]  ;;  %v4869_v28 = vld [vmem:[#allocation30_spill] sm:$0xff] }
0x1377   :  { %v626_v12 = vadd.f32 %v4394_v33, %v4864_v43  ;;  %v4870_v43 = vld [vmem:[#allocation32_spill] sm:$0xff] }
0x137e   :  { %v3566_v31 = vpop.eup %3565 }
0x137f   :  { %v1899_v13 = vmul.f32 %v4401_v37, %v3566_v31 }
0x1380   :  { %v3568_v25 = vpop.eup %3567 }
0x1381   :  { %v1900_v16 = vmul.f32 %v4401_v37, %v3568_v25  ;;  %v1901_v45 = vadd.f32 %v1899_v13, %v1895_v59 }
0x1383   :  { %v1902_v47 = vadd.f32 %v1900_v16, %v1896_v61  ;;  %v1948_v58 = vmul.f32 %v1901_v45, %v3950_v34 }
0x1385   :  { %v1903_v62 = vpack.c.bf16 %v1902_v47, %v1901_v45  ;;  %v1949_v60 = vmul.f32 %v1902_v47, %v3950_v34 }
0x1387   :  { %3279 = vmatmul.mubr.bf16.vlgmr.msra.gmra.mrb[92].mxu0 %v1903_v62 }
0x1388   :  { %3303 = vmatpush3.bf16.msra.mxu0 %v4640_v8  ;;  %3318 = vmatprep.mubr.msk.bf16.mxu0 %vm3742_vm0, %v4849_v17 }
0x1389   :  { %3304 = vmatprep.subr.bf16.mxu0 %v4849_v17 }
0x138c   :  { %3305 = vmatpush3.bf16.msra.mxu0 %v4646_v55 }
0x138d   :  { %3306 = vmatprep.subr.bf16.mxu0 %v4849_v17 }
0x1390   :  { %3307 = vmatpush3.bf16.msra.mxu0 %v4650_v3 }
0x1391   :  { %3308 = vmatprep.subr.bf16.mxu0 %v4849_v17 }
0x1394   :  { %3309 = vmatpush3.bf16.msra.mxu0 %v4293_v39  ;;  %v607_v39 = vadd.f32 %v4394_v33, %v4859_v19 }
0x1395   :  { %3310 = vmatprep.subr.bf16.mxu0 %v4849_v17 }
0x1398   :  { %3311 = vmatpush3.bf16.msra.mxu0 %v4297_v29  ;;  %v610_v29 = vadd.f32 %v4394_v33, %v4860_v57 }
0x1399   :  { %3312 = vmatprep.subr.bf16.mxu0 %v4849_v17 }
0x139c   :  { %3313 = vmatpush3.bf16.msra.mxu0 %v4327_v10 }
0x139d   :  { %3314 = vmatprep.subr.bf16.mxu0 %v4849_v17 }
0x13a0   :  { %3315 = vmatpush3.bf16.msra.mxu0 %v4331_v21 }
0x13a1   :  { %3316 = vmatprep.subr.bf16.mxu0 %v4849_v17 }
0x13a4   :  { %3317 = vmatpush3.bf16.msra.mxu0 %v4335_v23 }
0x13a5   :  { %3342 = vmatprep.subr.bf16.mxu0 %v4849_v17 }
0x145a   :  { %v1941_v51 = vpop.f32.mrb[92].mxu0 }
0x145b   :  { %v1942_v49 = vadd.f32 %v1941_v51, %v607_v39  ;;  %v3280_v20 = vpop.f32.mrb[93].mxu0 }
0x145c   :  { %v1944_v24 = vpop.f32.mrb[94].mxu0 }
0x145d   :  { %3569 = vtanh.f32 %v1942_v49  ;;  %v1945_v53 = vadd.f32 %v1944_v24, %v610_v29  ;;  %v3281_v38 = vpop.f32.mrb[95].mxu0  ;;  %v4865_v49 = vld [vmem:[#allocation26_spill] sm:$0xff] }
0x145e   :  { %v631_v20 = vadd.f32 %v4394_v33, %v4865_v49  ;;  %v3476_v49 = vld [vmem:[#allocation11 + $0x18] sm:$0xff]  }
0x145f   :  { %3571 = vtanh.f32 %v1945_v53  ;;  %v4866_v53 = vld [vmem:[#allocation28_spill] sm:$0xff] }
0x1460   :  { %v634_v38 = vadd.f32 %v4394_v33, %v4866_v53  ;;  %v3479_v53 = vld [vmem:[#allocation11 + $0x30] sm:$0xff]  }
0x1467   :  { %v3570_v32 = vpop.eup %3569 }
0x1468   :  { %v1952_v35 = vmul.f32 %v4401_v37, %v3570_v32 }
0x1469   :  { %v3572_v40 = vpop.eup %3571 }
0x146a   :  { %v1953_v7 = vmul.f32 %v4401_v37, %v3572_v40  ;;  %v1954_v1 = vadd.f32 %v1952_v35, %v1948_v58 }
0x146c   :  { %v1955_v2 = vadd.f32 %v1953_v7, %v1949_v60  ;;  %v2001_v63 = vmul.f32 %v1954_v1, %v3950_v34 }
0x146e   :  { %v1956_v14 = vpack.c.bf16 %v1955_v2, %v1954_v1  ;;  %v2002_v6 = vmul.f32 %v1955_v2, %v3950_v34 }
0x1470   :  { %3299 = vmatmul.mubr.bf16.vlgmr.msra.gmra.mrb[48].mxu1 %v1956_v14 }
0x1471   :  { %3323 = vmatpush3.bf16.msra.mxu1 %v4640_v8  ;;  %3338 = vmatprep.mubr.msk.bf16.mxu1 %vm3742_vm0, %v4849_v17 }
0x1472   :  { %3324 = vmatprep.subr.bf16.mxu1 %v4849_v17 }
0x1475   :  { %3325 = vmatpush3.bf16.msra.mxu1 %v4646_v55 }
0x1476   :  { %3326 = vmatprep.subr.bf16.mxu1 %v4849_v17 }
0x1479   :  { %3327 = vmatpush3.bf16.msra.mxu1 %v4650_v3 }
0x147a   :  { %3328 = vmatprep.subr.bf16.mxu1 %v4849_v17 }
0x147d   :  { %3329 = vmatpush3.bf16.msra.mxu1 %v4680_v4 }
0x147e   :  { %3330 = vmatprep.subr.bf16.mxu1 %v4849_v17 }
0x1481   :  { %3331 = vmatpush3.bf16.msra.mxu1 %v4684_v42 }
0x1482   :  { %3332 = vmatprep.subr.bf16.mxu1 %v4849_v17 }
0x1485   :  { %3333 = vmatpush3.bf16.msra.mxu1 %v4327_v10 }
0x1486   :  { %3334 = vmatprep.subr.bf16.mxu1 %v4849_v17 }
0x1489   :  { %3335 = vmatpush3.bf16.msra.mxu1 %v4331_v21 }
0x148a   :  { %3336 = vmatprep.subr.bf16.mxu1 %v4849_v17 }
0x148d   :  { %3337 = vmatpush3.bf16.msra.mxu1 %v4335_v23 }
0x148e   :  { %3362 = vmatprep.subr.bf16.mxu1 %v4849_v17 }
0x1543   :  { %v1994_v44 = vpop.f32.mrb[48].mxu1 }
0x1544   :  { %v1995_v50 = vadd.f32 %v1994_v44, %v615_v54  ;;  %v3300_v46 = vpop.f32.mrb[49].mxu1 }
0x1545   :  { %v1997_v10 = vpop.f32.mrb[50].mxu1 }
0x1546   :  { %3573 = vtanh.f32 %v1995_v50  ;;  %v1998_v52 = vadd.f32 %v1997_v10, %v618_v56  ;;  %v3301_v41 = vpop.f32.mrb[51].mxu1 }
0x1548   :  { %3575 = vtanh.f32 %v1998_v52 }
0x1550   :  { %v3574_v21 = vpop.eup %3573 }
0x1551   :  { %v2005_v23 = vmul.f32 %v4401_v37, %v3574_v21 }
0x1552   :  { %v3576_v18 = vpop.eup %3575 }
0x1553   :  { %v2006_v48 = vmul.f32 %v4401_v37, %v3576_v18  ;;  %v2007_v5 = vadd.f32 %v2005_v23, %v2001_v63  ;;  %v4787_v63 = vld [vmem:[#allocation3] ss:$0 sm:$0xff] }
0x1555   :  { %v2008_v9 = vadd.f32 %v2006_v48, %v2002_v6  ;;  %v2054_v45 = vmul.f32 %v2007_v5, %v3950_v34 }
0x1557   :  { %v2009_v0 = vpack.c.bf16 %v2008_v9, %v2007_v5  ;;  %v2055_v19 = vmul.f32 %v2008_v9, %v3950_v34 }
0x1559   :  { %3319 = vmatmul.mubr.bf16.vlgmr.msra.gmra.mrb[96].mxu0 %v2009_v0 }
0x155a   :  { %3343 = vmatpush3.bf16.msra.mxu0 %v4640_v8  ;;  %3358 = vmatprep.mubr.msk.bf16.mxu0 %vm3742_vm0, %v4849_v17 }
0x155b   :  { %3344 = vmatprep.subr.bf16.mxu0 %v4849_v17 }
0x155e   :  { %3345 = vmatpush3.bf16.msra.mxu0 %v4646_v55 }
0x155f   :  { %3346 = vmatprep.subr.bf16.mxu0 %v4849_v17 }
0x1562   :  { %3347 = vmatpush3.bf16.msra.mxu0 %v4650_v3 }
0x1563   :  { %3348 = vmatprep.subr.bf16.mxu0 %v4849_v17 }
0x1566   :  { %3349 = vmatpush3.bf16.msra.mxu0 %v4680_v4 }
0x1567   :  { %3350 = vmatprep.subr.bf16.mxu0 %v4849_v17 }
0x156a   :  { %3351 = vmatpush3.bf16.msra.mxu0 %v4684_v42 }
0x156b   :  { %3352 = vmatprep.subr.bf16.mxu0 %v4849_v17 }
0x156e   :  { %3353 = vmatpush3.bf16.msra.mxu0 %v4714_v26 }
0x156f   :  { %3354 = vmatprep.subr.bf16.mxu0 %v4849_v17 }
0x1572   :  { %3355 = vmatpush3.bf16.msra.mxu0 %v4718_v15 }
0x1573   :  { %3356 = vmatprep.subr.bf16.mxu0 %v4849_v17 }
0x1576   :  { %3357 = vmatpush3.bf16.msra.mxu0 %v4722_v22 }
0x1577   :  { %3382 = vmatprep.subr.bf16.mxu0 %v4849_v17 }
0x162c   :  { %v2047_v30 = vpop.f32.mrb[96].mxu0 }
0x162d   :  { %v2048_v31 = vadd.f32 %v2047_v30, %v623_v11  ;;  %v3320_v59 = vpop.f32.mrb[97].mxu0 }
0x162e   :  { %v2050_v13 = vpop.f32.mrb[98].mxu0 }
0x162f   :  { %3577 = vtanh.f32 %v2048_v31  ;;  %v2051_v25 = vadd.f32 %v2050_v13, %v626_v12  ;;  %v3321_v61 = vpop.f32.mrb[99].mxu0 }
0x1631   :  { %3579 = vtanh.f32 %v2051_v25 }
0x1639   :  { %v3578_v16 = vpop.eup %3577 }
0x163a   :  { %v2058_v47 = vmul.f32 %v4401_v37, %v3578_v16 }
0x163b   :  { %v3580_v62 = vpop.eup %3579 }
0x163c   :  { %v2059_v39 = vmul.f32 %v4401_v37, %v3580_v62  ;;  %v2060_v51 = vadd.f32 %v2058_v47, %v2054_v45 }
0x163e   :  { %v2061_v57 = vadd.f32 %v2059_v39, %v2055_v19  ;;  %v2107_v1 = vmul.f32 %v2060_v51, %v3950_v34 }
0x1640   :  { %v2062_v29 = vpack.c.bf16 %v2061_v57, %v2060_v51  ;;  %v2108_v36 = vmul.f32 %v2061_v57, %v3950_v34 }
0x1642   :  { %3339 = vmatmul.mubr.bf16.vlgmr.msra.gmra.mrb[52].mxu1 %v2062_v29 }
0x1643   :  { %3363 = vmatpush3.bf16.msra.mxu1 %v4640_v8  ;;  %3378 = vmatprep.mubr.msk.bf16.mxu1 %vm3742_vm0, %v4849_v17 }
0x1644   :  { %3364 = vmatprep.subr.bf16.mxu1 %v4849_v17 }
0x1647   :  { %3365 = vmatpush3.bf16.msra.mxu1 %v4646_v55 }
0x1648   :  { %3366 = vmatprep.subr.bf16.mxu1 %v4849_v17 }
0x164b   :  { %3367 = vmatpush3.bf16.msra.mxu1 %v4650_v3 }
0x164c   :  { %3368 = vmatprep.subr.bf16.mxu1 %v4849_v17 }
0x164f   :  { %3369 = vmatpush3.bf16.msra.mxu1 %v4680_v4 }
0x1650   :  { %3370 = vmatprep.subr.bf16.mxu1 %v4849_v17 }
0x1653   :  { %3371 = vmatpush3.bf16.msra.mxu1 %v4684_v42 }
0x1654   :  { %3372 = vmatprep.subr.bf16.mxu1 %v4849_v17 }
0x1657   :  { %3373 = vmatpush3.bf16.msra.mxu1 %v4714_v26 }
0x1658   :  { %3374 = vmatprep.subr.bf16.mxu1 %v4849_v17 }
0x165b   :  { %3375 = vmatpush3.bf16.msra.mxu1 %v4718_v15 }
0x165c   :  { %3376 = vmatprep.subr.bf16.mxu1 %v4849_v17 }
0x165f   :  { %3377 = vmatpush3.bf16.msra.mxu1 %v4722_v22 }
0x1660   :  { %3402 = vmatprep.subr.bf16.mxu1 %v4849_v17 }
0x1715   :  { %v2100_v24 = vpop.f32.mrb[52].mxu1 }
0x1716   :  { %v2101_v32 = vadd.f32 %v2100_v24, %v631_v20  ;;  %v3340_v58 = vpop.f32.mrb[53].mxu1  ;;  %v3477_v20 = vld [vmem:[#allocation11 + $0x20] sm:$0xff]   ;;  %v3478_v24 = vld [vmem:[#allocation11 + $0x28] sm:$0xff]  }
0x1717   :  { %v2103_v35 = vpop.f32.mrb[54].mxu1 }
0x1718   :  { %3581 = vtanh.f32 %v2101_v32  ;;  %v2104_v40 = vadd.f32 %v2103_v35, %v634_v38  ;;  %v3341_v60 = vpop.f32.mrb[55].mxu1  ;;  %v3480_v38 = vld [vmem:[#allocation11 + $0x38] sm:$0xff]   ;;  %v4871_v32 = vld [vmem:[#allocation29_spill] sm:$0xff] }
0x171a   :  { %3583 = vtanh.f32 %v2104_v40  ;;  %v4872_v40 = vld [vmem:[#allocation31_spill] sm:$0xff] }
0x1722   :  { %v3582_v7 = vpop.eup %3581 }
0x1723   :  { %v2111_v2 = vmul.f32 %v4401_v37, %v3582_v7 }
0x1724   :  { %v3584_v14 = vpop.eup %3583 }
0x1725   :  { %v2112_v54 = vmul.f32 %v4401_v37, %v3584_v14  ;;  %v2113_v44 = vadd.f32 %v2111_v2, %v2107_v1  ;;  %v4780_v37 = vld [vmem:[%s4835_s3] ss:$0 sm:$0xff] }
0x1726   :  { %v647_v11 = vadd.f32 %v4780_v37, %v4869_v28  ;;  %v650_v12 = vadd.f32 %v4780_v37, %v4870_v43  ;;  %v655_v58 = vadd.f32 %v4780_v37, %v4871_v32  ;;  %v658_v60 = vadd.f32 %v4780_v37, %v4872_v40 }
0x1727   :  { %v2114_v27 = vadd.f32 %v2112_v54, %v2108_v36  ;;  %v2160_v21 = vmul.f32 %v2113_v44, %v3950_v34 }
0x1729   :  { %v2115_v33 = vpack.c.bf16 %v2114_v27, %v2113_v44  ;;  %v2161_v6 = vmul.f32 %v2114_v27, %v3950_v34 }
0x172b   :  { %3359 = vmatmul.mubr.bf16.vlgmr.msra.gmra.mrb[100].mxu0 %v2115_v33 }
0x172c   :  { %3383 = vmatpush3.bf16.msra.mxu0 %v4640_v8  ;;  %3398 = vmatprep.mubr.msk.bf16.mxu0 %vm3742_vm0, %v4849_v17  ;;  %v4867_v8 = vld [vmem:[#allocation25_spill] sm:$0xff] }
0x172d   :  { %3384 = vmatprep.subr.bf16.mxu0 %v4849_v17 }
0x1730   :  { %3385 = vmatpush3.bf16.msra.mxu0 %v4646_v55  ;;  %v639_v55 = vadd.f32 %v4780_v37, %v4867_v8 }
0x1731   :  { %3386 = vmatprep.subr.bf16.mxu0 %v4849_v17 }
0x1734   :  { %3387 = vmatpush3.bf16.msra.mxu0 %v4650_v3 }
0x1735   :  { %3388 = vmatprep.subr.bf16.mxu0 %v4849_v17 }
0x1738   :  { %3389 = vmatpush3.bf16.msra.mxu0 %v4680_v4  ;;  %v4868_v4 = vld [vmem:[#allocation27_spill] sm:$0xff] }
0x1739   :  { %3390 = vmatprep.subr.bf16.mxu0 %v4849_v17 }
0x173c   :  { %3391 = vmatpush3.bf16.msra.mxu0 %v4684_v42  ;;  %v642_v42 = vadd.f32 %v4780_v37, %v4868_v4  ;;  %v2482_v4 = vld [vmem:[%s4838_s6] ss:$0 sm:$0xff] }
0x173d   :  { %3392 = vmatprep.subr.bf16.mxu0 %v4849_v17 }
0x1740   :  { %3393 = vmatpush3.bf16.msra.mxu0 %v4714_v26  ;;  %v3473_v26 = vld [vmem:[#allocation11] sm:$0xff]  }
0x1741   :  { %3394 = vmatprep.subr.bf16.mxu0 %v4849_v17 }
0x1744   :  { %3395 = vmatpush3.bf16.msra.mxu0 %v4718_v15  ;;  %v3474_v15 = vld [vmem:[#allocation11 + $0x8] sm:$0xff]  }
0x1745   :  { %3396 = vmatprep.subr.bf16.mxu0 %v4849_v17 }
0x1748   :  { %3397 = vmatpush3.bf16.msra.mxu0 %v4722_v22  ;;  %v3475_v22 = vld [vmem:[#allocation11 + $0x10] sm:$0xff]  }
0x17fe   :  { %v2153_v3 = vpop.f32.mrb[100].mxu0 }
0x17ff   :  { %v2154_v56 = vadd.f32 %v2153_v3, %v639_v55  ;;  %v3360_v50 = vpop.f32.mrb[101].mxu0 }
0x1800   :  { %v2156_v46 = vpop.f32.mrb[102].mxu0 }
0x1801   :  { %3585 = vtanh.f32 %v2154_v56  ;;  %v2157_v10 = vadd.f32 %v2156_v46, %v642_v42  ;;  %v3361_v52 = vpop.f32.mrb[103].mxu0 }
0x1803   :  { %3587 = vtanh.f32 %v2157_v10 }
0x180b   :  { %v3586_v41 = vpop.eup %3585 }
0x180c   :  { %v2164_v23 = vmul.f32 %v4787_v63, %v3586_v41 }
0x180d   :  { %v3588_v18 = vpop.eup %3587 }
0x180e   :  { %v2165_v48 = vmul.f32 %v4787_v63, %v3588_v18  ;;  %v2166_v5 = vadd.f32 %v2164_v23, %v2160_v21 }
0x1810   :  { %v2167_v9 = vadd.f32 %v2165_v48, %v2161_v6  ;;  %v2213_v45 = vmul.f32 %v2166_v5, %v3950_v34 }
0x1812   :  { %v2168_v0 = vpack.c.bf16 %v2167_v9, %v2166_v5  ;;  %v2214_v19 = vmul.f32 %v2167_v9, %v3950_v34 }
0x1814   :  { %3379 = vmatmul.mubr.bf16.vlgmr.msra.gmra.mrb[56].mxu1 %v2168_v0 }
0x1815   :  { %3418 = vmatprep.mubr.msk.bf16.mxu1 %vm3742_vm0, %v4849_v17  ;;  %3403 = vmatpush3.bf16.msra.mxu1 %v3473_v26 }
0x1816   :  { %3404 = vmatprep.subr.bf16.mxu1 %v4849_v17 }
0x1819   :  { %3405 = vmatpush3.bf16.msra.mxu1 %v3474_v15 }
0x181a   :  { %3406 = vmatprep.subr.bf16.mxu1 %v4849_v17 }
0x181d   :  { %3407 = vmatpush3.bf16.msra.mxu1 %v3475_v22 }
0x181e   :  { %3408 = vmatprep.subr.bf16.mxu1 %v4849_v17 }
0x1821   :  { %3409 = vmatpush3.bf16.msra.mxu1 %v3476_v49 }
0x1822   :  { %3410 = vmatprep.subr.bf16.mxu1 %v4849_v17 }
0x1825   :  { %3411 = vmatpush3.bf16.msra.mxu1 %v3477_v20 }
0x1826   :  { %3412 = vmatprep.subr.bf16.mxu1 %v4849_v17 }
0x1829   :  { %3413 = vmatpush3.bf16.msra.mxu1 %v3478_v24 }
0x182a   :  { %3414 = vmatprep.subr.bf16.mxu1 %v4849_v17 }
0x182d   :  { %3415 = vmatpush3.bf16.msra.mxu1 %v3479_v53 }
0x182e   :  { %3416 = vmatprep.subr.bf16.mxu1 %v4849_v17 }
0x1831   :  { %3417 = vmatpush3.bf16.msra.mxu1 %v3480_v38 }
0x18e7   :  { %v2206_v30 = vpop.f32.mrb[56].mxu1 }
0x18e8   :  { %v2207_v31 = vadd.f32 %v2206_v30, %v647_v11  ;;  %v3380_v59 = vpop.f32.mrb[57].mxu1 }
0x18e9   :  { %v2209_v13 = vpop.f32.mrb[58].mxu1 }
0x18ea   :  { %3589 = vtanh.f32 %v2207_v31  ;;  %v2210_v25 = vadd.f32 %v2209_v13, %v650_v12  ;;  %v3381_v61 = vpop.f32.mrb[59].mxu1 }
0x18ec   :  { %3591 = vtanh.f32 %v2210_v25 }
0x18f4   :  { %v3590_v16 = vpop.eup %3589 }
0x18f5   :  { %v2217_v47 = vmul.f32 %v4787_v63, %v3590_v16 }
0x18f6   :  { %v3592_v62 = vpop.eup %3591 }
0x18f7   :  { %v2218_v39 = vmul.f32 %v4787_v63, %v3592_v62  ;;  %v2219_v51 = vadd.f32 %v2217_v47, %v2213_v45 }
0x18f9   :  { %v2220_v57 = vadd.f32 %v2218_v39, %v2214_v19  ;;  %v2266_v44 = vmul.f32 %v2219_v51, %v3950_v34 }
0x18fb   :  { %v2221_v29 = vpack.c.bf16 %v2220_v57, %v2219_v51  ;;  %v2267_v33 = vmul.f32 %v2220_v57, %v3950_v34 }
0x18fd   :  { %3399 = vmatmul.mubr.bf16.vlgmr.msra.gmra.mrb[104].mxu0 %v2221_v29 }
0x19d0   :  { %v2259_v35 = vpop.f32.mrb[104].mxu0 }
0x19d1   :  { %v2260_v7 = vadd.f32 %v2259_v35, %v655_v58  ;;  %v3400_v1 = vpop.f32.mrb[105].mxu0 }
0x19d2   :  { %v2262_v2 = vpop.f32.mrb[106].mxu0 }
0x19d3   :  { %3593 = vtanh.f32 %v2260_v7  ;;  %v2263_v14 = vadd.f32 %v2262_v2, %v658_v60  ;;  %v3401_v36 = vpop.f32.mrb[107].mxu0 }
0x19d5   :  { %3595 = vtanh.f32 %v2263_v14 }
0x19dd   :  { %v3594_v54 = vpop.eup %3593 }
0x19de   :  { %v2270_v17 = vmul.f32 %v4787_v63, %v3594_v54 }
0x19df   :  { %v3596_v27 = vpop.eup %3595 }
0x19e0   :  { %v2271_v8 = vmul.f32 %v4787_v63, %v3596_v27  ;;  %v2272_v55 = vadd.f32 %v2270_v17, %v2266_v44 }
0x19e2   :  { %v2273_v3 = vadd.f32 %v2271_v8, %v2267_v33 }
0x19e4   :  { %v2279_v37 = vpack.c.bf16 %v2273_v3, %v2272_v55 }
0x19e6   :  { %3419 = vmatmul.mubr.bf16.vlgmr.msra.gmra.mrb[60].mxu1 %v2279_v37 }
0x1ab9   :  { %v2385_v42 = vpop.f32.mrb[60].mxu1 }
0x1aba   :  { %v2386_v56 = vadd.f32 %v2482_v4, %v2385_v42  ;;  %v3420_v50 = vpop.f32.mrb[61].mxu1 }
0x1abb   :  { %v2388_v46 = vpop.f32.mrb[62].mxu1 }
0x1abc   :  { %2392 = vst [vmem:[#allocation13] sm:$0xff] %v2386_v56  ;;  %v2389_v10 = vadd.f32 %v2482_v4, %v2388_v46  ;;  %v3421_v34 = vpop.f32.mrb[63].mxu1 }
0x1abe   :  { %2393 = vst [vmem:[#allocation13 + $0x8] sm:$0xff] %v2389_v10 }
0x1abf   :  { %3716 = shalt.err (!%p3713_p8)
}
0x1ac0   :  { %s3717_s15 = scalar_lea.hbm %s4839_s7, 256 }
0x1ac1   :  { %p3718_p9 = scmp.ne.s32.totalorder %s4839_s7, %s3717_s15  ;;  %p3721_p10 = scmp.lt.u32.totalorder %s3717_s15, %s4839_s7 }
0x1ac3   :  { %p3723_p11 = pnand %p3721_p10, %p3718_p9 }
0x1ac5   :  { %3726 = shalt.err (!%p3723_p11)
}
0x1ac6   :  { %s3745_s18 = smov 128   ;;  %s3746_s19 = smov 8  }
0x1ac7   :  { %2405 = dma.vmem_to_hbm [thread:$0]  %s2400_s10, 256, %s4839_s7, [#allocation7], %s3745_s18, %s3745_s18, %s3746_s19  }
0x1ac8   :  { %3733 = dma.done.wait [#allocation7], 256  }
0x1ac9   :  { %3734 = vsyncadd [#allocation7], 4294967040 }
0x1aca   :  { %2409 = vsyncpa [#allocation6], 1 }
0x1acb   :  { %2410 = vsyncpa [#allocation9], 1 }
0x1acc   :  { %2411 = vsyncpa [#allocation12], 1 }
0x1acd   :  { %2412 = vsyncpa [#allocation7], 1 }

</bundles_post_ra>
